<compile_context>
chip_gen: v7x
topology: tpu7x:2x2x1
jax: 0.10.0
libtpu: 0.0.40
codegen_flags: <defaults>
</compile_context>

<pallas_src>
import functools

import jax
import jax.numpy as jnp
from jax import lax
from jax.experimental import pallas as pl
from jax.experimental.pallas import tpu as pltpu

F32 = jnp.float32
BF16 = jnp.bfloat16


def elup1(x):
    # elu(x) + 1  (the 'elup1' variance activation used by CRU)
    return jnp.where(x > 0.0, x + 1.0, jnp.exp(x))


def _round_up(n, m):
    return ((n + m - 1) // m) * m


def _block_diag(a, b):
    da, ha = a.shape
    db, hb = b.shape
    top = jnp.concatenate([a, jnp.zeros((da, hb), a.dtype)], axis=1)
    bot = jnp.concatenate([jnp.zeros((db, ha), b.dtype), b], axis=1)
    return jnp.concatenate([top, bot], axis=0)


# --------------------------------------------------------------------------
# Fused 2-layer TimeDistributed MLP kernel (used by encoder AND by the fused
# SplitDiagGaussianDecoder):  x @ W1 -> relu [-> L2 norm] -> @ W2 + b2,
# lanes < split are the "mean" head (identity), lanes >= split get elup1.
# MXU operands are bf16 (cast in the wrapper); accumulation/bias/acts are f32.
# --------------------------------------------------------------------------
def _fused_mlp_kernel(split, normalize, x_ref, w1_ref, b1_ref, w2_ref, b2_ref, o_ref):
    h = jnp.dot(x_ref[...], w1_ref[...], preferred_element_type=jnp.float32)
    h = jnp.maximum(h + b1_ref[...], 0.0)
    if normalize:  # encoder output_normalization == 'pre' (rsqrt -> EUP slot)
        h = h * lax.rsqrt(jnp.sum(h * h, axis=-1, keepdims=True) + 1e-12)
    z = jnp.dot(h.astype(w2_ref.dtype), w2_ref[...],
                preferred_element_type=jnp.float32) + b2_ref[...]
    lane = lax.broadcasted_iota(jnp.int32, z.shape, 1)
    o_ref[...] = jnp.where(lane < split, z, jnp.where(z > 0.0, z + 1.0, jnp.exp(z)))


def _row_tile(n):
    # Large row tiles amortize the ~0.35us per-grid-step overhead; with the
    # feature dims used here (<= a few hundred) even 1024 rows is ~1 MB/buffer.
    if n >= 2048:
        return 1024
    if n >= 512:
        return 512
    return max(8, _round_up(n, 8))


def fused_mlp_forward(x, w1, b1, w2, b2, *, split, normalize):
    n, d_in = x.shape
    hidden = w1.shape[1]
    d_out = w2.shape[1]
    tm = _row_tile(n)
    n_pad = _round_up(n, tm)
    if n_pad != n:
        x = jnp.pad(x, ((0, n_pad - n), (0, 0)))

    flops = 2 * n_pad * (d_in * hidden + hidden * d_out)
    bytes_accessed = int(n_pad * d_in * x.dtype.itemsize + n_pad * d_out * 4
                         + w1.size * w1.dtype.itemsize + w2.size * w2.dtype.itemsize
                         + (b1.size + b2.size) * 4)

    out = pl.pallas_call(
        functools.partial(_fused_mlp_kernel, split, normalize),
        out_shape=jax.ShapeDtypeStruct((n_pad, d_out), F32),
        grid=(n_pad // tm,),
        in_specs=[
            pl.BlockSpec((tm, d_in), lambda i: (i, 0)),
            pl.BlockSpec((d_in, hidden), lambda i: (0, 0)),
            pl.BlockSpec((1, hidden), lambda i: (0, 0)),
            pl.BlockSpec((hidden, d_out), lambda i: (0, 0)),
            pl.BlockSpec((1, d_out), lambda i: (0, 0)),
        ],
        out_specs=pl.BlockSpec((tm, d_out), lambda i: (i, 0)),
        compiler_params=pltpu.CompilerParams(
            dimension_semantics=("parallel",),
            vmem_limit_bytes=32 * 1024 * 1024),   # raises v5e's 16 MiB default
        cost_estimate=pl.CostEstimate(flops=flops,
                                      transcendentals=n_pad * d_out,
                                      bytes_accessed=bytes_accessed),
    )(x, w1, b1, w2, b2)
    return out[:n]


# --------------------------------------------------------------------------
# CRU layer recurrence kernel: continuous-discrete Kalman filter.
#   grid = (batch blocks [parallel], time chunks [arbitrary])
#   input  pk_ref : (tb, tc, 9*lod)  = [y | y_var | t11 | t12 | t21 | t22 |
#                                       tau*q_u | tau*q_l | valid]
#   init_ref      : (8, lod)         rows 0..4 = [mu_u, mu_l, cu, cl, cs]_init
#   output out_ref: (tb, tc, 12*lod) = [post_mu(2) | post_cov(3) |
#                                       prior_mu(2) | prior_cov(3) | kg(2)]*lod
#   state scratch : 5 x (tb, lod)    (batch packed into sublanes)
# --------------------------------------------------------------------------
def _cru_kernel(lod, tc, pk_ref, init_ref, out_ref,
                mu_st, ml_st, cu_st, cl_st, cs_st):
    tb = mu_st.shape[0]

    @pl.when(pl.program_id(1) == 0)   # first time-chunk of each batch block
    def _():
        init = init_ref[...]
        mu_st[...] = jnp.broadcast_to(init[0:1, :], (tb, lod))
        ml_st[...] = jnp.broadcast_to(init[1:2, :], (tb, lod))
        cu_st[...] = jnp.broadcast_to(init[2:3, :], (tb, lod))
        cl_st[...] = jnp.broadcast_to(init[3:4, :], (tb, lod))
        cs_st[...] = jnp.broadcast_to(init[4:5, :], (tb, lod))

    # carry the Kalman state in vregs across the (statically unrolled) chunk
    mu, ml = mu_st[...], ml_st[...]
    cu, cl, cs = cu_st[...], cl_st[...], cs_st[...]

    # TODO(synk): for tc >> 32 switch to lax.fori_loop(..., unroll=4..8) to
    # bound live ranges; tc is capped at 32 in the wrapper so the static unroll
    # stays within vreg budget.
    for i in range(tc):
        row = pk_ref[:, i, :]                      # (tb, 9*lod), squeezed read
        y = row[:, 0:lod]
        yv = row[:, lod:2 * lod]
        t11 = row[:, 2 * lod:3 * lod]
        t12 = row[:, 3 * lod:4 * lod]
        t21 = row[:, 4 * lod:5 * lod]
        t22 = row[:, 5 * lod:6 * lod]
        tqu = row[:, 6 * lod:7 * lod]
        tql = row[:, 7 * lod:8 * lod]
        valid = row[:, 8 * lod:9 * lod]

        # --- predict (VPU only; coefficients precomputed in the wrapper) ----
        p_u = t11 * mu + t12 * ml
        p_l = t21 * mu + t22 * ml
        p_cu = t11 * t11 * cu + 2.0 * (t11 * t12) * cs + t12 * t12 * cl + tqu
        p_cl = t21 * t21 * cu + 2.0 * (t21 * t22) * cs + t22 * t22 * cl + tql
        p_cs = t11 * t21 * cu + (t11 * t22 + t12 * t21) * cs + t12 * t22 * cl

        # --- update: factorized Kalman step, H = [I 0], diag obs noise ------
        inv = pl.reciprocal(p_cu + yv + 1e-12, approx=True)   # EUP vrcp slot
        kg_u = valid * (p_cu * inv)
        kg_l = valid * (p_cs * inv)
        resid = y - p_u
        mu = p_u + kg_u * resid
        ml = p_l + kg_l * resid
        cu = (1.0 - kg_u) * p_cu
        cl = p_cl - kg_l * p_cs
        cs = (1.0 - kg_u) * p_cs

        # single packed lane-dense store per step (was 5 narrow stores)
        out_ref[:, i, :] = jnp.concatenate(
            [mu, ml, cu, cl, cs, p_u, p_l, p_cu, p_cl, p_cs, kg_u, kg_l],
            axis=-1)

    # write the carried state back once per chunk
    mu_st[...] = mu
    ml_st[...] = ml
    cu_st[...] = cu
    cl_st[...] = cl
    cs_st[...] = cs


def cru_recurrence(packed, init_tbl, lod):
    B, T, width = packed.shape            # width == 9*lod
    out_w = 12 * lod

    # batch blocking: pack batch rows into sublanes; >=2 blocks (B>=16) lets
    # the 'parallel' axis shard the otherwise-serial scan across v7x cores.
    tb = B if B <= 8 else 8
    nb = pl.cdiv(B, tb)
    b_pad = nb * tb

    # time chunking amortizes per-grid-step overhead; capped (static unroll).
    tc = min(32, _round_up(T, 8))
    nt = pl.cdiv(T, tc)
    t_pad = nt * tc

    if (b_pad, t_pad) != (B, T):
        packed = jnp.pad(packed, ((0, b_pad - B), (0, t_pad - T), (0, 0)))

    flops = int(b_pad) * int(t_pad) * int(lod) * 40
    bytes_accessed = int(4 * (b_pad * t_pad * (width + out_w) + init_tbl.size))

    grid_spec = pltpu.PrefetchScalarGridSpec(
        num_scalar_prefetch=0,
        grid=(nb, nt),
        in_specs=[
            pl.BlockSpec((tb, tc, width), lambda b, t: (b, t, 0)),
            pl.BlockSpec((8, lod), lambda b, t: (0, 0)),   # stays VMEM-resident
        ],
        out_specs=pl.BlockSpec((tb, tc, out_w), lambda b, t: (b, t, 0)),
        scratch_shapes=[pltpu.VMEM((tb, lod), F32) for _ in range(5)],
    )
    out = pl.pallas_call(
        functools.partial(_cru_kernel, lod, tc),
        grid_spec=grid_spec,
        out_shape=jax.ShapeDtypeStruct((b_pad, t_pad, out_w), F32),
        compiler_params=pltpu.CompilerParams(
            dimension_semantics=("parallel", "arbitrary"),
            vmem_limit_bytes=32 * 1024 * 1024),
        cost_estimate=pl.CostEstimate(flops=flops,
                                      transcendentals=b_pad * t_pad * lod,
                                      bytes_accessed=bytes_accessed),
    )(packed, init_tbl)
    return out[:B, :T]


# --------------------------------------------------------------------------
# Full CRU forward pass (encoder -> CRU layer -> split diag Gaussian decoder)
# --------------------------------------------------------------------------
def cru_forward(params, obs, time_points, obs_valid):
    B, T, d_obs = obs.shape
    lod = params["wm"].shape[1]
    lsd = 2 * lod
    target_dim = params["dec_wm2"].shape[1]
    n = B * T

    # --- fused TimeDistributed encoder (one MXU pass for both heads) ---------
    x = obs.reshape(n, d_obs).astype(BF16)
    wmv = jnp.concatenate([params["wm"], params["wv"]], axis=1)
    bmv = jnp.concatenate([params["bm"], params["bv"]], axis=1)
    yyv_flat = fused_mlp_forward(
        x, params["enc_w1"].astype(BF16), params["enc_b1"],
        wmv.astype(BF16), bmv, split=lod, normalize=True)
    yyv = yyv_flat.reshape(B, T, 2 * lod)            # [y | elup1(y_var)]
    y = yyv[..., :lod]
    y_var = yyv[..., lod:]

    # --- transition coefficients precomputed OFF the serial critical path ----
    A = params["A"].astype(F32)
    a_uu = jnp.diag(A[:lod, :lod])
    a_ul = jnp.diag(A[:lod, lod:])
    a_lu = jnp.diag(A[lod:, :lod])
    a_ll = jnp.diag(A[lod:, lod:])
    q = elup1(params["log_q"].astype(F32))                        # (2, lod)
    delta = jnp.concatenate(
        [jnp.zeros((B, 1), F32),
         (time_points[:, 1:] - time_points[:, :-1]).astype(F32)], axis=1)
    tau = delta[..., None]                                        # (B, T, 1)
    valid_b = jnp.broadcast_to(obs_valid.astype(F32)[..., None], (B, T, lod))
    packed = jnp.concatenate(
        [y, y_var,
         1.0 + tau * a_uu, tau * a_ul, tau * a_lu, 1.0 + tau * a_ll,
         tau * q[0], tau * q[1], valid_b], axis=-1)               # (B, T, 9*lod)

    icu = elup1(params["log_icu"].astype(F32))[0]   # var_activation(log_icu)
    icl = elup1(params["log_icl"].astype(F32))[0]
    zeros_lod = jnp.zeros((lod,), F32)
    init_tbl = jnp.stack([zeros_lod, zeros_lod,      # initial mean (upper|lower)
                          icu, icl, zeros_lod,       # initial cov (cu|cl|cs)
                          zeros_lod, zeros_lod, zeros_lod], axis=0)   # pad to 8

    # --- CRU layer (batch-parallel, time-chunked recurrence) -----------------
    out_packed = cru_recurrence(packed, init_tbl, lod)            # (B,T,12*lod)
    post_mean = out_packed[..., :2 * lod]
    post_cov_p = out_packed[..., 2 * lod:5 * lod]
    prior_mean = out_packed[..., 5 * lod:7 * lod]
    prior_cov_p = out_packed[..., 7 * lod:10 * lod]
    kg_p = out_packed[..., 10 * lod:12 * lod]

    post_cov = [post_cov_p[..., :lod], post_cov_p[..., lod:2 * lod],
                post_cov_p[..., 2 * lod:]]
    prior_cov = [prior_cov_p[..., :lod], prior_cov_p[..., lod:2 * lod],
                 prior_cov_p[..., 2 * lod:]]
    kalman_gain = [kg_p[..., :lod], kg_p[..., lod:]]

    # --- fused SplitDiagGaussianDecoder: BOTH branches in one pallas_call ----
    # first 5*lod lanes of out_packed are exactly [post_mean | cat(post_cov)].
    dec_in = out_packed[..., :5 * lod].reshape(n, 5 * lod).astype(BF16)
    w1_bd = _block_diag(params["dec_wm1"], params["dec_wv1"]).astype(BF16)
    b1_cat = jnp.concatenate([params["dec_bm1"], params["dec_bv1"]], axis=1)
    w2_bd = _block_diag(params["dec_wm2"], params["dec_wv2"]).astype(BF16)
    b2_cat = jnp.concatenate([params["dec_bm2"], params["dec_bv2"]], axis=1)
    dec_out = fused_mlp_forward(dec_in, w1_bd, b1_cat, w2_bd, b2_cat,
                                split=target_dim, normalize=False)
    out_mean = dec_out[:, :target_dim].reshape(B, T, target_dim)
    out_var = dec_out[:, target_dim:].reshape(B, T, target_dim)

    intermediates = {
        "post_mean": post_mean, "post_cov": post_cov,
        "prior_mean": prior_mean, "prior_cov": prior_cov,
        "kalman_gain": kalman_gain, "y": y, "y_var": y_var,
    }
    return out_mean, out_var, intermediates


# --------------------------------------------------------------------------
# Deterministic parameter initialization (shapes follow the module's __init__)
# --------------------------------------------------------------------------
def init_params(key, obs_dim, target_dim, lod, hidden):
    lsd = 2 * lod
    ks = jax.random.split(key, 8)

    def lin(k, din, dout):
        scale = 1.0 / jnp.sqrt(jnp.asarray(din, F32))
        return scale * jax.random.normal(k, (din, dout), F32), jnp.zeros((1, dout), F32)

    p = {}
    p["enc_w1"], p["enc_b1"] = lin(ks[0], obs_dim, hidden)
    p["wm"], p["bm"] = lin(ks[1], hidden, lod)
    p["wv"], p["bv"] = lin(ks[2], hidden, lod)
    p["A"] = 0.1 * jax.random.normal(ks[3], (lsd, lsd), F32)
    p["log_q"] = -2.0 * jnp.ones((2, lod), F32)
    log_ic = 10.0 - 1.0   # var_activation_inverse(10.0) for elup1
    p["log_icu"] = log_ic * jnp.ones((1, lod), F32)
    p["log_icl"] = log_ic * jnp.ones((1, lod), F32)
    p["dec_wm1"], p["dec_bm1"] = lin(ks[4], lsd, hidden)
    p["dec_wm2"], p["dec_bm2"] = lin(ks[5], hidden, target_dim)
    p["dec_wv1"], p["dec_bv1"] = lin(ks[6], 3 * lod, hidden)
    p["dec_wv2"], p["dec_bv2"] = lin(ks[7], hidden, target_dim)
    return p


if __name__ == "__main__":
    B, T, obs_dim, target_dim, lod, hidden = 2, 8, 16, 16, 16, 32
    key = jax.random.PRNGKey(0)
    k_obs, k_time, k_valid, k_par = jax.random.split(key, 4)

    obs = jax.random.normal(k_obs, (B, T, obs_dim), F32)
    time_points = jnp.cumsum(
        jax.random.uniform(k_time, (B, T), F32, 0.1, 1.0), axis=1)
    obs_valid = jax.random.bernoulli(k_valid, 0.8, (B, T))
    params = init_params(k_par, obs_dim, target_dim, lod, hidden)

    fwd = jax.jit(cru_forward)
    out_mean, out_var, intermediates = fwd(params, obs, time_points, obs_valid)
    jax.block_until_ready((out_mean, out_var))

    assert out_mean.shape == (B, T, target_dim)
    assert out_var.shape == (B, T, target_dim)
    assert intermediates["post_mean"].shape == (B, T, 2 * lod)
    assert intermediates["post_cov"][0].shape == (B, T, lod)
    assert intermediates["prior_mean"].shape == (B, T, 2 * lod)
    assert intermediates["kalman_gain"][0].shape == (B, T, lod)
    assert bool(jnp.all(jnp.isfinite(out_mean))) and bool(jnp.all(jnp.isfinite(out_var)))
    print("KERNEL_OK")
</pallas_src>

<mosaic_0001>
module attributes {stable_mosaic.version = 11 : i64} {
  func.func @_fused_mlp_kernel(%arg0: i32, %arg1: memref<16x16xbf16, #tpu.memory_space<vmem>>, %arg2: memref<16x32xbf16, #tpu.memory_space<vmem>>, %arg3: memref<1x32xf32, #tpu.memory_space<vmem>>, %arg4: memref<32x32xbf16, #tpu.memory_space<vmem>>, %arg5: memref<1x32xf32, #tpu.memory_space<vmem>>, %arg6: memref<16x32xf32, #tpu.memory_space<vmem>>) attributes {dimension_semantics = [#tpu.dimension_semantics<parallel>], iteration_bounds = array<i64: 1>, scalar_prefetch = 0 : i64, scratch_operands = 0 : i64, tpu.core_type = #tpu.core_type<tc>, window_params = [{transform_indices = @transform_0, window_bounds = array<i64: 16, 16>}, {pipeline_mode = #tpu.pipeline_mode<synchronous>, transform_indices = @transform_1, window_bounds = array<i64: 16, 32>}, {pipeline_mode = #tpu.pipeline_mode<synchronous>, transform_indices = @transform_2, window_bounds = array<i64: 1, 32>}, {pipeline_mode = #tpu.pipeline_mode<synchronous>, transform_indices = @transform_3, window_bounds = array<i64: 32, 32>}, {pipeline_mode = #tpu.pipeline_mode<synchronous>, transform_indices = @transform_4, window_bounds = array<i64: 1, 32>}, {transform_indices = @transform_5, window_bounds = array<i64: 16, 32>}]} {
    %c0 = arith.constant 0 : index
    %c0_0 = arith.constant 0 : index
    %0 = vector.load %arg1[%c0, %c0_0] : memref<16x16xbf16, #tpu.memory_space<vmem>>, vector<16x16xbf16>
    %c0_1 = arith.constant 0 : index
    %c0_2 = arith.constant 0 : index
    %1 = vector.load %arg2[%c0_1, %c0_2] : memref<16x32xbf16, #tpu.memory_space<vmem>>, vector<16x32xbf16>
    %cst = arith.constant dense<0.000000e+00> : vector<16x32xf32>
    %2 = tpu.matmul %0, %1, %cst {dimension_numbers = #tpu.dot_dimension_numbers<[1], [0], [0], [1], [0, 0, 1, 1], [], []>} : vector<16x16xbf16>, vector<16x32xbf16>, vector<16x32xf32> -> vector<16x32xf32>
    %c0_3 = arith.constant 0 : index
    %c0_4 = arith.constant 0 : index
    %3 = vector.load %arg3[%c0_3, %c0_4] : memref<1x32xf32, #tpu.memory_space<vmem>>, vector<1x32xf32>
    %4 = vector.broadcast %3 : vector<1x32xf32> to vector<16x32xf32>
    %5 = arith.addf %2, %4 : vector<16x32xf32>
    %cst_5 = arith.constant 0.000000e+00 : f32
    %6 = vector.broadcast %cst_5 : f32 to vector<16x32xf32>
    %7 = arith.maximumf %5, %6 : vector<16x32xf32>
    %8 = arith.mulf %7, %7 : vector<16x32xf32>
    %cst_6 = arith.constant dense<0.000000e+00> : vector<16xf32>
    %9 = vector.multi_reduction <add>, %8, %cst_6 [1] : vector<16x32xf32> to vector<16xf32>
    %10 = vector.shape_cast %9 : vector<16xf32> to vector<16x1xf32>
    %cst_7 = arith.constant 9.99999996E-13 : f32
    %11 = vector.broadcast %cst_7 : f32 to vector<16x1xf32>
    %12 = arith.addf %10, %11 : vector<16x1xf32>
    %13 = math.rsqrt %12 : vector<16x1xf32>
    %14 = vector.broadcast %13 : vector<16x1xf32> to vector<16x32xf32>
    %15 = arith.mulf %7, %14 : vector<16x32xf32>
    %16 = arith.truncf %15 : vector<16x32xf32> to vector<16x32xbf16>
    %c0_8 = arith.constant 0 : index
    %c0_9 = arith.constant 0 : index
    %17 = vector.load %arg4[%c0_8, %c0_9] : memref<32x32xbf16, #tpu.memory_space<vmem>>, vector<32x32xbf16>
    %cst_10 = arith.constant dense<0.000000e+00> : vector<16x32xf32>
    %18 = tpu.matmul %16, %17, %cst_10 {dimension_numbers = #tpu.dot_dimension_numbers<[1], [0], [0], [1], [0, 0, 1, 1], [], []>} : vector<16x32xbf16>, vector<32x32xbf16>, vector<16x32xf32> -> vector<16x32xf32>
    %c0_11 = arith.constant 0 : index
    %c0_12 = arith.constant 0 : index
    %19 = vector.load %arg5[%c0_11, %c0_12] : memref<1x32xf32, #tpu.memory_space<vmem>>, vector<1x32xf32>
    %20 = vector.broadcast %19 : vector<1x32xf32> to vector<16x32xf32>
    %21 = arith.addf %18, %20 : vector<16x32xf32>
    %22 = tpu.iota {dimensions = array<i32: 1>} : vector<16x32xi32>
    %c16_i32 = arith.constant 16 : i32
    %23 = vector.broadcast %c16_i32 : i32 to vector<16x32xi32>
    %24 = arith.cmpi slt, %22, %23 : vector<16x32xi32>
    %cst_13 = arith.constant 0.000000e+00 : f32
    %25 = vector.broadcast %cst_13 : f32 to vector<16x32xf32>
    %26 = arith.cmpf ogt, %21, %25 : vector<16x32xf32>
    %cst_14 = arith.constant 1.000000e+00 : f32
    %27 = vector.broadcast %cst_14 : f32 to vector<16x32xf32>
    %28 = arith.addf %21, %27 : vector<16x32xf32>
    %29 = math.exp %21 : vector<16x32xf32>
    %30 = arith.select %26, %28, %29 : vector<16x32xi1>, vector<16x32xf32>
    %31 = arith.select %24, %21, %30 : vector<16x32xi1>, vector<16x32xf32>
    %c0_15 = arith.constant 0 : index
    %c0_16 = arith.constant 0 : index
    %32 = vector.load %arg6[%c0_15, %c0_16] : memref<16x32xf32, #tpu.memory_space<vmem>>, vector<16x32xf32>
    tpu.vector_store %arg6[%c0_15, %c0_16], %31 {strides = array<i32>} : memref<16x32xf32, #tpu.memory_space<vmem>>, vector<16x32xf32>,
    return
  }
  func.func @transform_0(%arg0: i32) -> (i32, i32) {
    %c0_i32 = arith.constant 0 : i32
    %c0_i32_0 = arith.constant 0 : i32
    return %arg0, %c0_i32 : i32, i32
  }
  func.func @transform_1(%arg0: i32) -> (i32, i32) {
    %c0_i32 = arith.constant 0 : i32
    %c0_i32_0 = arith.constant 0 : i32
    %c0_i32_1 = arith.constant 0 : i32
    return %c0_i32, %c0_i32_0 : i32, i32
  }
  func.func @transform_2(%arg0: i32) -> (i32, i32) {
    %c0_i32 = arith.constant 0 : i32
    %c0_i32_0 = arith.constant 0 : i32
    %c0_i32_1 = arith.constant 0 : i32
    return %c0_i32, %c0_i32_0 : i32, i32
  }
  func.func @transform_3(%arg0: i32) -> (i32, i32) {
    %c0_i32 = arith.constant 0 : i32
    %c0_i32_0 = arith.constant 0 : i32
    %c0_i32_1 = arith.constant 0 : i32
    return %c0_i32, %c0_i32_0 : i32, i32
  }
  func.func @transform_4(%arg0: i32) -> (i32, i32) {
    %c0_i32 = arith.constant 0 : i32
    %c0_i32_0 = arith.constant 0 : i32
    %c0_i32_1 = arith.constant 0 : i32
    return %c0_i32, %c0_i32_0 : i32, i32
  }
  func.func @transform_5(%arg0: i32) -> (i32, i32) {
    %c0_i32 = arith.constant 0 : i32
    %c0_i32_0 = arith.constant 0 : i32
    return %arg0, %c0_i32 : i32, i32
  }
}

module attributes {stable_mosaic.version = 11 : i64} {
  func.func @_fused_mlp_kernel(%arg0: i32, %arg1: memref<16x80xbf16, #tpu.memory_space<vmem>>, %arg2: memref<80x64xbf16, #tpu.memory_space<vmem>>, %arg3: memref<1x64xf32, #tpu.memory_space<vmem>>, %arg4: memref<64x32xbf16, #tpu.memory_space<vmem>>, %arg5: memref<1x32xf32, #tpu.memory_space<vmem>>, %arg6: memref<16x32xf32, #tpu.memory_space<vmem>>) attributes {dimension_semantics = [#tpu.dimension_semantics<parallel>], iteration_bounds = array<i64: 1>, scalar_prefetch = 0 : i64, scratch_operands = 0 : i64, tpu.core_type = #tpu.core_type<tc>, window_params = [{transform_indices = @transform_0, window_bounds = array<i64: 16, 80>}, {pipeline_mode = #tpu.pipeline_mode<synchronous>, transform_indices = @transform_1, window_bounds = array<i64: 80, 64>}, {pipeline_mode = #tpu.pipeline_mode<synchronous>, transform_indices = @transform_2, window_bounds = array<i64: 1, 64>}, {pipeline_mode = #tpu.pipeline_mode<synchronous>, transform_indices = @transform_3, window_bounds = array<i64: 64, 32>}, {pipeline_mode = #tpu.pipeline_mode<synchronous>, transform_indices = @transform_4, window_bounds = array<i64: 1, 32>}, {transform_indices = @transform_5, window_bounds = array<i64: 16, 32>}]} {
    %c0 = arith.constant 0 : index
    %c0_0 = arith.constant 0 : index
    %0 = vector.load %arg1[%c0, %c0_0] : memref<16x80xbf16, #tpu.memory_space<vmem>>, vector<16x80xbf16>
    %c0_1 = arith.constant 0 : index
    %c0_2 = arith.constant 0 : index
    %1 = vector.load %arg2[%c0_1, %c0_2] : memref<80x64xbf16, #tpu.memory_space<vmem>>, vector<80x64xbf16>
    %cst = arith.constant dense<0.000000e+00> : vector<16x64xf32>
    %2 = tpu.matmul %0, %1, %cst {dimension_numbers = #tpu.dot_dimension_numbers<[1], [0], [0], [1], [0, 0, 1, 1], [], []>} : vector<16x80xbf16>, vector<80x64xbf16>, vector<16x64xf32> -> vector<16x64xf32>
    %c0_3 = arith.constant 0 : index
    %c0_4 = arith.constant 0 : index
    %3 = vector.load %arg3[%c0_3, %c0_4] : memref<1x64xf32, #tpu.memory_space<vmem>>, vector<1x64xf32>
    %4 = vector.broadcast %3 : vector<1x64xf32> to vector<16x64xf32>
    %5 = arith.addf %2, %4 : vector<16x64xf32>
    %cst_5 = arith.constant 0.000000e+00 : f32
    %6 = vector.broadcast %cst_5 : f32 to vector<16x64xf32>
    %7 = arith.maximumf %5, %6 : vector<16x64xf32>
    %8 = arith.truncf %7 : vector<16x64xf32> to vector<16x64xbf16>
    %c0_6 = arith.constant 0 : index
    %c0_7 = arith.constant 0 : index
    %9 = vector.load %arg4[%c0_6, %c0_7] : memref<64x32xbf16, #tpu.memory_space<vmem>>, vector<64x32xbf16>
    %cst_8 = arith.constant dense<0.000000e+00> : vector<16x32xf32>
    %10 = tpu.matmul %8, %9, %cst_8 {dimension_numbers = #tpu.dot_dimension_numbers<[1], [0], [0], [1], [0, 0, 1, 1], [], []>} : vector<16x64xbf16>, vector<64x32xbf16>, vector<16x32xf32> -> vector<16x32xf32>
    %c0_9 = arith.constant 0 : index
    %c0_10 = arith.constant 0 : index
    %11 = vector.load %arg5[%c0_9, %c0_10] : memref<1x32xf32, #tpu.memory_space<vmem>>, vector<1x32xf32>
    %12 = vector.broadcast %11 : vector<1x32xf32> to vector<16x32xf32>
    %13 = arith.addf %10, %12 : vector<16x32xf32>
    %14 = tpu.iota {dimensions = array<i32: 1>} : vector<16x32xi32>
    %c16_i32 = arith.constant 16 : i32
    %15 = vector.broadcast %c16_i32 : i32 to vector<16x32xi32>
    %16 = arith.cmpi slt, %14, %15 : vector<16x32xi32>
    %cst_11 = arith.constant 0.000000e+00 : f32
    %17 = vector.broadcast %cst_11 : f32 to vector<16x32xf32>
    %18 = arith.cmpf ogt, %13, %17 : vector<16x32xf32>
    %cst_12 = arith.constant 1.000000e+00 : f32
    %19 = vector.broadcast %cst_12 : f32 to vector<16x32xf32>
    %20 = arith.addf %13, %19 : vector<16x32xf32>
    %21 = math.exp %13 : vector<16x32xf32>
    %22 = arith.select %18, %20, %21 : vector<16x32xi1>, vector<16x32xf32>
    %23 = arith.select %16, %13, %22 : vector<16x32xi1>, vector<16x32xf32>
    %c0_13 = arith.constant 0 : index
    %c0_14 = arith.constant 0 : index
    %24 = vector.load %arg6[%c0_13, %c0_14] : memref<16x32xf32, #tpu.memory_space<vmem>>, vector<16x32xf32>
    tpu.vector_store %arg6[%c0_13, %c0_14], %23 {strides = array<i32>} : memref<16x32xf32, #tpu.memory_space<vmem>>, vector<16x32xf32>,
    return
  }
  func.func @transform_0(%arg0: i32) -> (i32, i32) {
    %c0_i32 = arith.constant 0 : i32
    %c0_i32_0 = arith.constant 0 : i32
    return %arg0, %c0_i32 : i32, i32
  }
  func.func @transform_1(%arg0: i32) -> (i32, i32) {
    %c0_i32 = arith.constant 0 : i32
    %c0_i32_0 = arith.constant 0 : i32
    %c0_i32_1 = arith.constant 0 : i32
    return %c0_i32, %c0_i32_0 : i32, i32
  }
  func.func @transform_2(%arg0: i32) -> (i32, i32) {
    %c0_i32 = arith.constant 0 : i32
    %c0_i32_0 = arith.constant 0 : i32
    %c0_i32_1 = arith.constant 0 : i32
    return %c0_i32, %c0_i32_0 : i32, i32
  }
  func.func @transform_3(%arg0: i32) -> (i32, i32) {
    %c0_i32 = arith.constant 0 : i32
    %c0_i32_0 = arith.constant 0 : i32
    %c0_i32_1 = arith.constant 0 : i32
    return %c0_i32, %c0_i32_0 : i32, i32
  }
  func.func @transform_4(%arg0: i32) -> (i32, i32) {
    %c0_i32 = arith.constant 0 : i32
    %c0_i32_0 = arith.constant 0 : i32
    %c0_i32_1 = arith.constant 0 : i32
    return %c0_i32, %c0_i32_0 : i32, i32
  }
  func.func @transform_5(%arg0: i32) -> (i32, i32) {
    %c0_i32 = arith.constant 0 : i32
    %c0_i32_0 = arith.constant 0 : i32
    return %arg0, %c0_i32 : i32, i32
  }
}

module attributes {stable_mosaic.version = 11 : i64} {
  func.func @_cru_kernel(%arg0: i32, %arg1: i32, %arg2: memref<2x8x144xf32, #tpu.memory_space<vmem>>, %arg3: memref<8x16xf32, #tpu.memory_space<vmem>>, %arg4: memref<2x8x192xf32, #tpu.memory_space<vmem>>, %arg5: memref<2x16xf32, #tpu.memory_space<vmem>>, %arg6: memref<2x16xf32, #tpu.memory_space<vmem>>, %arg7: memref<2x16xf32, #tpu.memory_space<vmem>>, %arg8: memref<2x16xf32, #tpu.memory_space<vmem>>, %arg9: memref<2x16xf32, #tpu.memory_space<vmem>>) attributes {dimension_semantics = [#tpu.dimension_semantics<parallel>, #tpu.dimension_semantics<arbitrary>], iteration_bounds = array<i64: 1, 1>, scalar_prefetch = 0 : i64, scratch_operands = 5 : i64, tpu.core_type = #tpu.core_type<tc>, window_params = [{transform_indices = @transform_0, window_bounds = array<i64: 2, 8, 144>}, {pipeline_mode = #tpu.pipeline_mode<synchronous>, transform_indices = @transform_1, window_bounds = array<i64: 8, 16>}, {transform_indices = @transform_2, window_bounds = array<i64: 2, 8, 192>}]} {
    %c0_i32 = arith.constant 0 : i32
    %0 = arith.cmpi eq, %arg1, %c0_i32 : i32
    %1 = arith.extui %0 : i1 to i32
    %c0_i32_0 = arith.constant 0 : i32
    %2 = arith.cmpi ne, %1, %c0_i32_0 : i32
    scf.if %2 {
      %c0_100 = arith.constant 0 : index
      %c0_101 = arith.constant 0 : index
      %605 = vector.load %arg3[%c0_100, %c0_101] : memref<8x16xf32, #tpu.memory_space<vmem>>, vector<8x16xf32>
      %606 = vector.extract_strided_slice %605 {offsets = [0, 0], sizes = [1, 16], strides = [1, 1]} : vector<8x16xf32> to vector<1x16xf32>
      %607 = vector.shape_cast %606 : vector<1x16xf32> to vector<1x16xf32>
      %608 = vector.broadcast %607 : vector<1x16xf32> to vector<2x16xf32>
      %c0_102 = arith.constant 0 : index
      %c0_103 = arith.constant 0 : index
      %609 = vector.load %arg5[%c0_102, %c0_103] : memref<2x16xf32, #tpu.memory_space<vmem>>, vector<2x16xf32>
      tpu.vector_store %arg5[%c0_102, %c0_103], %608 {strides = array<i32>} : memref<2x16xf32, #tpu.memory_space<vmem>>, vector<2x16xf32>,
      %610 = vector.extract_strided_slice %605 {offsets = [1, 0], sizes = [1, 16], strides = [1, 1]} : vector<8x16xf32> to vector<1x16xf32>
      %611 = vector.shape_cast %610 : vector<1x16xf32> to vector<1x16xf32>
      %612 = vector.broadcast %611 : vector<1x16xf32> to vector<2x16xf32>
      %c0_104 = arith.constant 0 : index
      %c0_105 = arith.constant 0 : index
      %613 = vector.load %arg6[%c0_104, %c0_105] : memref<2x16xf32, #tpu.memory_space<vmem>>, vector<2x16xf32>
      tpu.vector_store %arg6[%c0_104, %c0_105], %612 {strides = array<i32>} : memref<2x16xf32, #tpu.memory_space<vmem>>, vector<2x16xf32>,
      %614 = vector.extract_strided_slice %605 {offsets = [2, 0], sizes = [1, 16], strides = [1, 1]} : vector<8x16xf32> to vector<1x16xf32>
      %615 = vector.shape_cast %614 : vector<1x16xf32> to vector<1x16xf32>
      %616 = vector.broadcast %615 : vector<1x16xf32> to vector<2x16xf32>
      %c0_106 = arith.constant 0 : index
      %c0_107 = arith.constant 0 : index
      %617 = vector.load %arg7[%c0_106, %c0_107] : memref<2x16xf32, #tpu.memory_space<vmem>>, vector<2x16xf32>
      tpu.vector_store %arg7[%c0_106, %c0_107], %616 {strides = array<i32>} : memref<2x16xf32, #tpu.memory_space<vmem>>, vector<2x16xf32>,
      %618 = vector.extract_strided_slice %605 {offsets = [3, 0], sizes = [1, 16], strides = [1, 1]} : vector<8x16xf32> to vector<1x16xf32>
      %619 = vector.shape_cast %618 : vector<1x16xf32> to vector<1x16xf32>
      %620 = vector.broadcast %619 : vector<1x16xf32> to vector<2x16xf32>
      %c0_108 = arith.constant 0 : index
      %c0_109 = arith.constant 0 : index
      %621 = vector.load %arg8[%c0_108, %c0_109] : memref<2x16xf32, #tpu.memory_space<vmem>>, vector<2x16xf32>
      tpu.vector_store %arg8[%c0_108, %c0_109], %620 {strides = array<i32>} : memref<2x16xf32, #tpu.memory_space<vmem>>, vector<2x16xf32>,
      %622 = vector.extract_strided_slice %605 {offsets = [4, 0], sizes = [1, 16], strides = [1, 1]} : vector<8x16xf32> to vector<1x16xf32>
      %623 = vector.shape_cast %622 : vector<1x16xf32> to vector<1x16xf32>
      %624 = vector.broadcast %623 : vector<1x16xf32> to vector<2x16xf32>
      %c0_110 = arith.constant 0 : index
      %c0_111 = arith.constant 0 : index
      %625 = vector.load %arg9[%c0_110, %c0_111] : memref<2x16xf32, #tpu.memory_space<vmem>>, vector<2x16xf32>
      tpu.vector_store %arg9[%c0_110, %c0_111], %624 {strides = array<i32>} : memref<2x16xf32, #tpu.memory_space<vmem>>, vector<2x16xf32>,
    } else {
    }
    %c0 = arith.constant 0 : index
    %c0_1 = arith.constant 0 : index
    %3 = vector.load %arg5[%c0, %c0_1] : memref<2x16xf32, #tpu.memory_space<vmem>>, vector<2x16xf32>
    %c0_2 = arith.constant 0 : index
    %c0_3 = arith.constant 0 : index
    %4 = vector.load %arg6[%c0_2, %c0_3] : memref<2x16xf32, #tpu.memory_space<vmem>>, vector<2x16xf32>
    %c0_4 = arith.constant 0 : index
    %c0_5 = arith.constant 0 : index
    %5 = vector.load %arg7[%c0_4, %c0_5] : memref<2x16xf32, #tpu.memory_space<vmem>>, vector<2x16xf32>
    %c0_6 = arith.constant 0 : index
    %c0_7 = arith.constant 0 : index
    %6 = vector.load %arg8[%c0_6, %c0_7] : memref<2x16xf32, #tpu.memory_space<vmem>>, vector<2x16xf32>
    %c0_8 = arith.constant 0 : index
    %c0_9 = arith.constant 0 : index
    %7 = vector.load %arg9[%c0_8, %c0_9] : memref<2x16xf32, #tpu.memory_space<vmem>>, vector<2x16xf32>
    %c0_10 = arith.constant 0 : index
    %c0_11 = arith.constant 0 : index
    %c0_12 = arith.constant 0 : index
    %8 = vector.load %arg2[%c0_10, %c0_11, %c0_12] : memref<2x8x144xf32, #tpu.memory_space<vmem>>, vector<2x1x144xf32>
    %9 = vector.shape_cast %8 : vector<2x1x144xf32> to vector<2x144xf32>
    %10 = vector.extract_strided_slice %9 {offsets = [0, 0], sizes = [2, 16], strides = [1, 1]} : vector<2x144xf32> to vector<2x16xf32>
    %11 = vector.extract_strided_slice %9 {offsets = [0, 16], sizes = [2, 16], strides = [1, 1]} : vector<2x144xf32> to vector<2x16xf32>
    %12 = vector.extract_strided_slice %9 {offsets = [0, 32], sizes = [2, 16], strides = [1, 1]} : vector<2x144xf32> to vector<2x16xf32>
    %13 = vector.extract_strided_slice %9 {offsets = [0, 48], sizes = [2, 16], strides = [1, 1]} : vector<2x144xf32> to vector<2x16xf32>
    %14 = vector.extract_strided_slice %9 {offsets = [0, 64], sizes = [2, 16], strides = [1, 1]} : vector<2x144xf32> to vector<2x16xf32>
    %15 = vector.extract_strided_slice %9 {offsets = [0, 80], sizes = [2, 16], strides = [1, 1]} : vector<2x144xf32> to vector<2x16xf32>
    %16 = vector.extract_strided_slice %9 {offsets = [0, 96], sizes = [2, 16], strides = [1, 1]} : vector<2x144xf32> to vector<2x16xf32>
    %17 = vector.extract_strided_slice %9 {offsets = [0, 112], sizes = [2, 16], strides = [1, 1]} : vector<2x144xf32> to vector<2x16xf32>
    %18 = vector.extract_strided_slice %9 {offsets = [0, 128], sizes = [2, 16], strides = [1, 1]} : vector<2x144xf32> to vector<2x16xf32>
    %19 = arith.mulf %12, %3 : vector<2x16xf32>
    %20 = arith.mulf %13, %4 : vector<2x16xf32>
    %21 = arith.addf %19, %20 : vector<2x16xf32>
    %22 = arith.mulf %14, %3 : vector<2x16xf32>
    %23 = arith.mulf %15, %4 : vector<2x16xf32>
    %24 = arith.addf %22, %23 : vector<2x16xf32>
    %25 = arith.mulf %12, %12 : vector<2x16xf32>
    %26 = arith.mulf %25, %5 : vector<2x16xf32>
    %27 = arith.mulf %12, %13 : vector<2x16xf32>
    %cst = arith.constant 2.000000e+00 : f32
    %28 = vector.broadcast %cst : f32 to vector<2x16xf32>
    %29 = arith.mulf %28, %27 : vector<2x16xf32>
    %30 = arith.mulf %29, %7 : vector<2x16xf32>
    %31 = arith.addf %26, %30 : vector<2x16xf32>
    %32 = arith.mulf %13, %13 : vector<2x16xf32>
    %33 = arith.mulf %32, %6 : vector<2x16xf32>
    %34 = arith.addf %31, %33 : vector<2x16xf32>
    %35 = arith.addf %34, %16 : vector<2x16xf32>
    %36 = arith.mulf %14, %14 : vector<2x16xf32>
    %37 = arith.mulf %36, %5 : vector<2x16xf32>
    %38 = arith.mulf %14, %15 : vector<2x16xf32>
    %cst_13 = arith.constant 2.000000e+00 : f32
    %39 = vector.broadcast %cst_13 : f32 to vector<2x16xf32>
    %40 = arith.mulf %39, %38 : vector<2x16xf32>
    %41 = arith.mulf %40, %7 : vector<2x16xf32>
    %42 = arith.addf %37, %41 : vector<2x16xf32>
    %43 = arith.mulf %15, %15 : vector<2x16xf32>
    %44 = arith.mulf %43, %6 : vector<2x16xf32>
    %45 = arith.addf %42, %44 : vector<2x16xf32>
    %46 = arith.addf %45, %17 : vector<2x16xf32>
    %47 = arith.mulf %12, %14 : vector<2x16xf32>
    %48 = arith.mulf %47, %5 : vector<2x16xf32>
    %49 = arith.mulf %12, %15 : vector<2x16xf32>
    %50 = arith.mulf %13, %14 : vector<2x16xf32>
    %51 = arith.addf %49, %50 : vector<2x16xf32>
    %52 = arith.mulf %51, %7 : vector<2x16xf32>
    %53 = arith.addf %48, %52 : vector<2x16xf32>
    %54 = arith.mulf %13, %15 : vector<2x16xf32>
    %55 = arith.mulf %54, %6 : vector<2x16xf32>
    %56 = arith.addf %53, %55 : vector<2x16xf32>
    %57 = arith.addf %35, %11 : vector<2x16xf32>
    %cst_14 = arith.constant 9.99999996E-13 : f32
    %58 = vector.broadcast %cst_14 : f32 to vector<2x16xf32>
    %59 = arith.addf %57, %58 : vector<2x16xf32>
    %60 = tpu.reciprocal %59 {approx = true} : vector<2x16xf32> -> vector<2x16xf32>
    %61 = arith.mulf %35, %60 : vector<2x16xf32>
    %62 = arith.mulf %18, %61 : vector<2x16xf32>
    %63 = arith.mulf %56, %60 : vector<2x16xf32>
    %64 = arith.mulf %18, %63 : vector<2x16xf32>
    %65 = arith.subf %10, %21 : vector<2x16xf32>
    %66 = arith.mulf %62, %65 : vector<2x16xf32>
    %67 = arith.addf %21, %66 : vector<2x16xf32>
    %68 = arith.mulf %64, %65 : vector<2x16xf32>
    %69 = arith.addf %24, %68 : vector<2x16xf32>
    %cst_15 = arith.constant 1.000000e+00 : f32
    %70 = vector.broadcast %cst_15 : f32 to vector<2x16xf32>
    %71 = arith.subf %70, %62 : vector<2x16xf32>
    %72 = arith.mulf %71, %35 : vector<2x16xf32>
    %73 = arith.mulf %64, %56 : vector<2x16xf32>
    %74 = arith.subf %46, %73 : vector<2x16xf32>
    %cst_16 = arith.constant 1.000000e+00 : f32
    %75 = vector.broadcast %cst_16 : f32 to vector<2x16xf32>
    %76 = arith.subf %75, %62 : vector<2x16xf32>
    %77 = arith.mulf %76, %56 : vector<2x16xf32>
    %78 = tpu.concatenate %67, %69, %72, %74, %77, %21, %24, %35, %46, %56, %62, %64 in 1 : vector<2x16xf32>, vector<2x16xf32>, vector<2x16xf32>, vector<2x16xf32>, vector<2x16xf32>, vector<2x16xf32>, vector<2x16xf32>, vector<2x16xf32>, vector<2x16xf32>, vector<2x16xf32>, vector<2x16xf32>, vector<2x16xf32> -> vector<2x192xf32>
    %c0_17 = arith.constant 0 : index
    %c0_18 = arith.constant 0 : index
    %c0_19 = arith.constant 0 : index
    %79 = vector.load %arg4[%c0_17, %c0_18, %c0_19] : memref<2x8x192xf32, #tpu.memory_space<vmem>>, vector<2x1x192xf32>
    %80 = vector.shape_cast %79 : vector<2x1x192xf32> to vector<2x192xf32>
    %81 = vector.shape_cast %78 : vector<2x192xf32> to vector<2x1x192xf32>
    tpu.vector_store %arg4[%c0_17, %c0_18, %c0_19], %81 {strides = array<i32>} : memref<2x8x192xf32, #tpu.memory_space<vmem>>, vector<2x1x192xf32>,
    %c0_20 = arith.constant 0 : index
    %c1 = arith.constant 1 : index
    %c0_21 = arith.constant 0 : index
    %82 = vector.load %arg2[%c0_20, %c1, %c0_21] : memref<2x8x144xf32, #tpu.memory_space<vmem>>, vector<2x1x144xf32>
    %83 = vector.shape_cast %82 : vector<2x1x144xf32> to vector<2x144xf32>
    %84 = vector.extract_strided_slice %83 {offsets = [0, 0], sizes = [2, 16], strides = [1, 1]} : vector<2x144xf32> to vector<2x16xf32>
    %85 = vector.extract_strided_slice %83 {offsets = [0, 16], sizes = [2, 16], strides = [1, 1]} : vector<2x144xf32> to vector<2x16xf32>
    %86 = vector.extract_strided_slice %83 {offsets = [0, 32], sizes = [2, 16], strides = [1, 1]} : vector<2x144xf32> to vector<2x16xf32>
    %87 = vector.extract_strided_slice %83 {offsets = [0, 48], sizes = [2, 16], strides = [1, 1]} : vector<2x144xf32> to vector<2x16xf32>
    %88 = vector.extract_strided_slice %83 {offsets = [0, 64], sizes = [2, 16], strides = [1, 1]} : vector<2x144xf32> to vector<2x16xf32>
    %89 = vector.extract_strided_slice %83 {offsets = [0, 80], sizes = [2, 16], strides = [1, 1]} : vector<2x144xf32> to vector<2x16xf32>
    %90 = vector.extract_strided_slice %83 {offsets = [0, 96], sizes = [2, 16], strides = [1, 1]} : vector<2x144xf32> to vector<2x16xf32>
    %91 = vector.extract_strided_slice %83 {offsets = [0, 112], sizes = [2, 16], strides = [1, 1]} : vector<2x144xf32> to vector<2x16xf32>
    %92 = vector.extract_strided_slice %83 {offsets = [0, 128], sizes = [2, 16], strides = [1, 1]} : vector<2x144xf32> to vector<2x16xf32>
    %93 = arith.mulf %86, %67 : vector<2x16xf32>
    %94 = arith.mulf %87, %69 : vector<2x16xf32>
    %95 = arith.addf %93, %94 : vector<2x16xf32>
    %96 = arith.mulf %88, %67 : vector<2x16xf32>
    %97 = arith.mulf %89, %69 : vector<2x16xf32>
    %98 = arith.addf %96, %97 : vector<2x16xf32>
    %99 = arith.mulf %86, %86 : vector<2x16xf32>
    %100 = arith.mulf %99, %72 : vector<2x16xf32>
    %101 = arith.mulf %86, %87 : vector<2x16xf32>
    %cst_22 = arith.constant 2.000000e+00 : f32
    %102 = vector.broadcast %cst_22 : f32 to vector<2x16xf32>
    %103 = arith.mulf %102, %101 : vector<2x16xf32>
    %104 = arith.mulf %103, %77 : vector<2x16xf32>
    %105 = arith.addf %100, %104 : vector<2x16xf32>
    %106 = arith.mulf %87, %87 : vector<2x16xf32>
    %107 = arith.mulf %106, %74 : vector<2x16xf32>
    %108 = arith.addf %105, %107 : vector<2x16xf32>
    %109 = arith.addf %108, %90 : vector<2x16xf32>
    %110 = arith.mulf %88, %88 : vector<2x16xf32>
    %111 = arith.mulf %110, %72 : vector<2x16xf32>
    %112 = arith.mulf %88, %89 : vector<2x16xf32>
    %cst_23 = arith.constant 2.000000e+00 : f32
    %113 = vector.broadcast %cst_23 : f32 to vector<2x16xf32>
    %114 = arith.mulf %113, %112 : vector<2x16xf32>
    %115 = arith.mulf %114, %77 : vector<2x16xf32>
    %116 = arith.addf %111, %115 : vector<2x16xf32>
    %117 = arith.mulf %89, %89 : vector<2x16xf32>
    %118 = arith.mulf %117, %74 : vector<2x16xf32>
    %119 = arith.addf %116, %118 : vector<2x16xf32>
    %120 = arith.addf %119, %91 : vector<2x16xf32>
    %121 = arith.mulf %86, %88 : vector<2x16xf32>
    %122 = arith.mulf %121, %72 : vector<2x16xf32>
    %123 = arith.mulf %86, %89 : vector<2x16xf32>
    %124 = arith.mulf %87, %88 : vector<2x16xf32>
    %125 = arith.addf %123, %124 : vector<2x16xf32>
    %126 = arith.mulf %125, %77 : vector<2x16xf32>
    %127 = arith.addf %122, %126 : vector<2x16xf32>
    %128 = arith.mulf %87, %89 : vector<2x16xf32>
    %129 = arith.mulf %128, %74 : vector<2x16xf32>
    %130 = arith.addf %127, %129 : vector<2x16xf32>
    %131 = arith.addf %109, %85 : vector<2x16xf32>
    %cst_24 = arith.constant 9.99999996E-13 : f32
    %132 = vector.broadcast %cst_24 : f32 to vector<2x16xf32>
    %133 = arith.addf %131, %132 : vector<2x16xf32>
    %134 = tpu.reciprocal %133 {approx = true} : vector<2x16xf32> -> vector<2x16xf32>
    %135 = arith.mulf %109, %134 : vector<2x16xf32>
    %136 = arith.mulf %92, %135 : vector<2x16xf32>
    %137 = arith.mulf %130, %134 : vector<2x16xf32>
    %138 = arith.mulf %92, %137 : vector<2x16xf32>
    %139 = arith.subf %84, %95 : vector<2x16xf32>
    %140 = arith.mulf %136, %139 : vector<2x16xf32>
    %141 = arith.addf %95, %140 : vector<2x16xf32>
    %142 = arith.mulf %138, %139 : vector<2x16xf32>
    %143 = arith.addf %98, %142 : vector<2x16xf32>
    %cst_25 = arith.constant 1.000000e+00 : f32
    %144 = vector.broadcast %cst_25 : f32 to vector<2x16xf32>
    %145 = arith.subf %144, %136 : vector<2x16xf32>
    %146 = arith.mulf %145, %109 : vector<2x16xf32>
    %147 = arith.mulf %138, %130 : vector<2x16xf32>
    %148 = arith.subf %120, %147 : vector<2x16xf32>
    %cst_26 = arith.constant 1.000000e+00 : f32
    %149 = vector.broadcast %cst_26 : f32 to vector<2x16xf32>
    %150 = arith.subf %149, %136 : vector<2x16xf32>
    %151 = arith.mulf %150, %130 : vector<2x16xf32>
    %152 = tpu.concatenate %141, %143, %146, %148, %151, %95, %98, %109, %120, %130, %136, %138 in 1 : vector<2x16xf32>, vector<2x16xf32>, vector<2x16xf32>, vector<2x16xf32>, vector<2x16xf32>, vector<2x16xf32>, vector<2x16xf32>, vector<2x16xf32>, vector<2x16xf32>, vector<2x16xf32>, vector<2x16xf32>, vector<2x16xf32> -> vector<2x192xf32>
    %c0_27 = arith.constant 0 : index
    %c1_28 = arith.constant 1 : index
    %c0_29 = arith.constant 0 : index
    %153 = vector.load %arg4[%c0_27, %c1_28, %c0_29] : memref<2x8x192xf32, #tpu.memory_space<vmem>>, vector<2x1x192xf32>
    %154 = vector.shape_cast %153 : vector<2x1x192xf32> to vector<2x192xf32>
    %155 = vector.shape_cast %152 : vector<2x192xf32> to vector<2x1x192xf32>
    tpu.vector_store %arg4[%c0_27, %c1_28, %c0_29], %155 {strides = array<i32>} : memref<2x8x192xf32, #tpu.memory_space<vmem>>, vector<2x1x192xf32>,
    %c0_30 = arith.constant 0 : index
    %c2 = arith.constant 2 : index
    %c0_31 = arith.constant 0 : index
    %156 = vector.load %arg2[%c0_30, %c2, %c0_31] : memref<2x8x144xf32, #tpu.memory_space<vmem>>, vector<2x1x144xf32>
    %157 = vector.shape_cast %156 : vector<2x1x144xf32> to vector<2x144xf32>
    %158 = vector.extract_strided_slice %157 {offsets = [0, 0], sizes = [2, 16], strides = [1, 1]} : vector<2x144xf32> to vector<2x16xf32>
    %159 = vector.extract_strided_slice %157 {offsets = [0, 16], sizes = [2, 16], strides = [1, 1]} : vector<2x144xf32> to vector<2x16xf32>
    %160 = vector.extract_strided_slice %157 {offsets = [0, 32], sizes = [2, 16], strides = [1, 1]} : vector<2x144xf32> to vector<2x16xf32>
    %161 = vector.extract_strided_slice %157 {offsets = [0, 48], sizes = [2, 16], strides = [1, 1]} : vector<2x144xf32> to vector<2x16xf32>
    %162 = vector.extract_strided_slice %157 {offsets = [0, 64], sizes = [2, 16], strides = [1, 1]} : vector<2x144xf32> to vector<2x16xf32>
    %163 = vector.extract_strided_slice %157 {offsets = [0, 80], sizes = [2, 16], strides = [1, 1]} : vector<2x144xf32> to vector<2x16xf32>
    %164 = vector.extract_strided_slice %157 {offsets = [0, 96], sizes = [2, 16], strides = [1, 1]} : vector<2x144xf32> to vector<2x16xf32>
    %165 = vector.extract_strided_slice %157 {offsets = [0, 112], sizes = [2, 16], strides = [1, 1]} : vector<2x144xf32> to vector<2x16xf32>
    %166 = vector.extract_strided_slice %157 {offsets = [0, 128], sizes = [2, 16], strides = [1, 1]} : vector<2x144xf32> to vector<2x16xf32>
    %167 = arith.mulf %160, %141 : vector<2x16xf32>
    %168 = arith.mulf %161, %143 : vector<2x16xf32>
    %169 = arith.addf %167, %168 : vector<2x16xf32>
    %170 = arith.mulf %162, %141 : vector<2x16xf32>
    %171 = arith.mulf %163, %143 : vector<2x16xf32>
    %172 = arith.addf %170, %171 : vector<2x16xf32>
    %173 = arith.mulf %160, %160 : vector<2x16xf32>
    %174 = arith.mulf %173, %146 : vector<2x16xf32>
    %175 = arith.mulf %160, %161 : vector<2x16xf32>
    %cst_32 = arith.constant 2.000000e+00 : f32
    %176 = vector.broadcast %cst_32 : f32 to vector<2x16xf32>
    %177 = arith.mulf %176, %175 : vector<2x16xf32>
    %178 = arith.mulf %177, %151 : vector<2x16xf32>
    %179 = arith.addf %174, %178 : vector<2x16xf32>
    %180 = arith.mulf %161, %161 : vector<2x16xf32>
    %181 = arith.mulf %180, %148 : vector<2x16xf32>
    %182 = arith.addf %179, %181 : vector<2x16xf32>
    %183 = arith.addf %182, %164 : vector<2x16xf32>
    %184 = arith.mulf %162, %162 : vector<2x16xf32>
    %185 = arith.mulf %184, %146 : vector<2x16xf32>
    %186 = arith.mulf %162, %163 : vector<2x16xf32>
    %cst_33 = arith.constant 2.000000e+00 : f32
    %187 = vector.broadcast %cst_33 : f32 to vector<2x16xf32>
    %188 = arith.mulf %187, %186 : vector<2x16xf32>
    %189 = arith.mulf %188, %151 : vector<2x16xf32>
    %190 = arith.addf %185, %189 : vector<2x16xf32>
    %191 = arith.mulf %163, %163 : vector<2x16xf32>
    %192 = arith.mulf %191, %148 : vector<2x16xf32>
    %193 = arith.addf %190, %192 : vector<2x16xf32>
    %194 = arith.addf %193, %165 : vector<2x16xf32>
    %195 = arith.mulf %160, %162 : vector<2x16xf32>
    %196 = arith.mulf %195, %146 : vector<2x16xf32>
    %197 = arith.mulf %160, %163 : vector<2x16xf32>
    %198 = arith.mulf %161, %162 : vector<2x16xf32>
    %199 = arith.addf %197, %198 : vector<2x16xf32>
    %200 = arith.mulf %199, %151 : vector<2x16xf32>
    %201 = arith.addf %196, %200 : vector<2x16xf32>
    %202 = arith.mulf %161, %163 : vector<2x16xf32>
    %203 = arith.mulf %202, %148 : vector<2x16xf32>
    %204 = arith.addf %201, %203 : vector<2x16xf32>
    %205 = arith.addf %183, %159 : vector<2x16xf32>
    %cst_34 = arith.constant 9.99999996E-13 : f32
    %206 = vector.broadcast %cst_34 : f32 to vector<2x16xf32>
    %207 = arith.addf %205, %206 : vector<2x16xf32>
    %208 = tpu.reciprocal %207 {approx = true} : vector<2x16xf32> -> vector<2x16xf32>
    %209 = arith.mulf %183, %208 : vector<2x16xf32>
    %210 = arith.mulf %166, %209 : vector<2x16xf32>
    %211 = arith.mulf %204, %208 : vector<2x16xf32>
    %212 = arith.mulf %166, %211 : vector<2x16xf32>
    %213 = arith.subf %158, %169 : vector<2x16xf32>
    %214 = arith.mulf %210, %213 : vector<2x16xf32>
    %215 = arith.addf %169, %214 : vector<2x16xf32>
    %216 = arith.mulf %212, %213 : vector<2x16xf32>
    %217 = arith.addf %172, %216 : vector<2x16xf32>
    %cst_35 = arith.constant 1.000000e+00 : f32
    %218 = vector.broadcast %cst_35 : f32 to vector<2x16xf32>
    %219 = arith.subf %218, %210 : vector<2x16xf32>
    %220 = arith.mulf %219, %183 : vector<2x16xf32>
    %221 = arith.mulf %212, %204 : vector<2x16xf32>
    %222 = arith.subf %194, %221 : vector<2x16xf32>
    %cst_36 = arith.constant 1.000000e+00 : f32
    %223 = vector.broadcast %cst_36 : f32 to vector<2x16xf32>
    %224 = arith.subf %223, %210 : vector<2x16xf32>
    %225 = arith.mulf %224, %204 : vector<2x16xf32>
    %226 = tpu.concatenate %215, %217, %220, %222, %225, %169, %172, %183, %194, %204, %210, %212 in 1 : vector<2x16xf32>, vector<2x16xf32>, vector<2x16xf32>, vector<2x16xf32>, vector<2x16xf32>, vector<2x16xf32>, vector<2x16xf32>, vector<2x16xf32>, vector<2x16xf32>, vector<2x16xf32>, vector<2x16xf32>, vector<2x16xf32> -> vector<2x192xf32>
    %c0_37 = arith.constant 0 : index
    %c2_38 = arith.constant 2 : index
    %c0_39 = arith.constant 0 : index
    %227 = vector.load %arg4[%c0_37, %c2_38, %c0_39] : memref<2x8x192xf32, #tpu.memory_space<vmem>>, vector<2x1x192xf32>
    %228 = vector.shape_cast %227 : vector<2x1x192xf32> to vector<2x192xf32>
    %229 = vector.shape_cast %226 : vector<2x192xf32> to vector<2x1x192xf32>
    tpu.vector_store %arg4[%c0_37, %c2_38, %c0_39], %229 {strides = array<i32>} : memref<2x8x192xf32, #tpu.memory_space<vmem>>, vector<2x1x192xf32>,
    %c0_40 = arith.constant 0 : index
    %c3 = arith.constant 3 : index
    %c0_41 = arith.constant 0 : index
    %230 = vector.load %arg2[%c0_40, %c3, %c0_41] : memref<2x8x144xf32, #tpu.memory_space<vmem>>, vector<2x1x144xf32>
    %231 = vector.shape_cast %230 : vector<2x1x144xf32> to vector<2x144xf32>
    %232 = vector.extract_strided_slice %231 {offsets = [0, 0], sizes = [2, 16], strides = [1, 1]} : vector<2x144xf32> to vector<2x16xf32>
    %233 = vector.extract_strided_slice %231 {offsets = [0, 16], sizes = [2, 16], strides = [1, 1]} : vector<2x144xf32> to vector<2x16xf32>
    %234 = vector.extract_strided_slice %231 {offsets = [0, 32], sizes = [2, 16], strides = [1, 1]} : vector<2x144xf32> to vector<2x16xf32>
    %235 = vector.extract_strided_slice %231 {offsets = [0, 48], sizes = [2, 16], strides = [1, 1]} : vector<2x144xf32> to vector<2x16xf32>
    %236 = vector.extract_strided_slice %231 {offsets = [0, 64], sizes = [2, 16], strides = [1, 1]} : vector<2x144xf32> to vector<2x16xf32>
    %237 = vector.extract_strided_slice %231 {offsets = [0, 80], sizes = [2, 16], strides = [1, 1]} : vector<2x144xf32> to vector<2x16xf32>
    %238 = vector.extract_strided_slice %231 {offsets = [0, 96], sizes = [2, 16], strides = [1, 1]} : vector<2x144xf32> to vector<2x16xf32>
    %239 = vector.extract_strided_slice %231 {offsets = [0, 112], sizes = [2, 16], strides = [1, 1]} : vector<2x144xf32> to vector<2x16xf32>
    %240 = vector.extract_strided_slice %231 {offsets = [0, 128], sizes = [2, 16], strides = [1, 1]} : vector<2x144xf32> to vector<2x16xf32>
    %241 = arith.mulf %234, %215 : vector<2x16xf32>
    %242 = arith.mulf %235, %217 : vector<2x16xf32>
    %243 = arith.addf %241, %242 : vector<2x16xf32>
    %244 = arith.mulf %236, %215 : vector<2x16xf32>
    %245 = arith.mulf %237, %217 : vector<2x16xf32>
    %246 = arith.addf %244, %245 : vector<2x16xf32>
    %247 = arith.mulf %234, %234 : vector<2x16xf32>
    %248 = arith.mulf %247, %220 : vector<2x16xf32>
    %249 = arith.mulf %234, %235 : vector<2x16xf32>
    %cst_42 = arith.constant 2.000000e+00 : f32
    %250 = vector.broadcast %cst_42 : f32 to vector<2x16xf32>
    %251 = arith.mulf %250, %249 : vector<2x16xf32>
    %252 = arith.mulf %251, %225 : vector<2x16xf32>
    %253 = arith.addf %248, %252 : vector<2x16xf32>
    %254 = arith.mulf %235, %235 : vector<2x16xf32>
    %255 = arith.mulf %254, %222 : vector<2x16xf32>
    %256 = arith.addf %253, %255 : vector<2x16xf32>
    %257 = arith.addf %256, %238 : vector<2x16xf32>
    %258 = arith.mulf %236, %236 : vector<2x16xf32>
    %259 = arith.mulf %258, %220 : vector<2x16xf32>
    %260 = arith.mulf %236, %237 : vector<2x16xf32>
    %cst_43 = arith.constant 2.000000e+00 : f32
    %261 = vector.broadcast %cst_43 : f32 to vector<2x16xf32>
    %262 = arith.mulf %261, %260 : vector<2x16xf32>
    %263 = arith.mulf %262, %225 : vector<2x16xf32>
    %264 = arith.addf %259, %263 : vector<2x16xf32>
    %265 = arith.mulf %237, %237 : vector<2x16xf32>
    %266 = arith.mulf %265, %222 : vector<2x16xf32>
    %267 = arith.addf %264, %266 : vector<2x16xf32>
    %268 = arith.addf %267, %239 : vector<2x16xf32>
    %269 = arith.mulf %234, %236 : vector<2x16xf32>
    %270 = arith.mulf %269, %220 : vector<2x16xf32>
    %271 = arith.mulf %234, %237 : vector<2x16xf32>
    %272 = arith.mulf %235, %236 : vector<2x16xf32>
    %273 = arith.addf %271, %272 : vector<2x16xf32>
    %274 = arith.mulf %273, %225 : vector<2x16xf32>
    %275 = arith.addf %270, %274 : vector<2x16xf32>
    %276 = arith.mulf %235, %237 : vector<2x16xf32>
    %277 = arith.mulf %276, %222 : vector<2x16xf32>
    %278 = arith.addf %275, %277 : vector<2x16xf32>
    %279 = arith.addf %257, %233 : vector<2x16xf32>
    %cst_44 = arith.constant 9.99999996E-13 : f32
    %280 = vector.broadcast %cst_44 : f32 to vector<2x16xf32>
    %281 = arith.addf %279, %280 : vector<2x16xf32>
    %282 = tpu.reciprocal %281 {approx = true} : vector<2x16xf32> -> vector<2x16xf32>
    %283 = arith.mulf %257, %282 : vector<2x16xf32>
    %284 = arith.mulf %240, %283 : vector<2x16xf32>
    %285 = arith.mulf %278, %282 : vector<2x16xf32>
    %286 = arith.mulf %240, %285 : vector<2x16xf32>
    %287 = arith.subf %232, %243 : vector<2x16xf32>
    %288 = arith.mulf %284, %287 : vector<2x16xf32>
    %289 = arith.addf %243, %288 : vector<2x16xf32>
    %290 = arith.mulf %286, %287 : vector<2x16xf32>
    %291 = arith.addf %246, %290 : vector<2x16xf32>
    %cst_45 = arith.constant 1.000000e+00 : f32
    %292 = vector.broadcast %cst_45 : f32 to vector<2x16xf32>
    %293 = arith.subf %292, %284 : vector<2x16xf32>
    %294 = arith.mulf %293, %257 : vector<2x16xf32>
    %295 = arith.mulf %286, %278 : vector<2x16xf32>
    %296 = arith.subf %268, %295 : vector<2x16xf32>
    %cst_46 = arith.constant 1.000000e+00 : f32
    %297 = vector.broadcast %cst_46 : f32 to vector<2x16xf32>
    %298 = arith.subf %297, %284 : vector<2x16xf32>
    %299 = arith.mulf %298, %278 : vector<2x16xf32>
    %300 = tpu.concatenate %289, %291, %294, %296, %299, %243, %246, %257, %268, %278, %284, %286 in 1 : vector<2x16xf32>, vector<2x16xf32>, vector<2x16xf32>, vector<2x16xf32>, vector<2x16xf32>, vector<2x16xf32>, vector<2x16xf32>, vector<2x16xf32>, vector<2x16xf32>, vector<2x16xf32>, vector<2x16xf32>, vector<2x16xf32> -> vector<2x192xf32>
    %c0_47 = arith.constant 0 : index
    %c3_48 = arith.constant 3 : index
    %c0_49 = arith.constant 0 : index
    %301 = vector.load %arg4[%c0_47, %c3_48, %c0_49] : memref<2x8x192xf32, #tpu.memory_space<vmem>>, vector<2x1x192xf32>
    %302 = vector.shape_cast %301 : vector<2x1x192xf32> to vector<2x192xf32>
    %303 = vector.shape_cast %300 : vector<2x192xf32> to vector<2x1x192xf32>
    tpu.vector_store %arg4[%c0_47, %c3_48, %c0_49], %303 {strides = array<i32>} : memref<2x8x192xf32, #tpu.memory_space<vmem>>, vector<2x1x192xf32>,
    %c0_50 = arith.constant 0 : index
    %c4 = arith.constant 4 : index
    %c0_51 = arith.constant 0 : index
    %304 = vector.load %arg2[%c0_50, %c4, %c0_51] : memref<2x8x144xf32, #tpu.memory_space<vmem>>, vector<2x1x144xf32>
    %305 = vector.shape_cast %304 : vector<2x1x144xf32> to vector<2x144xf32>
    %306 = vector.extract_strided_slice %305 {offsets = [0, 0], sizes = [2, 16], strides = [1, 1]} : vector<2x144xf32> to vector<2x16xf32>
    %307 = vector.extract_strided_slice %305 {offsets = [0, 16], sizes = [2, 16], strides = [1, 1]} : vector<2x144xf32> to vector<2x16xf32>
    %308 = vector.extract_strided_slice %305 {offsets = [0, 32], sizes = [2, 16], strides = [1, 1]} : vector<2x144xf32> to vector<2x16xf32>
    %309 = vector.extract_strided_slice %305 {offsets = [0, 48], sizes = [2, 16], strides = [1, 1]} : vector<2x144xf32> to vector<2x16xf32>
    %310 = vector.extract_strided_slice %305 {offsets = [0, 64], sizes = [2, 16], strides = [1, 1]} : vector<2x144xf32> to vector<2x16xf32>
    %311 = vector.extract_strided_slice %305 {offsets = [0, 80], sizes = [2, 16], strides = [1, 1]} : vector<2x144xf32> to vector<2x16xf32>
    %312 = vector.extract_strided_slice %305 {offsets = [0, 96], sizes = [2, 16], strides = [1, 1]} : vector<2x144xf32> to vector<2x16xf32>
    %313 = vector.extract_strided_slice %305 {offsets = [0, 112], sizes = [2, 16], strides = [1, 1]} : vector<2x144xf32> to vector<2x16xf32>
    %314 = vector.extract_strided_slice %305 {offsets = [0, 128], sizes = [2, 16], strides = [1, 1]} : vector<2x144xf32> to vector<2x16xf32>
    %315 = arith.mulf %308, %289 : vector<2x16xf32>
    %316 = arith.mulf %309, %291 : vector<2x16xf32>
    %317 = arith.addf %315, %316 : vector<2x16xf32>
    %318 = arith.mulf %310, %289 : vector<2x16xf32>
    %319 = arith.mulf %311, %291 : vector<2x16xf32>
    %320 = arith.addf %318, %319 : vector<2x16xf32>
    %321 = arith.mulf %308, %308 : vector<2x16xf32>
    %322 = arith.mulf %321, %294 : vector<2x16xf32>
    %323 = arith.mulf %308, %309 : vector<2x16xf32>
    %cst_52 = arith.constant 2.000000e+00 : f32
    %324 = vector.broadcast %cst_52 : f32 to vector<2x16xf32>
    %325 = arith.mulf %324, %323 : vector<2x16xf32>
    %326 = arith.mulf %325, %299 : vector<2x16xf32>
    %327 = arith.addf %322, %326 : vector<2x16xf32>
    %328 = arith.mulf %309, %309 : vector<2x16xf32>
    %329 = arith.mulf %328, %296 : vector<2x16xf32>
    %330 = arith.addf %327, %329 : vector<2x16xf32>
    %331 = arith.addf %330, %312 : vector<2x16xf32>
    %332 = arith.mulf %310, %310 : vector<2x16xf32>
    %333 = arith.mulf %332, %294 : vector<2x16xf32>
    %334 = arith.mulf %310, %311 : vector<2x16xf32>
    %cst_53 = arith.constant 2.000000e+00 : f32
    %335 = vector.broadcast %cst_53 : f32 to vector<2x16xf32>
    %336 = arith.mulf %335, %334 : vector<2x16xf32>
    %337 = arith.mulf %336, %299 : vector<2x16xf32>
    %338 = arith.addf %333, %337 : vector<2x16xf32>
    %339 = arith.mulf %311, %311 : vector<2x16xf32>
    %340 = arith.mulf %339, %296 : vector<2x16xf32>
    %341 = arith.addf %338, %340 : vector<2x16xf32>
    %342 = arith.addf %341, %313 : vector<2x16xf32>
    %343 = arith.mulf %308, %310 : vector<2x16xf32>
    %344 = arith.mulf %343, %294 : vector<2x16xf32>
    %345 = arith.mulf %308, %311 : vector<2x16xf32>
    %346 = arith.mulf %309, %310 : vector<2x16xf32>
    %347 = arith.addf %345, %346 : vector<2x16xf32>
    %348 = arith.mulf %347, %299 : vector<2x16xf32>
    %349 = arith.addf %344, %348 : vector<2x16xf32>
    %350 = arith.mulf %309, %311 : vector<2x16xf32>
    %351 = arith.mulf %350, %296 : vector<2x16xf32>
    %352 = arith.addf %349, %351 : vector<2x16xf32>
    %353 = arith.addf %331, %307 : vector<2x16xf32>
    %cst_54 = arith.constant 9.99999996E-13 : f32
    %354 = vector.broadcast %cst_54 : f32 to vector<2x16xf32>
    %355 = arith.addf %353, %354 : vector<2x16xf32>
    %356 = tpu.reciprocal %355 {approx = true} : vector<2x16xf32> -> vector<2x16xf32>
    %357 = arith.mulf %331, %356 : vector<2x16xf32>
    %358 = arith.mulf %314, %357 : vector<2x16xf32>
    %359 = arith.mulf %352, %356 : vector<2x16xf32>
    %360 = arith.mulf %314, %359 : vector<2x16xf32>
    %361 = arith.subf %306, %317 : vector<2x16xf32>
    %362 = arith.mulf %358, %361 : vector<2x16xf32>
    %363 = arith.addf %317, %362 : vector<2x16xf32>
    %364 = arith.mulf %360, %361 : vector<2x16xf32>
    %365 = arith.addf %320, %364 : vector<2x16xf32>
    %cst_55 = arith.constant 1.000000e+00 : f32
    %366 = vector.broadcast %cst_55 : f32 to vector<2x16xf32>
    %367 = arith.subf %366, %358 : vector<2x16xf32>
    %368 = arith.mulf %367, %331 : vector<2x16xf32>
    %369 = arith.mulf %360, %352 : vector<2x16xf32>
    %370 = arith.subf %342, %369 : vector<2x16xf32>
    %cst_56 = arith.constant 1.000000e+00 : f32
    %371 = vector.broadcast %cst_56 : f32 to vector<2x16xf32>
    %372 = arith.subf %371, %358 : vector<2x16xf32>
    %373 = arith.mulf %372, %352 : vector<2x16xf32>
    %374 = tpu.concatenate %363, %365, %368, %370, %373, %317, %320, %331, %342, %352, %358, %360 in 1 : vector<2x16xf32>, vector<2x16xf32>, vector<2x16xf32>, vector<2x16xf32>, vector<2x16xf32>, vector<2x16xf32>, vector<2x16xf32>, vector<2x16xf32>, vector<2x16xf32>, vector<2x16xf32>, vector<2x16xf32>, vector<2x16xf32> -> vector<2x192xf32>
    %c0_57 = arith.constant 0 : index
    %c4_58 = arith.constant 4 : index
    %c0_59 = arith.constant 0 : index
    %375 = vector.load %arg4[%c0_57, %c4_58, %c0_59] : memref<2x8x192xf32, #tpu.memory_space<vmem>>, vector<2x1x192xf32>
    %376 = vector.shape_cast %375 : vector<2x1x192xf32> to vector<2x192xf32>
    %377 = vector.shape_cast %374 : vector<2x192xf32> to vector<2x1x192xf32>
    tpu.vector_store %arg4[%c0_57, %c4_58, %c0_59], %377 {strides = array<i32>} : memref<2x8x192xf32, #tpu.memory_space<vmem>>, vector<2x1x192xf32>,
    %c0_60 = arith.constant 0 : index
    %c5 = arith.constant 5 : index
    %c0_61 = arith.constant 0 : index
    %378 = vector.load %arg2[%c0_60, %c5, %c0_61] : memref<2x8x144xf32, #tpu.memory_space<vmem>>, vector<2x1x144xf32>
    %379 = vector.shape_cast %378 : vector<2x1x144xf32> to vector<2x144xf32>
    %380 = vector.extract_strided_slice %379 {offsets = [0, 0], sizes = [2, 16], strides = [1, 1]} : vector<2x144xf32> to vector<2x16xf32>
    %381 = vector.extract_strided_slice %379 {offsets = [0, 16], sizes = [2, 16], strides = [1, 1]} : vector<2x144xf32> to vector<2x16xf32>
    %382 = vector.extract_strided_slice %379 {offsets = [0, 32], sizes = [2, 16], strides = [1, 1]} : vector<2x144xf32> to vector<2x16xf32>
    %383 = vector.extract_strided_slice %379 {offsets = [0, 48], sizes = [2, 16], strides = [1, 1]} : vector<2x144xf32> to vector<2x16xf32>
    %384 = vector.extract_strided_slice %379 {offsets = [0, 64], sizes = [2, 16], strides = [1, 1]} : vector<2x144xf32> to vector<2x16xf32>
    %385 = vector.extract_strided_slice %379 {offsets = [0, 80], sizes = [2, 16], strides = [1, 1]} : vector<2x144xf32> to vector<2x16xf32>
    %386 = vector.extract_strided_slice %379 {offsets = [0, 96], sizes = [2, 16], strides = [1, 1]} : vector<2x144xf32> to vector<2x16xf32>
    %387 = vector.extract_strided_slice %379 {offsets = [0, 112], sizes = [2, 16], strides = [1, 1]} : vector<2x144xf32> to vector<2x16xf32>
    %388 = vector.extract_strided_slice %379 {offsets = [0, 128], sizes = [2, 16], strides = [1, 1]} : vector<2x144xf32> to vector<2x16xf32>
    %389 = arith.mulf %382, %363 : vector<2x16xf32>
    %390 = arith.mulf %383, %365 : vector<2x16xf32>
    %391 = arith.addf %389, %390 : vector<2x16xf32>
    %392 = arith.mulf %384, %363 : vector<2x16xf32>
    %393 = arith.mulf %385, %365 : vector<2x16xf32>
    %394 = arith.addf %392, %393 : vector<2x16xf32>
    %395 = arith.mulf %382, %382 : vector<2x16xf32>
    %396 = arith.mulf %395, %368 : vector<2x16xf32>
    %397 = arith.mulf %382, %383 : vector<2x16xf32>
    %cst_62 = arith.constant 2.000000e+00 : f32
    %398 = vector.broadcast %cst_62 : f32 to vector<2x16xf32>
    %399 = arith.mulf %398, %397 : vector<2x16xf32>
    %400 = arith.mulf %399, %373 : vector<2x16xf32>
    %401 = arith.addf %396, %400 : vector<2x16xf32>
    %402 = arith.mulf %383, %383 : vector<2x16xf32>
    %403 = arith.mulf %402, %370 : vector<2x16xf32>
    %404 = arith.addf %401, %403 : vector<2x16xf32>
    %405 = arith.addf %404, %386 : vector<2x16xf32>
    %406 = arith.mulf %384, %384 : vector<2x16xf32>
    %407 = arith.mulf %406, %368 : vector<2x16xf32>
    %408 = arith.mulf %384, %385 : vector<2x16xf32>
    %cst_63 = arith.constant 2.000000e+00 : f32
    %409 = vector.broadcast %cst_63 : f32 to vector<2x16xf32>
    %410 = arith.mulf %409, %408 : vector<2x16xf32>
    %411 = arith.mulf %410, %373 : vector<2x16xf32>
    %412 = arith.addf %407, %411 : vector<2x16xf32>
    %413 = arith.mulf %385, %385 : vector<2x16xf32>
    %414 = arith.mulf %413, %370 : vector<2x16xf32>
    %415 = arith.addf %412, %414 : vector<2x16xf32>
    %416 = arith.addf %415, %387 : vector<2x16xf32>
    %417 = arith.mulf %382, %384 : vector<2x16xf32>
    %418 = arith.mulf %417, %368 : vector<2x16xf32>
    %419 = arith.mulf %382, %385 : vector<2x16xf32>
    %420 = arith.mulf %383, %384 : vector<2x16xf32>
    %421 = arith.addf %419, %420 : vector<2x16xf32>
    %422 = arith.mulf %421, %373 : vector<2x16xf32>
    %423 = arith.addf %418, %422 : vector<2x16xf32>
    %424 = arith.mulf %383, %385 : vector<2x16xf32>
    %425 = arith.mulf %424, %370 : vector<2x16xf32>
    %426 = arith.addf %423, %425 : vector<2x16xf32>
    %427 = arith.addf %405, %381 : vector<2x16xf32>
    %cst_64 = arith.constant 9.99999996E-13 : f32
    %428 = vector.broadcast %cst_64 : f32 to vector<2x16xf32>
    %429 = arith.addf %427, %428 : vector<2x16xf32>
    %430 = tpu.reciprocal %429 {approx = true} : vector<2x16xf32> -> vector<2x16xf32>
    %431 = arith.mulf %405, %430 : vector<2x16xf32>
    %432 = arith.mulf %388, %431 : vector<2x16xf32>
    %433 = arith.mulf %426, %430 : vector<2x16xf32>
    %434 = arith.mulf %388, %433 : vector<2x16xf32>
    %435 = arith.subf %380, %391 : vector<2x16xf32>
    %436 = arith.mulf %432, %435 : vector<2x16xf32>
    %437 = arith.addf %391, %436 : vector<2x16xf32>
    %438 = arith.mulf %434, %435 : vector<2x16xf32>
    %439 = arith.addf %394, %438 : vector<2x16xf32>
    %cst_65 = arith.constant 1.000000e+00 : f32
    %440 = vector.broadcast %cst_65 : f32 to vector<2x16xf32>
    %441 = arith.subf %440, %432 : vector<2x16xf32>
    %442 = arith.mulf %441, %405 : vector<2x16xf32>
    %443 = arith.mulf %434, %426 : vector<2x16xf32>
    %444 = arith.subf %416, %443 : vector<2x16xf32>
    %cst_66 = arith.constant 1.000000e+00 : f32
    %445 = vector.broadcast %cst_66 : f32 to vector<2x16xf32>
    %446 = arith.subf %445, %432 : vector<2x16xf32>
    %447 = arith.mulf %446, %426 : vector<2x16xf32>
    %448 = tpu.concatenate %437, %439, %442, %444, %447, %391, %394, %405, %416, %426, %432, %434 in 1 : vector<2x16xf32>, vector<2x16xf32>, vector<2x16xf32>, vector<2x16xf32>, vector<2x16xf32>, vector<2x16xf32>, vector<2x16xf32>, vector<2x16xf32>, vector<2x16xf32>, vector<2x16xf32>, vector<2x16xf32>, vector<2x16xf32> -> vector<2x192xf32>
    %c0_67 = arith.constant 0 : index
    %c5_68 = arith.constant 5 : index
    %c0_69 = arith.constant 0 : index
    %449 = vector.load %arg4[%c0_67, %c5_68, %c0_69] : memref<2x8x192xf32, #tpu.memory_space<vmem>>, vector<2x1x192xf32>
    %450 = vector.shape_cast %449 : vector<2x1x192xf32> to vector<2x192xf32>
    %451 = vector.shape_cast %448 : vector<2x192xf32> to vector<2x1x192xf32>
    tpu.vector_store %arg4[%c0_67, %c5_68, %c0_69], %451 {strides = array<i32>} : memref<2x8x192xf32, #tpu.memory_space<vmem>>, vector<2x1x192xf32>,
    %c0_70 = arith.constant 0 : index
    %c6 = arith.constant 6 : index
    %c0_71 = arith.constant 0 : index
    %452 = vector.load %arg2[%c0_70, %c6, %c0_71] : memref<2x8x144xf32, #tpu.memory_space<vmem>>, vector<2x1x144xf32>
    %453 = vector.shape_cast %452 : vector<2x1x144xf32> to vector<2x144xf32>
    %454 = vector.extract_strided_slice %453 {offsets = [0, 0], sizes = [2, 16], strides = [1, 1]} : vector<2x144xf32> to vector<2x16xf32>
    %455 = vector.extract_strided_slice %453 {offsets = [0, 16], sizes = [2, 16], strides = [1, 1]} : vector<2x144xf32> to vector<2x16xf32>
    %456 = vector.extract_strided_slice %453 {offsets = [0, 32], sizes = [2, 16], strides = [1, 1]} : vector<2x144xf32> to vector<2x16xf32>
    %457 = vector.extract_strided_slice %453 {offsets = [0, 48], sizes = [2, 16], strides = [1, 1]} : vector<2x144xf32> to vector<2x16xf32>
    %458 = vector.extract_strided_slice %453 {offsets = [0, 64], sizes = [2, 16], strides = [1, 1]} : vector<2x144xf32> to vector<2x16xf32>
    %459 = vector.extract_strided_slice %453 {offsets = [0, 80], sizes = [2, 16], strides = [1, 1]} : vector<2x144xf32> to vector<2x16xf32>
    %460 = vector.extract_strided_slice %453 {offsets = [0, 96], sizes = [2, 16], strides = [1, 1]} : vector<2x144xf32> to vector<2x16xf32>
    %461 = vector.extract_strided_slice %453 {offsets = [0, 112], sizes = [2, 16], strides = [1, 1]} : vector<2x144xf32> to vector<2x16xf32>
    %462 = vector.extract_strided_slice %453 {offsets = [0, 128], sizes = [2, 16], strides = [1, 1]} : vector<2x144xf32> to vector<2x16xf32>
    %463 = arith.mulf %456, %437 : vector<2x16xf32>
    %464 = arith.mulf %457, %439 : vector<2x16xf32>
    %465 = arith.addf %463, %464 : vector<2x16xf32>
    %466 = arith.mulf %458, %437 : vector<2x16xf32>
    %467 = arith.mulf %459, %439 : vector<2x16xf32>
    %468 = arith.addf %466, %467 : vector<2x16xf32>
    %469 = arith.mulf %456, %456 : vector<2x16xf32>
    %470 = arith.mulf %469, %442 : vector<2x16xf32>
    %471 = arith.mulf %456, %457 : vector<2x16xf32>
    %cst_72 = arith.constant 2.000000e+00 : f32
    %472 = vector.broadcast %cst_72 : f32 to vector<2x16xf32>
    %473 = arith.mulf %472, %471 : vector<2x16xf32>
    %474 = arith.mulf %473, %447 : vector<2x16xf32>
    %475 = arith.addf %470, %474 : vector<2x16xf32>
    %476 = arith.mulf %457, %457 : vector<2x16xf32>
    %477 = arith.mulf %476, %444 : vector<2x16xf32>
    %478 = arith.addf %475, %477 : vector<2x16xf32>
    %479 = arith.addf %478, %460 : vector<2x16xf32>
    %480 = arith.mulf %458, %458 : vector<2x16xf32>
    %481 = arith.mulf %480, %442 : vector<2x16xf32>
    %482 = arith.mulf %458, %459 : vector<2x16xf32>
    %cst_73 = arith.constant 2.000000e+00 : f32
    %483 = vector.broadcast %cst_73 : f32 to vector<2x16xf32>
    %484 = arith.mulf %483, %482 : vector<2x16xf32>
    %485 = arith.mulf %484, %447 : vector<2x16xf32>
    %486 = arith.addf %481, %485 : vector<2x16xf32>
    %487 = arith.mulf %459, %459 : vector<2x16xf32>
    %488 = arith.mulf %487, %444 : vector<2x16xf32>
    %489 = arith.addf %486, %488 : vector<2x16xf32>
    %490 = arith.addf %489, %461 : vector<2x16xf32>
    %491 = arith.mulf %456, %458 : vector<2x16xf32>
    %492 = arith.mulf %491, %442 : vector<2x16xf32>
    %493 = arith.mulf %456, %459 : vector<2x16xf32>
    %494 = arith.mulf %457, %458 : vector<2x16xf32>
    %495 = arith.addf %493, %494 : vector<2x16xf32>
    %496 = arith.mulf %495, %447 : vector<2x16xf32>
    %497 = arith.addf %492, %496 : vector<2x16xf32>
    %498 = arith.mulf %457, %459 : vector<2x16xf32>
    %499 = arith.mulf %498, %444 : vector<2x16xf32>
    %500 = arith.addf %497, %499 : vector<2x16xf32>
    %501 = arith.addf %479, %455 : vector<2x16xf32>
    %cst_74 = arith.constant 9.99999996E-13 : f32
    %502 = vector.broadcast %cst_74 : f32 to vector<2x16xf32>
    %503 = arith.addf %501, %502 : vector<2x16xf32>
    %504 = tpu.reciprocal %503 {approx = true} : vector<2x16xf32> -> vector<2x16xf32>
    %505 = arith.mulf %479, %504 : vector<2x16xf32>
    %506 = arith.mulf %462, %505 : vector<2x16xf32>
    %507 = arith.mulf %500, %504 : vector<2x16xf32>
    %508 = arith.mulf %462, %507 : vector<2x16xf32>
    %509 = arith.subf %454, %465 : vector<2x16xf32>
    %510 = arith.mulf %506, %509 : vector<2x16xf32>
    %511 = arith.addf %465, %510 : vector<2x16xf32>
    %512 = arith.mulf %508, %509 : vector<2x16xf32>
    %513 = arith.addf %468, %512 : vector<2x16xf32>
    %cst_75 = arith.constant 1.000000e+00 : f32
    %514 = vector.broadcast %cst_75 : f32 to vector<2x16xf32>
    %515 = arith.subf %514, %506 : vector<2x16xf32>
    %516 = arith.mulf %515, %479 : vector<2x16xf32>
    %517 = arith.mulf %508, %500 : vector<2x16xf32>
    %518 = arith.subf %490, %517 : vector<2x16xf32>
    %cst_76 = arith.constant 1.000000e+00 : f32
    %519 = vector.broadcast %cst_76 : f32 to vector<2x16xf32>
    %520 = arith.subf %519, %506 : vector<2x16xf32>
    %521 = arith.mulf %520, %500 : vector<2x16xf32>
    %522 = tpu.concatenate %511, %513, %516, %518, %521, %465, %468, %479, %490, %500, %506, %508 in 1 : vector<2x16xf32>, vector<2x16xf32>, vector<2x16xf32>, vector<2x16xf32>, vector<2x16xf32>, vector<2x16xf32>, vector<2x16xf32>, vector<2x16xf32>, vector<2x16xf32>, vector<2x16xf32>, vector<2x16xf32>, vector<2x16xf32> -> vector<2x192xf32>
    %c0_77 = arith.constant 0 : index
    %c6_78 = arith.constant 6 : index
    %c0_79 = arith.constant 0 : index
    %523 = vector.load %arg4[%c0_77, %c6_78, %c0_79] : memref<2x8x192xf32, #tpu.memory_space<vmem>>, vector<2x1x192xf32>
    %524 = vector.shape_cast %523 : vector<2x1x192xf32> to vector<2x192xf32>
    %525 = vector.shape_cast %522 : vector<2x192xf32> to vector<2x1x192xf32>
    tpu.vector_store %arg4[%c0_77, %c6_78, %c0_79], %525 {strides = array<i32>} : memref<2x8x192xf32, #tpu.memory_space<vmem>>, vector<2x1x192xf32>,
    %c0_80 = arith.constant 0 : index
    %c7 = arith.constant 7 : index
    %c0_81 = arith.constant 0 : index
    %526 = vector.load %arg2[%c0_80, %c7, %c0_81] : memref<2x8x144xf32, #tpu.memory_space<vmem>>, vector<2x1x144xf32>
    %527 = vector.shape_cast %526 : vector<2x1x144xf32> to vector<2x144xf32>
    %528 = vector.extract_strided_slice %527 {offsets = [0, 0], sizes = [2, 16], strides = [1, 1]} : vector<2x144xf32> to vector<2x16xf32>
    %529 = vector.extract_strided_slice %527 {offsets = [0, 16], sizes = [2, 16], strides = [1, 1]} : vector<2x144xf32> to vector<2x16xf32>
    %530 = vector.extract_strided_slice %527 {offsets = [0, 32], sizes = [2, 16], strides = [1, 1]} : vector<2x144xf32> to vector<2x16xf32>
    %531 = vector.extract_strided_slice %527 {offsets = [0, 48], sizes = [2, 16], strides = [1, 1]} : vector<2x144xf32> to vector<2x16xf32>
    %532 = vector.extract_strided_slice %527 {offsets = [0, 64], sizes = [2, 16], strides = [1, 1]} : vector<2x144xf32> to vector<2x16xf32>
    %533 = vector.extract_strided_slice %527 {offsets = [0, 80], sizes = [2, 16], strides = [1, 1]} : vector<2x144xf32> to vector<2x16xf32>
    %534 = vector.extract_strided_slice %527 {offsets = [0, 96], sizes = [2, 16], strides = [1, 1]} : vector<2x144xf32> to vector<2x16xf32>
    %535 = vector.extract_strided_slice %527 {offsets = [0, 112], sizes = [2, 16], strides = [1, 1]} : vector<2x144xf32> to vector<2x16xf32>
    %536 = vector.extract_strided_slice %527 {offsets = [0, 128], sizes = [2, 16], strides = [1, 1]} : vector<2x144xf32> to vector<2x16xf32>
    %537 = arith.mulf %530, %511 : vector<2x16xf32>
    %538 = arith.mulf %531, %513 : vector<2x16xf32>
    %539 = arith.addf %537, %538 : vector<2x16xf32>
    %540 = arith.mulf %532, %511 : vector<2x16xf32>
    %541 = arith.mulf %533, %513 : vector<2x16xf32>
    %542 = arith.addf %540, %541 : vector<2x16xf32>
    %543 = arith.mulf %530, %530 : vector<2x16xf32>
    %544 = arith.mulf %543, %516 : vector<2x16xf32>
    %545 = arith.mulf %530, %531 : vector<2x16xf32>
    %cst_82 = arith.constant 2.000000e+00 : f32
    %546 = vector.broadcast %cst_82 : f32 to vector<2x16xf32>
    %547 = arith.mulf %546, %545 : vector<2x16xf32>
    %548 = arith.mulf %547, %521 : vector<2x16xf32>
    %549 = arith.addf %544, %548 : vector<2x16xf32>
    %550 = arith.mulf %531, %531 : vector<2x16xf32>
    %551 = arith.mulf %550, %518 : vector<2x16xf32>
    %552 = arith.addf %549, %551 : vector<2x16xf32>
    %553 = arith.addf %552, %534 : vector<2x16xf32>
    %554 = arith.mulf %532, %532 : vector<2x16xf32>
    %555 = arith.mulf %554, %516 : vector<2x16xf32>
    %556 = arith.mulf %532, %533 : vector<2x16xf32>
    %cst_83 = arith.constant 2.000000e+00 : f32
    %557 = vector.broadcast %cst_83 : f32 to vector<2x16xf32>
    %558 = arith.mulf %557, %556 : vector<2x16xf32>
    %559 = arith.mulf %558, %521 : vector<2x16xf32>
    %560 = arith.addf %555, %559 : vector<2x16xf32>
    %561 = arith.mulf %533, %533 : vector<2x16xf32>
    %562 = arith.mulf %561, %518 : vector<2x16xf32>
    %563 = arith.addf %560, %562 : vector<2x16xf32>
    %564 = arith.addf %563, %535 : vector<2x16xf32>
    %565 = arith.mulf %530, %532 : vector<2x16xf32>
    %566 = arith.mulf %565, %516 : vector<2x16xf32>
    %567 = arith.mulf %530, %533 : vector<2x16xf32>
    %568 = arith.mulf %531, %532 : vector<2x16xf32>
    %569 = arith.addf %567, %568 : vector<2x16xf32>
    %570 = arith.mulf %569, %521 : vector<2x16xf32>
    %571 = arith.addf %566, %570 : vector<2x16xf32>
    %572 = arith.mulf %531, %533 : vector<2x16xf32>
    %573 = arith.mulf %572, %518 : vector<2x16xf32>
    %574 = arith.addf %571, %573 : vector<2x16xf32>
    %575 = arith.addf %553, %529 : vector<2x16xf32>
    %cst_84 = arith.constant 9.99999996E-13 : f32
    %576 = vector.broadcast %cst_84 : f32 to vector<2x16xf32>
    %577 = arith.addf %575, %576 : vector<2x16xf32>
    %578 = tpu.reciprocal %577 {approx = true} : vector<2x16xf32> -> vector<2x16xf32>
    %579 = arith.mulf %553, %578 : vector<2x16xf32>
    %580 = arith.mulf %536, %579 : vector<2x16xf32>
    %581 = arith.mulf %574, %578 : vector<2x16xf32>
    %582 = arith.mulf %536, %581 : vector<2x16xf32>
    %583 = arith.subf %528, %539 : vector<2x16xf32>
    %584 = arith.mulf %580, %583 : vector<2x16xf32>
    %585 = arith.addf %539, %584 : vector<2x16xf32>
    %586 = arith.mulf %582, %583 : vector<2x16xf32>
    %587 = arith.addf %542, %586 : vector<2x16xf32>
    %cst_85 = arith.constant 1.000000e+00 : f32
    %588 = vector.broadcast %cst_85 : f32 to vector<2x16xf32>
    %589 = arith.subf %588, %580 : vector<2x16xf32>
    %590 = arith.mulf %589, %553 : vector<2x16xf32>
    %591 = arith.mulf %582, %574 : vector<2x16xf32>
    %592 = arith.subf %564, %591 : vector<2x16xf32>
    %cst_86 = arith.constant 1.000000e+00 : f32
    %593 = vector.broadcast %cst_86 : f32 to vector<2x16xf32>
    %594 = arith.subf %593, %580 : vector<2x16xf32>
    %595 = arith.mulf %594, %574 : vector<2x16xf32>
    %596 = tpu.concatenate %585, %587, %590, %592, %595, %539, %542, %553, %564, %574, %580, %582 in 1 : vector<2x16xf32>, vector<2x16xf32>, vector<2x16xf32>, vector<2x16xf32>, vector<2x16xf32>, vector<2x16xf32>, vector<2x16xf32>, vector<2x16xf32>, vector<2x16xf32>, vector<2x16xf32>, vector<2x16xf32>, vector<2x16xf32> -> vector<2x192xf32>
    %c0_87 = arith.constant 0 : index
    %c7_88 = arith.constant 7 : index
    %c0_89 = arith.constant 0 : index
    %597 = vector.load %arg4[%c0_87, %c7_88, %c0_89] : memref<2x8x192xf32, #tpu.memory_space<vmem>>, vector<2x1x192xf32>
    %598 = vector.shape_cast %597 : vector<2x1x192xf32> to vector<2x192xf32>
    %599 = vector.shape_cast %596 : vector<2x192xf32> to vector<2x1x192xf32>
    tpu.vector_store %arg4[%c0_87, %c7_88, %c0_89], %599 {strides = array<i32>} : memref<2x8x192xf32, #tpu.memory_space<vmem>>, vector<2x1x192xf32>,
    %c0_90 = arith.constant 0 : index
    %c0_91 = arith.constant 0 : index
    %600 = vector.load %arg5[%c0_90, %c0_91] : memref<2x16xf32, #tpu.memory_space<vmem>>, vector<2x16xf32>
    tpu.vector_store %arg5[%c0_90, %c0_91], %585 {strides = array<i32>} : memref<2x16xf32, #tpu.memory_space<vmem>>, vector<2x16xf32>,
    %c0_92 = arith.constant 0 : index
    %c0_93 = arith.constant 0 : index
    %601 = vector.load %arg6[%c0_92, %c0_93] : memref<2x16xf32, #tpu.memory_space<vmem>>, vector<2x16xf32>
    tpu.vector_store %arg6[%c0_92, %c0_93], %587 {strides = array<i32>} : memref<2x16xf32, #tpu.memory_space<vmem>>, vector<2x16xf32>,
    %c0_94 = arith.constant 0 : index
    %c0_95 = arith.constant 0 : index
    %602 = vector.load %arg7[%c0_94, %c0_95] : memref<2x16xf32, #tpu.memory_space<vmem>>, vector<2x16xf32>
    tpu.vector_store %arg7[%c0_94, %c0_95], %590 {strides = array<i32>} : memref<2x16xf32, #tpu.memory_space<vmem>>, vector<2x16xf32>,
    %c0_96 = arith.constant 0 : index
    %c0_97 = arith.constant 0 : index
    %603 = vector.load %arg8[%c0_96, %c0_97] : memref<2x16xf32, #tpu.memory_space<vmem>>, vector<2x16xf32>
    tpu.vector_store %arg8[%c0_96, %c0_97], %592 {strides = array<i32>} : memref<2x16xf32, #tpu.memory_space<vmem>>, vector<2x16xf32>,
    %c0_98 = arith.constant 0 : index
    %c0_99 = arith.constant 0 : index
    %604 = vector.load %arg9[%c0_98, %c0_99] : memref<2x16xf32, #tpu.memory_space<vmem>>, vector<2x16xf32>
    tpu.vector_store %arg9[%c0_98, %c0_99], %595 {strides = array<i32>} : memref<2x16xf32, #tpu.memory_space<vmem>>, vector<2x16xf32>,
    return
  }
  func.func @transform_0(%arg0: i32, %arg1: i32) -> (i32, i32, i32) {
    %c0_i32 = arith.constant 0 : i32
    %c0_i32_0 = arith.constant 0 : i32
    return %arg0, %arg1, %c0_i32 : i32, i32, i32
  }
  func.func @transform_1(%arg0: i32, %arg1: i32) -> (i32, i32) {
    %c0_i32 = arith.constant 0 : i32
    %c0_i32_0 = arith.constant 0 : i32
    %c0_i32_1 = arith.constant 0 : i32
    return %c0_i32, %c0_i32_0 : i32, i32
  }
  func.func @transform_2(%arg0: i32, %arg1: i32) -> (i32, i32, i32) {
    %c0_i32 = arith.constant 0 : i32
    %c0_i32_0 = arith.constant 0 : i32
    return %arg0, %arg1, %c0_i32 : i32, i32, i32
  }
}

</mosaic_0001>

<bundles_post_ra>
// kernel: cru_forward.3
= control target key start
LH: loop header
LB: loop body
LE: loop exit
PB: predicated region body
PF: predicated region fallthrough
CT: control target
= control target key end

     0   :  { %v235_v0 = vmov 0.0   ;;  %vm236_vm0 = vmmov 0   ;;  %vm43_vm1 = vcmask 130048   ;;  %vm92_vm2 = vcmask 261120   ;;  %s296_s1 = inlined_call_operand.vmem [shape: bf16[16,32], index: 1, kind: input, shape index: {}]   ;;  %s297_s0 = inlined_call_operand.vmem [shape: bf16[16,16], index: 0, kind: input, shape index: {}]   ;;  %s298_s2 = inlined_call_operand.vmem [shape: f32[1,32], index: 2, kind: input, shape index: {}]   ;;  %s299_s3 = inlined_call_operand.vmem [shape: bf16[32,32], index: 3, kind: input, shape index: {}]   ;;  %s300_s4 = inlined_call_operand.vmem [shape: f32[1,32], index: 4, kind: input, shape index: {}]   ;;  %s301_s5 = inlined_call_operand.vmem [shape: f32[16,32], index: 5, kind: output, shape index: {}]  }
   0x1   :  { %207 = vmatprep.subr.bf16.mxu0 %v235_v0  ;;  %v223_v1 = vld [vmem:[%s296_s1] sm:$0xff]   ;;  %209 = vmatprep.mubr.msk.bf16.mxu0 %vm236_vm0, %v235_v0  ;;  %v226_v17 = vld [vmem:[%s299_s3 + $0x8] sm:$0xff]   ;;  %v173_v36 = vlaneseq }
   0x2   :  { %v224_v2 = vld [vmem:[%s297_s0] sm:$0xff]   ;;  %213 = vmatprep.subr.bf16.mxu1 %v235_v0  ;;  %217 = vmatprep.mubr.msk.bf16.mxu1 %vm236_vm0, %v235_v0 }
   0x3   :  { %208 = vmatpush3.bf16.msra.mxu0 %v223_v1  ;;  %v194_v3 = vld [vmem:[%s298_s2] ss:$0 sm:$0xff]  ;;  %v174_v37 = vand.u32 127, %v173_v36 }
   0x4   :  { %v225_v16 = vld [vmem:[%s299_s3] sm:$0xff]  }
   0x5   :  { %214 = vmatpush3.bf16.msra.mxu1 %v225_v16  ;;  %v198_v27 = vld [vmem:[%s300_s4] ss:$0 sm:$0xff]  ;;  %vm175_vm3 = vcmp.lt.s32.totalorder %v174_v37, 16 }
   0x6   :  { %210 = vmatmul.mubr.msk.bf16.vlgmr.msra.gmra.mrb[0].mxu0 %vm43_vm1, %v224_v2  ;;  %215 = vmatprep.subr.bf16.mxu1 %v235_v0 }
   0x9   :  { %216 = vmatpush3.bf16.msra.mxu1 %v226_v17 }
  0xd9   :  { %v81_v4 = vpop.f32.mrb[0].mxu0 }
  0xda   :  { %v82_v5 = vadd.f32 %v194_v3, %v81_v4  ;;  %v211_v6 = vpop.f32.mrb[1].mxu0 }
  0xdb   :  { %v84_v7 = vpop.f32.mrb[2].mxu0 }
  0xdc   :  { %v88_v8 = vmax.f32 %v82_v5, 0.0  ;;  %v85_v9 = vadd.f32 %v194_v3, %v84_v7  ;;  %v212_v10 = vpop.f32.mrb[3].mxu0 }
  0xde   :  { %v89_v11 = vmax.f32 %v85_v9, 0.0  ;;  %v90_v12 = vmul.f32 %v88_v8, %v88_v8 }
  0xe0   :  { %v93_v13 = vsel %vm92_vm2, %v90_v12, 0.0  ;;  %v91_v14 = vmul.f32 %v89_v11, %v89_v11 }
  0xe1   :  { %94 = vadd.xlane.f32.xlu0 %v93_v13 }
  0xe2   :  { %v96_v15 = vsel %vm92_vm2, %v91_v14, 0.0 }
  0xe5   :  { %97 = vadd.xlane.f32.xlu0 %v96_v15 }
 0x16e   :  { %v95_v18 = vpop.xlane.xlu0 %94 }
 0x16f   :  { %v99_v19 = vadd.f32 1e-12, %v95_v18 }
 0x171   :  { %227 = vrsqrt.f32 %v99_v19 }
 0x172   :  { %v98_v20 = vpop.xlane.xlu0 %97 }
 0x173   :  { %v100_v21 = vadd.f32 1e-12, %v98_v20 }
 0x175   :  { %229 = vrsqrt.f32 %v100_v21 }
 0x17b   :  { %v228_v22 = vpop.eup %227 }
 0x17c   :  { %v103_v24 = vmul.f32 %v228_v22, %v88_v8 }
 0x17f   :  { %v230_v23 = vpop.eup %229 }
 0x180   :  { %v104_v25 = vmul.f32 %v230_v23, %v89_v11 }
 0x182   :  { %v105_v26 = vpack.c.bf16 %v104_v25, %v103_v24 }
 0x184   :  { %218 = vmatmul.mubr.msk.bf16.vlgmr.msra.gmra.mrb[0].mxu1 %vm92_vm2, %v105_v26 }
 0x257   :  { %v166_v28 = vpop.f32.mrb[0].mxu1 }
 0x258   :  { %v167_v29 = vadd.f32 %v198_v27, %v166_v28  ;;  %v219_v30 = vpop.f32.mrb[1].mxu1 }
 0x259   :  { %v169_v31 = vpop.f32.mrb[2].mxu1 }
 0x25a   :  { %v180_v32 = vmul.f32 1.442695, %v167_v29  ;;  %v170_v33 = vadd.f32 %v198_v27, %v169_v31  ;;  %v220_v34 = vpop.f32.mrb[3].mxu1  ;;  %v178_v38 = vadd.f32 1.0, %v167_v29  ;;  %vm176_vm4 = vcmp.gt.f32.partialorder %v167_v29, 0.0 }
 0x25c   :  { %231 = vpow2.f32 %v180_v32  ;;  %v182_v35 = vmul.f32 1.442695, %v170_v33  ;;  %v179_v41 = vadd.f32 1.0, %v170_v33  ;;  %vm177_vm5 = vcmp.gt.f32.partialorder %v170_v33, 0.0 }
 0x25e   :  { %233 = vpow2.f32 %v182_v35 }
 0x266   :  { %v232_v39 = vpop.eup %231 }
 0x267   :  { %v184_v40 = vsel %vm176_vm4, %v178_v38, %v232_v39 }
 0x268   :  { %v234_v42 = vpop.eup %233  ;;  %v186_v43 = vsel %vm175_vm3, %v167_v29, %v184_v40 }
 0x269   :  { %188 = vst.msk [vmem:[%s301_s5] sm:$0xff] %vm92_vm2, %v186_v43  ;;  %v185_v44 = vsel %vm177_vm5, %v179_v41, %v234_v42 }
 0x26a   :  { %v187_v45 = vsel %vm175_vm3, %v170_v33, %v185_v44 }
 0x26b   :  { %189 = vst.msk [vmem:[%s301_s5 + $0x8] sm:$0xff] %vm92_vm2, %v187_v45 }

// kernel: cru_forward.5
= control target key start
LH: loop header
LB: loop body
LE: loop exit
PB: predicated region body
PF: predicated region fallthrough
CT: control target
= control target key end

     0   :  { %v296_v0 = vmov 0.0   ;;  %vm297_vm0 = vmmov 0   ;;  %vm75_vm1 = vcmask 654336   ;;  %vm162_vm2 = vcmask 523264   ;;  %s370_s1 = inlined_call_operand.vmem [shape: bf16[80,64], index: 1, kind: input, shape index: {}]   ;;  %s371_s3 = inlined_call_operand.vmem [shape: bf16[64,32], index: 3, kind: input, shape index: {}]   ;;  %s372_s0 = inlined_call_operand.vmem [shape: bf16[16,80], index: 0, kind: input, shape index: {}]   ;;  %s373_s2 = inlined_call_operand.vmem [shape: f32[1,64], index: 2, kind: input, shape index: {}]   ;;  %s374_s4 = inlined_call_operand.vmem [shape: f32[1,32], index: 4, kind: input, shape index: {}]   ;;  %s375_s5 = inlined_call_operand.vmem [shape: f32[16,32], index: 5, kind: output, shape index: {}]  }
   0x1   :  { %254 = vmatprep.subr.bf16.mxu0 %v296_v0  ;;  %v282_v1 = vld [vmem:[%s370_s1] sm:$0xff]   ;;  %264 = vmatprep.mubr.msk.bf16.mxu0 %vm297_vm0, %v296_v0  ;;  %v283_v2 = vld [vmem:[%s370_s1 + $0x8] sm:$0xff]   ;;  %v284_v3 = vld [vmem:[%s370_s1 + $0x10] sm:$0xff]   ;;  %v207_v30 = vlaneseq  ;;  %vm222_vm5 = vcmask 261120  }
   0x2   :  { %268 = vmatprep.subr.bf16.mxu1 %v296_v0  ;;  %276 = vmatprep.mubr.msk.bf16.mxu1 %vm297_vm0, %v296_v0  ;;  %v288_v4 = vld [vmem:[%s371_s3] sm:$0xff]   ;;  %v289_v5 = vld [vmem:[%s371_s3 + $0x8] sm:$0xff]   ;;  %v285_v6 = vld [vmem:[%s370_s1 + $0x18] sm:$0xff]  }
   0x3   :  { %255 = vmatpush3.bf16.msra.mxu0 %v282_v1  ;;  %269 = vmatpush3.bf16.msra.mxu1 %v288_v4  ;;  %v286_v7 = vld [vmem:[%s370_s1 + $0x20] sm:$0xff]   ;;  %v290_v9 = vld [vmem:[%s371_s3 + $0x10] sm:$0xff]   ;;  %v291_v10 = vld [vmem:[%s371_s3 + $0x18] sm:$0xff]   ;;  %v208_v31 = vand.u32 127, %v207_v30 }
   0x4   :  { %256 = vmatprep.subr.bf16.mxu0 %v296_v0  ;;  %270 = vmatprep.subr.bf16.mxu1 %v296_v0  ;;  %v287_v8 = vld [vmem:[%s372_s0] sm:$0xff]  }
   0x5   :  { %v229_v11 = vld [vmem:[%s373_s2] ss:$0 sm:$0xff]  ;;  %vm209_vm3 = vcmp.lt.s32.totalorder %v208_v31, 16 }
   0x6   :  { %v237_v21 = vld [vmem:[%s374_s4] ss:$0 sm:$0xff] }
   0x7   :  { %257 = vmatpush3.bf16.msra.mxu0 %v283_v2  ;;  %271 = vmatpush3.bf16.msra.mxu1 %v289_v5 }
   0x8   :  { %258 = vmatprep.subr.bf16.mxu0 %v296_v0  ;;  %272 = vmatprep.subr.bf16.mxu1 %v296_v0 }
   0xb   :  { %259 = vmatpush3.bf16.msra.mxu0 %v284_v3  ;;  %273 = vmatpush3.bf16.msra.mxu1 %v290_v9 }
   0xc   :  { %260 = vmatprep.subr.bf16.mxu0 %v296_v0  ;;  %274 = vmatprep.subr.bf16.mxu1 %v296_v0 }
   0xf   :  { %261 = vmatpush3.bf16.msra.mxu0 %v285_v6  ;;  %275 = vmatpush3.bf16.msra.mxu1 %v291_v10 }
  0x10   :  { %262 = vmatprep.subr.bf16.mxu0 %v296_v0 }
  0x13   :  { %263 = vmatpush3.bf16.msra.mxu0 %v286_v7 }
  0x16   :  { %265 = vmatmul.mubr.msk.bf16.vlgmr.msra.gmra.mrb[0].mxu0 %vm75_vm1, %v287_v8 }
  0xe9   :  { %v113_v12 = vpop.f32.mrb[0].mxu0 }
  0xea   :  { %v114_v13 = vadd.f32 %v229_v11, %v113_v12  ;;  %v266_v14 = vpop.f32.mrb[1].mxu0 }
  0xeb   :  { %v116_v15 = vpop.f32.mrb[2].mxu0 }
  0xec   :  { %v117_v16 = vadd.f32 %v229_v11, %v116_v15  ;;  %v267_v17 = vpop.f32.mrb[3].mxu0  ;;  %v120_v18 = vmax.f32 %v114_v13, 0.0 }
  0xee   :  { %v121_v19 = vmax.f32 %v117_v16, 0.0 }
  0xf0   :  { %v122_v20 = vpack.c.bf16 %v121_v19, %v120_v18 }
  0xf2   :  { %277 = vmatmul.mubr.msk.bf16.vlgmr.msra.gmra.mrb[0].mxu1 %vm162_vm2, %v122_v20 }
 0x1c5   :  { %v200_v22 = vpop.f32.mrb[0].mxu1 }
 0x1c6   :  { %v201_v23 = vadd.f32 %v237_v21, %v200_v22  ;;  %v278_v24 = vpop.f32.mrb[1].mxu1 }
 0x1c7   :  { %v203_v25 = vpop.f32.mrb[2].mxu1 }
 0x1c8   :  { %v214_v26 = vmul.f32 1.442695, %v201_v23  ;;  %v204_v27 = vadd.f32 %v237_v21, %v203_v25  ;;  %v279_v28 = vpop.f32.mrb[3].mxu1  ;;  %v212_v32 = vadd.f32 1.0, %v201_v23  ;;  %vm210_vm4 = vcmp.gt.f32.partialorder %v201_v23, 0.0 }
 0x1ca   :  { %292 = vpow2.f32 %v214_v26  ;;  %v216_v29 = vmul.f32 1.442695, %v204_v27  ;;  %v213_v35 = vadd.f32 1.0, %v204_v27  ;;  %vm211_vm6 = vcmp.gt.f32.partialorder %v204_v27, 0.0 }
 0x1cc   :  { %294 = vpow2.f32 %v216_v29 }
 0x1d4   :  { %v293_v33 = vpop.eup %292 }
 0x1d5   :  { %v218_v34 = vsel %vm210_vm4, %v212_v32, %v293_v33 }
 0x1d6   :  { %v295_v36 = vpop.eup %294  ;;  %v220_v37 = vsel %vm209_vm3, %v201_v23, %v218_v34 }
 0x1d7   :  { %223 = vst.msk [vmem:[%s375_s5] sm:$0xff] %vm222_vm5, %v220_v37  ;;  %v219_v38 = vsel %vm211_vm6, %v213_v35, %v295_v36 }
 0x1d8   :  { %v221_v39 = vsel %vm209_vm3, %v204_v27, %v219_v38 }
 0x1d9   :  { %224 = vst.msk [vmem:[%s375_s5 + $0x8] sm:$0xff] %vm222_vm5, %v221_v39 }

// kernel: cru_forward.4
= control target key start
LH: loop header
LB: loop body
LE: loop exit
PB: predicated region body
PF: predicated region fallthrough
CT: control target
= control target key end

     0   :  { %v7732_v0 = vlaneseq  ;;  %s4872_s11 = smov 112   ;;  %v4873_v6 = vmov 1966171168   ;;  %vm20_vm0 = vcmask 123904   ;;  %s4875_s16 = smov 64   ;;  %vm699_vm1 = vcmask 130048   ;;  %s7729_s0 = inlined_call_operand.vmem [shape: f32[2,8,144], index: 0, kind: input, shape index: {}]   ;;  %s7730_s1 = inlined_call_operand.vmem [shape: f32[8,16], index: 1, kind: input, shape index: {}]   ;;  %s7731_s2 = inlined_call_operand.vmem [shape: f32[2,8,192], index: 2, kind: output, shape index: {}]  }
   0x1   :  { %v4898_v1 = vld [vmem:[%s7729_s0] ss:$8 sm:$0x3]  ;;  %v4908_v3 = vld [vmem:[%s7729_s0 + $0x10] ss:$8 sm:$0x3]  ;;  %v60_v7 = vunpack.c.l.s4 %v4873_v6 }
   0x2   :  { %183 = vrot.lane.b32.xlu1 %v4898_v1, %s4872_s11  ;;  %v4903_v2 = vshrl.u32 %v7732_v0, 7  ;;  %v4913_v4 = vld [vmem:[%s7730_s1] sm:$0xff]  ;;  %s4874_s1 = smov 96   ;;  %s4876_s17 = smov 48   ;;  %v4963_v27 = vmul.f32 %v4898_v1, %v4898_v1  ;;  %v4968_v30 = vmul.f32 %v4908_v3, %v4908_v3  ;;  %vm701_vm2 = vcmask 261120  }
   0x3   :  { %v61_v13 = vunpack.c.0.s8 %v60_v7  ;;  %s4877_s18 = smov 32   ;;  %s4878_s19 = smov 16   ;;  %vm703_vm3 = vcmask 392192   ;;  %vm705_vm4 = vcmask 523264   ;;  %vm707_vm5 = vcmask 654336  }
   0x4   :  { %v34_v5 = vsub.s32 3, %v4903_v2  ;;  %v29_v8 = vsub.s32 2, %v4903_v2  ;;  %v39_v9 = vsub.s32 4, %v4903_v2  ;;  %v24_v34 = vsub.s32 1, %v4903_v2  ;;  %s4879_s20 = smov 80  }
   0x5   :  { %v4929_v14 = vsub.s32 %v61_v13, %v4903_v2  ;;  %v18_v7 = vsub.s32 0, %v4903_v2  ;;  %vm709_vm6 = vcmask 785408   ;;  %vm711_vm7 = vcmask 916480  }
   0x6   :  { %185 = vrot.lane.b32.xlu1 %v4908_v3, %s4872_s11  ;;  %v35_v10 = vrot.slane %v4913_v4, %v34_v5  ;;  %v30_v11 = vrot.slane %v4913_v4, %v29_v8  ;;  %v40_v12 = vrot.slane %v4913_v4, %v39_v9  ;;  %v25_v36 = vrot.slane %v4913_v4, %v24_v34 }
   0x8   :  { %36 = vst.msk [vmem:[#allocation5] sm:$0x3] %vm20_vm0, %v35_v10  ;;  %31 = vst.msk [vmem:[#allocation4] sm:$0x3] %vm20_vm0, %v30_v11 }
   0x9   :  { %41 = vst.msk [vmem:[#allocation6] sm:$0x3] %vm20_vm0, %v40_v12  ;;  %26 = vst.msk [vmem:[#allocation3] sm:$0x3] %vm20_vm0, %v25_v36  ;;  %v19_v12 = vrot.slane %v4913_v4, %v18_v7 }
   0xa   :  { %321 = vrot.lane.b32.xlu1 %v4908_v3, %s4874_s1 }
   0xb   :  { %21 = vst.msk [vmem:[#allocation2] sm:$0x3] %vm20_vm0, %v19_v12 }
   0xe   :  { %269 = vrot.lane.b32.xlu1 %v4908_v3, %s4875_s16 }
   0xf   :  { %v4800_v15 = vld.sshfl [vmem:[#allocation5] sm:$0x11 pattern:$0x75316420] }
  0x10   :  { %v241_v16 = vrot.slane %v4800_v15, %v4929_v14  ;;  %v234_v17 = vcombine.high %v4800_v15, %v4800_v15  ;;  %v4798_v18 = vld.sshfl [vmem:[#allocation4] sm:$0x11 pattern:$0x75316420] }
  0x11   :  { %v4799_v19 = vld.sshfl [vmem:[#allocation6] sm:$0x11 pattern:$0x75316420]  ;;  %v158_v20 = vcombine.high %v4798_v18, %v4798_v18  ;;  %v4950_v25 = vrot.slane %v4798_v18, %v4929_v14 }
  0x12   :  { %249 = vrot.lane.b32.xlu0 %v241_v16, %s4876_s17  ;;  %v248_v21 = vrot.slane %v234_v17, %v4929_v14  ;;  %v201_v22 = vcombine.high %v4799_v19, %v4799_v19  ;;  %v4955_v26 = vrot.slane %v4799_v19, %v4929_v14 }
  0x13   :  { %v4937_v23 = vrot.slane %v158_v20, %v4929_v14 }
  0x14   :  { %v4942_v24 = vrot.slane %v201_v22, %v4929_v14 }
  0x15   :  { %175 = vrot.lane.b32.xlu1 %v4937_v23, %s4877_s18 }
  0x16   :  { %251 = vrot.lane.b32.xlu0 %v248_v21, %s4876_s17 }
  0x19   :  { %218 = vrot.lane.b32.xlu1 %v4942_v24, %s4877_s18 }
  0x1a   :  { %319 = vrot.lane.b32.xlu0 %v4898_v1, %s4874_s1 }
  0x1e   :  { %173 = vrot.lane.b32.xlu0 %v4950_v25, %s4877_s18 }
  0x22   :  { %216 = vrot.lane.b32.xlu0 %v4955_v26, %s4877_s18 }
  0x26   :  { %267 = vrot.lane.b32.xlu0 %v4898_v1, %s4875_s16 }
  0x74   :  { %v184_v31 = vpop.permute.xlu1 %183 }
  0x75   :  { %v189_v38 = vmul.f32 %v184_v31, %v4898_v1 }
  0x77   :  { %v4994_v49 = vmul.f32 2.0, %v189_v38 }
  0x78   :  { %v186_v35 = vpop.permute.xlu1 %185 }
  0x79   :  { %v190_v41 = vmul.f32 %v4908_v3, %v186_v35 }
  0x7b   :  { %v4996_v51 = vmul.f32 2.0, %v190_v41 }
  0x7c   :  { %v322_v40 = vpop.permute.xlu1 %321 }
  0x7d   :  { %v326_v42 = vmul.f32 %v4908_v3, %v322_v40 }
  0x80   :  { %v270_v46 = vpop.permute.xlu1 %269 }
  0x84   :  { %v250_v28 = vpop.permute.xlu0 %249 }
  0x85   :  { %v255_v29 = vmul.f32 %v250_v28, %v4963_v27 }
  0x87   :  { %259 = vrot.lane.b32.xlu0 %v255_v29, %s4872_s11  ;;  %v176_v48 = vpop.permute.xlu1 %175 }
  0x88   :  { %v252_v32 = vpop.permute.xlu0 %251  ;;  %v180_v55 = vmul.f32 %v176_v48, %v4968_v30 }
  0x89   :  { %v256_v33 = vmul.f32 %v252_v32, %v4968_v30  ;;  %v346_v44 = vmul.f32 %v326_v42, %v252_v32  ;;  %v328_v32 = vmul.f32 %v326_v42, %v176_v48 }
  0x8b   :  { %261 = vrot.lane.b32.xlu1 %v256_v33, %s4872_s11  ;;  %357 = vrot.lane.b32.xlu0 %v4898_v1, %s4878_s19  ;;  %v219_v54 = vpop.permute.xlu1 %218 }
  0x8c   :  { %v320_v37 = vpop.permute.xlu0 %319  ;;  %v223_v56 = vmul.f32 %v219_v54, %v4996_v51 }
  0x8d   :  { %v325_v39 = vmul.f32 %v320_v37, %v4898_v1 }
  0x8e   :  { %v225_v61 = vadd.f32 %v223_v56, %v180_v55  ;;  %v4796_v55 = vld.sshfl [vmem:[#allocation2] sm:$0x11 pattern:$0x75316420] }
  0x8f   :  { %359 = vrot.lane.b32.xlu1 %v4908_v3, %s4878_s19  ;;  %311 = vrot.lane.b32.xlu0 %v4898_v1, %s4879_s20  ;;  %v345_v43 = vmul.f32 %v325_v39, %v250_v28 }
  0x90   :  { %v174_v45 = vpop.permute.xlu0 %173 }
  0x91   :  { %v179_v52 = vmul.f32 %v174_v45, %v4963_v27  ;;  %v327_v19 = vmul.f32 %v325_v39, %v174_v45  ;;  %v4797_v39 = vld.sshfl [vmem:[#allocation3] sm:$0x11 pattern:$0x75316420] }
  0x92   :  { %v5032_v42 = vrot.slane %v4797_v39, %v4929_v14 }
  0x93   :  { %313 = vrot.lane.b32.xlu1 %v4908_v3, %s4879_s20  ;;  %333 = vrot.lane.b32.xlu0 %v189_v38, %s4872_s11 }
  0x94   :  { %v217_v47 = vpop.permute.xlu0 %216 }
  0x95   :  { %v222_v53 = vmul.f32 %v217_v47, %v4994_v49 }
  0x97   :  { %335 = vrot.lane.b32.xlu1 %v190_v41, %s4872_s11  ;;  %349 = vrot.lane.b32.xlu0 %v345_v43, %s4872_s11  ;;  %v224_v57 = vadd.f32 %v222_v53, %v179_v52 }
  0x98   :  { %v268_v50 = vpop.permute.xlu0 %267 }
  0x9b   :  { %351 = vrot.lane.b32.xlu1 %v346_v44, %s4872_s11  ;;  %293 = vrot.lane.b32.xlu0 %v241_v16, %s4879_s20  ;;  %v89_v44 = vcombine.high %v4797_v39, %v4797_v39 }
  0x9d   :  { %v5039_v45 = vrot.slane %v89_v44, %v4929_v14  ;;  %v5130_v44 = vld [vmem:[%s7729_s0 + $0x1] ss:$8 sm:$0x3] }
  0x9f   :  { %295 = vrot.lane.b32.xlu1 %v248_v21, %s4879_s20 }
  0xf9   :  { %v260_v58 = vpop.permute.xlu0 %259 }
  0xfa   :  { %v265_v59 = vadd.f32 %v260_v58, %v224_v57  ;;  %v5071_v57 = vrot.slane %v4796_v55, %v4929_v14  ;;  %v58_v58 = vcombine.high %v4796_v55, %v4796_v55 }
  0xfc   :  { %v5002_v60 = vadd.f32 %v268_v50, %v265_v59 }
  0xfd   :  { %v262_v62 = vpop.permute.xlu1 %261  ;;  %v358_v63 = vpop.permute.xlu0 %357 }
  0xfe   :  { %v266_v5 = vadd.f32 %v262_v62, %v225_v61  ;;  %v363_v6 = vadd.f32 %v358_v63, %v5002_v60 }
 0x100   :  { %v5006_v8 = vadd.f32 %v270_v46, %v266_v5  ;;  %v365_v9 = vadd.f32 1e-12, %v363_v6  ;;  %v5082_v5 = vrot.slane %v58_v58, %v4929_v14 }
 0x101   :  { %v360_v10 = vpop.permute.xlu1 %359  ;;  %v5008_v11 = vpop.permute.xlu0 %311 }
 0x102   :  { %4838 = vrcp.f32 %v365_v9  ;;  %v364_v13 = vadd.f32 %v360_v10, %v5006_v8  ;;  %v329_v15 = vmul.f32 %v5008_v11, %v4898_v1 }
 0x104   :  { %v366_v16 = vadd.f32 1e-12, %v364_v13 }
 0x105   :  { %v5015_v17 = vpop.permute.xlu1 %313  ;;  %v334_v2 = vpop.permute.xlu0 %333 }
 0x106   :  { %4840 = vrcp.f32 %v366_v16  ;;  %v339_v18 = vadd.f32 %v334_v2, %v329_v15  ;;  %v330_v20 = vmul.f32 %v4908_v3, %v5015_v17 }
 0x108   :  { %v341_v21 = vmul.f32 %v339_v18, %v217_v47 }
 0x109   :  { %v336_v4 = vpop.permute.xlu1 %335  ;;  %v350_v29 = vpop.permute.xlu0 %349 }
 0x10a   :  { %v340_v22 = vadd.f32 %v336_v4, %v330_v20  ;;  %v343_v28 = vadd.f32 %v341_v21, %v327_v19 }
 0x10c   :  { %v4839_v31 = vpop.eup %4838  ;;  %v342_v33 = vmul.f32 %v340_v22, %v219_v54  ;;  %v5019_v34 = vadd.f32 %v350_v29, %v343_v28 }
 0x10d   :  { %v352_v37 = vpop.permute.xlu1 %351  ;;  %v294_v46 = vpop.permute.xlu0 %293  ;;  %v369_v9 = vmul.f32 %v4839_v31, %v5002_v60 }
 0x10e   :  { %7865 = vst [vmem:[#allocation7_spill] sm:$0xff] %v5019_v34  ;;  %v344_v35 = vadd.f32 %v342_v33, %v328_v32  ;;  %v385_v36 = vmul.f32 %v4839_v31, %v5019_v34  ;;  %v299_v47 = vmul.f32 %v294_v46, %v4963_v27 }
 0x110   :  { %v4841_v38 = vpop.eup %4840  ;;  %v5022_v40 = vadd.f32 %v352_v37, %v344_v35  ;;  %389 = vrot.lane.b32.xlu0 %v385_v36, %s4874_s1 }
 0x111   :  { %v296_v48 = vpop.permute.xlu1 %295  ;;  %v370_v10 = vmul.f32 %v4841_v38, %v5006_v8 }
 0x112   :  { %7866 = vst [vmem:[#allocation8_spill] sm:$0xff] %v5022_v40  ;;  %v386_v43 = vmul.f32 %v4841_v38, %v5022_v40  ;;  %v300_v50 = vmul.f32 %v296_v48, %v4968_v30 }
 0x114   :  { %391 = vrot.lane.b32.xlu1 %v386_v43, %s4874_s1  ;;  %445 = vrot.lane.b32.xlu0 %v5019_v34, %s4874_s1 }
 0x118   :  { %447 = vrot.lane.b32.xlu1 %v5022_v40, %s4874_s1  ;;  %104 = vrot.lane.b32.xlu0 %v5032_v42, %s4876_s17 }
 0x11c   :  { %106 = vrot.lane.b32.xlu1 %v5039_v45, %s4876_s17  ;;  %275 = vrot.lane.b32.xlu0 %v4950_v25, %s4875_s16  ;;  %v371_v25 = vrot.slane %v4898_v1, 1 }
 0x120   :  { %277 = vrot.lane.b32.xlu1 %v4937_v23, %s4875_s16  ;;  %283 = vrot.lane.b32.xlu0 %v4955_v26, %s4875_s16  ;;  %v372_v26 = vrot.slane %v4908_v3, 1 }
 0x124   :  { %285 = vrot.lane.b32.xlu1 %v4942_v24, %s4875_s16  ;;  %303 = vrot.lane.b32.xlu0 %v299_v47, %s4872_s11  ;;  %v5145_v47 = vld [vmem:[%s7729_s0 + $0x11] ss:$8 sm:$0x3] }
 0x128   :  { %305 = vrot.lane.b32.xlu1 %v300_v50, %s4872_s11 }
 0x182   :  { %v390_v52 = vpop.permute.xlu0 %389 }
 0x183   :  { %v5058_v23 = vmul.f32 %v390_v52, %v371_v25 }
 0x185   :  { %7867 = vst [vmem:[#allocation9_spill] sm:$0xff] %v5058_v23 }
 0x186   :  { %v392_v53 = vpop.permute.xlu1 %391  ;;  %v5061_v54 = vpop.permute.xlu0 %445 }
 0x187   :  { %v451_v24 = vmul.f32 %v5061_v54, %v5058_v23  ;;  %v5067_v56 = vmul.f32 %v392_v53, %v372_v26 }
 0x189   :  { %7868 = vst [vmem:[#allocation10_spill] sm:$0xff] %v5067_v56  ;;  %455 = vrot.lane.b32.xlu0 %v451_v24, %s4875_s16 }
 0x18a   :  { %v5073_v59 = vpop.permute.xlu1 %447  ;;  %v105_v62 = vpop.permute.xlu0 %104 }
 0x18b   :  { %v452_v61 = vmul.f32 %v5073_v59, %v5067_v56  ;;  %v110_v63 = vmul.f32 %v105_v62, %v4898_v1  ;;  %v5196_v62 = vmul.f32 %v5145_v47, %v5145_v47 }
 0x18d   :  { %457 = vrot.lane.b32.xlu1 %v452_v61, %s4875_s16  ;;  %73 = vrot.lane.b32.xlu0 %v5071_v57, %s4877_s18 }
 0x18e   :  { %v107_v6 = vpop.permute.xlu1 %106  ;;  %v276_v12 = vpop.permute.xlu0 %275 }
 0x18f   :  { %v111_v7 = vmul.f32 %v4908_v3, %v107_v6  ;;  %v281_v16 = vmul.f32 %v276_v12, %v4963_v27 }
 0x191   :  { %75 = vrot.lane.b32.xlu1 %v5082_v5, %s4877_s18  ;;  %114 = vrot.lane.b32.xlu0 %v110_v63, %s4872_s11 }
 0x192   :  { %v278_v13 = vpop.permute.xlu1 %277  ;;  %v284_v15 = vpop.permute.xlu0 %283 }
 0x193   :  { %v289_v2 = vmul.f32 %v284_v15, %v4994_v49  ;;  %v282_v19 = vmul.f32 %v278_v13, %v4968_v30 }
 0x195   :  { %116 = vrot.lane.b32.xlu1 %v111_v7, %s4872_s11  ;;  %377 = vrot.lane.b32.xlu0 %v369_v9, %s4874_s1  ;;  %v291_v21 = vadd.f32 %v289_v2, %v281_v16 }
 0x196   :  { %v286_v18 = vpop.permute.xlu1 %285  ;;  %v304_v4 = vpop.permute.xlu0 %303 }
 0x197   :  { %v290_v20 = vmul.f32 %v286_v18, %v4996_v51  ;;  %v309_v22 = vadd.f32 %v304_v4, %v291_v21 }
 0x199   :  { %379 = vrot.lane.b32.xlu1 %v370_v10, %s4874_s1  ;;  %435 = vrot.lane.b32.xlu0 %v5002_v60, %s4874_s1  ;;  %v292_v28 = vadd.f32 %v290_v20, %v282_v19  ;;  %v5102_v32 = vadd.f32 %v5008_v11, %v309_v22 }
 0x19a   :  { %v306_v29 = vpop.permute.xlu1 %305 }
 0x19b   :  { %v310_v31 = vadd.f32 %v306_v29, %v292_v28 }
 0x19d   :  { %437 = vrot.lane.b32.xlu1 %v5006_v8, %s4874_s1  ;;  %v5110_v27 = vadd.f32 %v5015_v17, %v310_v31 }
 0x1fb   :  { %v456_v33 = vpop.permute.xlu0 %455 }
 0x1fc   :  { %v5105_v35 = vsub.f32 %v5102_v32, %v456_v33 }
 0x1fe   :  { %834 = vrot.lane.b32.xlu0 %v5105_v35, %s4872_s11 }
 0x1ff   :  { %v458_v30 = vpop.permute.xlu1 %457  ;;  %v74_v49 = vpop.permute.xlu0 %73 }
 0x200   :  { %v5113_v51 = vsub.f32 %v5110_v27, %v458_v30  ;;  %v79_v36 = vmul.f32 %v74_v49, %v4898_v1 }
 0x202   :  { %836 = vrot.lane.b32.xlu1 %v5113_v51, %s4872_s11  ;;  %130 = vrot.lane.b32.xlu0 %v5032_v42, %s4879_s20 }
 0x203   :  { %v76_v11 = vpop.permute.xlu1 %75  ;;  %v115_v37 = vpop.permute.xlu0 %114 }
 0x204   :  { %v5120_v38 = vadd.f32 %v115_v37, %v79_v36  ;;  %v80_v17 = vmul.f32 %v4908_v3, %v76_v11 }
 0x206   :  { %132 = vrot.lane.b32.xlu1 %v5039_v45, %s4879_s20  ;;  %399 = vrot.lane.b32.xlu0 %v5120_v38, %s4874_s1 }
 0x207   :  { %v117_v39 = vpop.permute.xlu1 %116  ;;  %v378_v43 = vpop.permute.xlu0 %377 }
 0x208   :  { %v5132_v42 = vadd.f32 %v117_v39, %v80_v17  ;;  %v5136_v46 = vmul.f32 %v378_v43, %v371_v25 }
 0x20a   :  { %7869 = vst [vmem:[#allocation11_spill] sm:$0xff] %v5136_v46  ;;  %401 = vrot.lane.b32.xlu1 %v5132_v42, %s4874_s1  ;;  %814 = vrot.lane.b32.xlu0 %v5130_v44, %s4872_s11  ;;  %v431_v50 = vsub.f32 1.0, %v5136_v46 }
 0x20b   :  { %v380_v45 = vpop.permute.xlu1 %379  ;;  %v436_v25 = vpop.permute.xlu0 %435 }
 0x20c   :  { %v5149_v48 = vmul.f32 %v380_v45, %v372_v26  ;;  %v5156_v52 = vmul.f32 %v436_v25, %v431_v50  ;;  %v5166_v24 = vmul.f32 %v5061_v54, %v431_v50  ;;  %v5191_v54 = vmul.f32 %v5130_v44, %v5130_v44 }
 0x20e   :  { %7870 = vst [vmem:[#allocation12_spill] sm:$0xff] %v5149_v48  ;;  %816 = vrot.lane.b32.xlu1 %v5145_v47, %s4872_s11  ;;  %904 = vrot.lane.b32.xlu0 %v5130_v44, %s4874_s1  ;;  %v432_v53 = vsub.f32 1.0, %v5149_v48 }
 0x20f   :  { %v438_v55 = vpop.permute.xlu1 %437 }
 0x210   :  { %v5163_v26 = vmul.f32 %v438_v55, %v432_v53  ;;  %v5173_v58 = vmul.f32 %v5073_v59, %v432_v53 }
 0x212   :  { %906 = vrot.lane.b32.xlu1 %v5145_v47, %s4874_s1  ;;  %804 = vrot.lane.b32.xlu0 %v5156_v52, %s4877_s18 }
 0x216   :  { %806 = vrot.lane.b32.xlu1 %v5163_v26, %s4877_s18  ;;  %824 = vrot.lane.b32.xlu0 %v5166_v24, %s4877_s18 }
 0x21a   :  { %826 = vrot.lane.b32.xlu1 %v5173_v58, %s4877_s18  ;;  %852 = vrot.lane.b32.xlu0 %v5130_v44, %s4875_s16 }
 0x21e   :  { %854 = vrot.lane.b32.xlu1 %v5145_v47, %s4875_s16  ;;  %942 = vrot.lane.b32.xlu0 %v5130_v44, %s4878_s19 }
 0x222   :  { %944 = vrot.lane.b32.xlu1 %v5145_v47, %s4878_s19  ;;  %122 = vrot.lane.b32.xlu0 %v5071_v57, %s4875_s16 }
 0x226   :  { %124 = vrot.lane.b32.xlu1 %v5082_v5, %s4875_s16 }
 0x270   :  { %v835_v59 = vpop.permute.xlu0 %834 }
 0x271   :  { %v840_v61 = vmul.f32 %v835_v59, %v5191_v54 }
 0x273   :  { %844 = vrot.lane.b32.xlu0 %v840_v61, %s4872_s11 }
 0x274   :  { %v837_v63 = vpop.permute.xlu1 %836  ;;  %v131_v6 = vpop.permute.xlu0 %130 }
 0x275   :  { %v841_v57 = vmul.f32 %v837_v63, %v5196_v62  ;;  %v136_v7 = vmul.f32 %v131_v6, %v4898_v1 }
 0x277   :  { %846 = vrot.lane.b32.xlu1 %v841_v57, %s4872_s11  ;;  %896 = vrot.lane.b32.xlu0 %v5130_v44, %s4879_s20 }
 0x278   :  { %v133_v5 = vpop.permute.xlu1 %132  ;;  %v400_v9 = vpop.permute.xlu0 %399 }
 0x279   :  { %v137_v13 = vmul.f32 %v4908_v3, %v133_v5  ;;  %v5209_v15 = vsub.f32 %v4898_v1, %v400_v9 }
 0x27b   :  { %898 = vrot.lane.b32.xlu1 %v5145_v47, %s4879_s20  ;;  %140 = vrot.lane.b32.xlu0 %v136_v7, %s4872_s11  ;;  %v419_v19 = vmul.f32 %v5209_v15, %v5058_v23 }
 0x27c   :  { %v402_v10 = vpop.permute.xlu1 %401  ;;  %v815_v12 = vpop.permute.xlu0 %814 }
 0x27d   :  { %v820_v16 = vmul.f32 %v5130_v44, %v815_v12  ;;  %v5217_v20 = vsub.f32 %v4908_v3, %v402_v10 }
 0x27f   :  { %142 = vrot.lane.b32.xlu1 %v137_v13, %s4872_s11  ;;  %918 = vrot.lane.b32.xlu0 %v820_v16, %s4872_s11  ;;  %v420_v28 = vmul.f32 %v5217_v20, %v5067_v56  ;;  %v5229_v43 = vmul.f32 2.0, %v820_v16 }
 0x280   :  { %v817_v2 = vpop.permute.xlu1 %816  ;;  %v905_v18 = vpop.permute.xlu0 %904 }
 0x281   :  { %v821_v21 = vmul.f32 %v5145_v47, %v817_v2  ;;  %v910_v4 = vmul.f32 %v5130_v44, %v905_v18 }
 0x283   :  { %920 = vrot.lane.b32.xlu1 %v821_v21, %s4872_s11  ;;  %423 = vrot.lane.b32.xlu0 %v419_v19, %s4875_s16  ;;  %v930_v29 = vmul.f32 %v910_v4, %v835_v59  ;;  %v5232_v53 = vmul.f32 2.0, %v821_v21 }
 0x284   :  { %v907_v22 = vpop.permute.xlu1 %906  ;;  %v805_v30 = vpop.permute.xlu0 %804 }
 0x285   :  { %v911_v31 = vmul.f32 %v5145_v47, %v907_v22  ;;  %v810_v55 = vmul.f32 %v805_v30, %v5191_v54 }
 0x287   :  { %425 = vrot.lane.b32.xlu1 %v420_v28, %s4875_s16  ;;  %934 = vrot.lane.b32.xlu0 %v930_v29, %s4872_s11  ;;  %v931_v33 = vmul.f32 %v911_v31, %v837_v63 }
 0x288   :  { %v807_v49 = vpop.permute.xlu1 %806  ;;  %v825_v36 = vpop.permute.xlu0 %824 }
 0x289   :  { %v830_v25 = vmul.f32 %v825_v36, %v5229_v43  ;;  %v811_v57 = vmul.f32 %v807_v49, %v5196_v62 }
 0x28b   :  { %936 = vrot.lane.b32.xlu1 %v931_v33, %s4872_s11  ;;  %v832_v63 = vadd.f32 %v830_v25, %v810_v55 }
 0x28c   :  { %v827_v11 = vpop.permute.xlu1 %826  ;;  %v853_v37 = vpop.permute.xlu0 %852 }
 0x28d   :  { %v831_v61 = vmul.f32 %v827_v11, %v5232_v53 }
 0x28f   :  { %v833_v9 = vadd.f32 %v831_v61, %v811_v57  ;;  %v912_v57 = vmul.f32 %v910_v4, %v805_v30 }
 0x290   :  { %v855_v17 = vpop.permute.xlu1 %854  ;;  %v943_v39 = vpop.permute.xlu0 %942 }
 0x294   :  { %v945_v45 = vpop.permute.xlu1 %944  ;;  %v123_v50 = vpop.permute.xlu0 %122 }
 0x295   :  { %v128_v21 = vmul.f32 %v123_v50, %v4898_v1 }
 0x298   :  { %v125_v59 = vpop.permute.xlu1 %124 }
 0x299   :  { %v129_v33 = vmul.f32 %v4908_v3, %v125_v59 }
 0x2e5   :  { %v845_v6 = vpop.permute.xlu0 %844 }
 0x2e6   :  { %v850_v7 = vadd.f32 %v845_v6, %v832_v63 }
 0x2e8   :  { %v5237_v5 = vadd.f32 %v853_v37, %v850_v7 }
 0x2e9   :  { %v847_v10 = vpop.permute.xlu1 %846  ;;  %v5239_v12 = vpop.permute.xlu0 %896 }
 0x2ea   :  { %7871 = vst [vmem:[#allocation13_spill] sm:$0xff] %v5237_v5  ;;  %v851_v13 = vadd.f32 %v847_v10, %v833_v9  ;;  %v948_v16 = vadd.f32 %v943_v39, %v5237_v5  ;;  %v914_v22 = vmul.f32 %v5130_v44, %v5239_v12 }
 0x2ec   :  { %v5242_v2 = vadd.f32 %v855_v17, %v851_v13  ;;  %v950_v28 = vadd.f32 1e-12, %v948_v16  ;;  %v913_v16 = vmul.f32 %v911_v31, %v807_v49 }
 0x2ed   :  { %v5244_v18 = vpop.permute.xlu1 %898  ;;  %v141_v19 = vpop.permute.xlu0 %140 }
 0x2ee   :  { %7872 = vst [vmem:[#allocation14_spill] sm:$0xff] %v5242_v2  ;;  %v949_v29 = vadd.f32 %v945_v45, %v5242_v2  ;;  %v5251_v55 = vadd.f32 %v141_v19, %v128_v21  ;;  %4842 = vrcp.f32 %v950_v28  ;;  %v915_v1 = vmul.f32 %v5145_v47, %v5244_v18 }
 0x2f0   :  { %7873 = vst [vmem:[#allocation15_spill] sm:$0xff] %v5251_v55  ;;  %v951_v61 = vadd.f32 1e-12, %v949_v29  ;;  %v407_v29 = vmul.f32 %v5209_v15, %v5136_v46 }
 0x2f1   :  { %v143_v37 = vpop.permute.xlu1 %142  ;;  %v919_v25 = vpop.permute.xlu0 %918 }
 0x2f2   :  { %v5253_v39 = vadd.f32 %v143_v37, %v129_v33  ;;  %v924_v17 = vadd.f32 %v919_v25, %v914_v22  ;;  %4844 = vrcp.f32 %v951_v61  ;;  %v408_v33 = vmul.f32 %v5217_v20, %v5149_v48 }
 0x2f3   :  { %v956_v20 = vrot.slane %v5130_v44, 1 }
 0x2f4   :  { %7874 = vst [vmem:[#allocation16_spill] sm:$0xff] %v5253_v39  ;;  %v926_v63 = vmul.f32 %v924_v17, %v825_v36 }
 0x2f5   :  { %v921_v6 = vpop.permute.xlu1 %920  ;;  %v424_v45 = vpop.permute.xlu0 %423 }
 0x2f6   :  { %v925_v3 = vadd.f32 %v921_v6, %v915_v1  ;;  %v5260_v59 = vadd.f32 %v424_v45, %v5251_v55  ;;  %v928_v9 = vadd.f32 %v926_v63, %v912_v57 }
 0x2f8   :  { %v927_v7 = vmul.f32 %v925_v3, %v827_v11  ;;  %758 = vrot.lane.b32.xlu0 %v5260_v59, %s4872_s11  ;;  %v4843_v30 = vpop.eup %4842 }
 0x2f9   :  { %v426_v10 = vpop.permute.xlu1 %425  ;;  %v935_v13 = vpop.permute.xlu0 %934 }
 0x2fa   :  { %v5265_v19 = vadd.f32 %v426_v10, %v5253_v39  ;;  %v5267_v36 = vadd.f32 %v935_v13, %v928_v9  ;;  %v929_v4 = vadd.f32 %v927_v7, %v913_v16  ;;  %v957_v7 = vrot.slane %v5145_v47, 1 }
 0x2fc   :  { %7875 = vst [vmem:[#allocation17_spill] sm:$0xff] %v5267_v36  ;;  %760 = vrot.lane.b32.xlu1 %v5265_v19, %s4872_s11  ;;  %878 = vrot.lane.b32.xlu0 %v5105_v35, %s4878_s19  ;;  %v970_v22 = vmul.f32 %v4843_v30, %v5267_v36  ;;  %v4845_v49 = vpop.eup %4844 }
 0x2fd   :  { %v937_v11 = vpop.permute.xlu1 %936 }
 0x2fe   :  { %v5273_v21 = vadd.f32 %v937_v11, %v929_v4  ;;  %v954_v11 = vmul.f32 %v4843_v30, %v5237_v5 }
 0x300   :  { %7876 = vst [vmem:[#allocation18_spill] sm:$0xff] %v5273_v21  ;;  %880 = vrot.lane.b32.xlu1 %v5113_v51, %s4878_s19  ;;  %974 = vrot.lane.b32.xlu0 %v970_v22, %s4874_s1  ;;  %v971_v28 = vmul.f32 %v4845_v49, %v5273_v21  ;;  %v955_v22 = vmul.f32 %v4845_v49, %v5242_v2 }
 0x304   :  { %976 = vrot.lane.b32.xlu1 %v971_v28, %s4874_s1  ;;  %1030 = vrot.lane.b32.xlu0 %v5267_v36, %s4874_s1 }
 0x308   :  { %1032 = vrot.lane.b32.xlu1 %v5273_v21, %s4874_s1  ;;  %411 = vrot.lane.b32.xlu0 %v407_v29, %s4877_s18 }
 0x30c   :  { %413 = vrot.lane.b32.xlu1 %v408_v33, %s4877_s18 }
 0x36a   :  { %v759_v37 = vpop.permute.xlu0 %758 }
 0x36b   :  { %v764_v25 = vmul.f32 %v5130_v44, %v759_v37 }
 0x36d   :  { %768 = vrot.lane.b32.xlu0 %v764_v25, %s4872_s11 }
 0x36e   :  { %v761_v17 = vpop.permute.xlu1 %760  ;;  %v879_v61 = vpop.permute.xlu0 %878 }
 0x36f   :  { %v765_v1 = vmul.f32 %v5145_v47, %v761_v17  ;;  %v884_v45 = vmul.f32 %v879_v61, %v5191_v54 }
 0x371   :  { %770 = vrot.lane.b32.xlu1 %v765_v1, %s4872_s11  ;;  %860 = vrot.lane.b32.xlu0 %v5156_v52, %s4875_s16 }
 0x372   :  { %v881_v15 = vpop.permute.xlu1 %880  ;;  %v975_v63 = vpop.permute.xlu0 %974 }
 0x373   :  { %v5309_v3 = vmul.f32 %v975_v63, %v956_v20  ;;  %v885_v9 = vmul.f32 %v881_v15, %v5196_v62 }
 0x375   :  { %862 = vrot.lane.b32.xlu1 %v5163_v26, %s4875_s16  ;;  %868 = vrot.lane.b32.xlu0 %v5166_v24, %s4875_s16  ;;  %7877 = vst [vmem:[#allocation19_spill] sm:$0xff] %v5309_v3 }
 0x376   :  { %v977_v6 = vpop.permute.xlu1 %976  ;;  %v5305_v57 = vpop.permute.xlu0 %1030 }
 0x377   :  { %v1036_v10 = vmul.f32 %v5305_v57, %v5309_v3  ;;  %v5322_v16 = vmul.f32 %v977_v6, %v957_v7 }
 0x379   :  { %870 = vrot.lane.b32.xlu1 %v5173_v58, %s4875_s16  ;;  %888 = vrot.lane.b32.xlu0 %v884_v45, %s4872_s11  ;;  %7878 = vst [vmem:[#allocation20_spill] sm:$0xff] %v5322_v16 }
 0x37a   :  { %v5318_v13 = vpop.permute.xlu1 %1032  ;;  %v412_v28 = vpop.permute.xlu0 %411 }
 0x37b   :  { %v1037_v4 = vmul.f32 %v5318_v13, %v5322_v16  ;;  %v5338_v29 = vadd.f32 %v412_v28, %v5120_v38 }
 0x37d   :  { %890 = vrot.lane.b32.xlu1 %v885_v9, %s4872_s11  ;;  %1040 = vrot.lane.b32.xlu0 %v1036_v10, %s4875_s16  ;;  %v756_v30 = vmul.f32 %v5130_v44, %v5338_v29 }
 0x37e   :  { %v414_v33 = vpop.permute.xlu1 %413 }
 0x37f   :  { %v5341_v37 = vadd.f32 %v414_v33, %v5132_v42 }
 0x381   :  { %1042 = vrot.lane.b32.xlu1 %v1037_v4, %s4875_s16  ;;  %784 = vrot.lane.b32.xlu0 %v5260_v59, %s4878_s19  ;;  %v757_v49 = vmul.f32 %v5145_v47, %v5341_v37 }
 0x385   :  { %786 = vrot.lane.b32.xlu1 %v5265_v19, %s4878_s19  ;;  %962 = vrot.lane.b32.xlu0 %v954_v11, %s4874_s1 }
 0x389   :  { %964 = vrot.lane.b32.xlu1 %v955_v22, %s4874_s1 }
 0x3df   :  { %v769_v25 = vpop.permute.xlu0 %768 }
 0x3e0   :  { %v5345_v17 = vadd.f32 %v769_v25, %v756_v30 }
 0x3e2   :  { %7879 = vst [vmem:[#allocation21_spill] sm:$0xff] %v5345_v17  ;;  %984 = vrot.lane.b32.xlu0 %v5345_v17, %s4874_s1 }
 0x3e3   :  { %v771_v61 = vpop.permute.xlu1 %770  ;;  %v861_v1 = vpop.permute.xlu0 %860 }
 0x3e4   :  { %v5351_v15 = vadd.f32 %v771_v61, %v757_v49  ;;  %v866_v45 = vmul.f32 %v861_v1, %v5191_v54 }
 0x3e6   :  { %7880 = vst [vmem:[#allocation22_spill] sm:$0xff] %v5351_v15  ;;  %986 = vrot.lane.b32.xlu1 %v5351_v15, %s4874_s1  ;;  %1020 = vrot.lane.b32.xlu0 %v5237_v5, %s4874_s1 }
 0x3e7   :  { %v863_v63 = vpop.permute.xlu1 %862  ;;  %v869_v6 = vpop.permute.xlu0 %868 }
 0x3e8   :  { %v874_v9 = vmul.f32 %v869_v6, %v5229_v43  ;;  %v867_v22 = vmul.f32 %v863_v63, %v5196_v62 }
 0x3ea   :  { %1022 = vrot.lane.b32.xlu1 %v5242_v2, %s4874_s1  ;;  %v876_v10 = vadd.f32 %v874_v9, %v866_v45 }
 0x3eb   :  { %v871_v4 = vpop.permute.xlu1 %870  ;;  %v889_v11 = vpop.permute.xlu0 %888 }
 0x3ec   :  { %v875_v28 = vmul.f32 %v871_v4, %v5232_v53  ;;  %v894_v33 = vadd.f32 %v889_v11, %v876_v10  ;;  %v5377_v53 = vld [vmem:[%s7729_s0 + $0x2] ss:$8 sm:$0x3] }
 0x3ee   :  { %v877_v30 = vadd.f32 %v875_v28, %v867_v22  ;;  %v5364_v25 = vadd.f32 %v5239_v12, %v894_v33 }
 0x3ef   :  { %v891_v49 = vpop.permute.xlu1 %890  ;;  %v1041_v61 = vpop.permute.xlu0 %1040 }
 0x3f0   :  { %7881 = vst [vmem:[#allocation23_spill] sm:$0xff] %v5364_v25  ;;  %v895_v54 = vadd.f32 %v891_v49, %v877_v30  ;;  %v5367_v43 = vsub.f32 %v5364_v25, %v1041_v61 }
 0x3f2   :  { %7882 = vst [vmem:[#allocation24_spill] sm:$0xff] %v5367_v43  ;;  %1409 = vrot.lane.b32.xlu0 %v5367_v43, %s4872_s11  ;;  %v5372_v1 = vadd.f32 %v5244_v18, %v895_v54  ;;  %v5391_v18 = vld [vmem:[%s7729_s0 + $0x12] ss:$8 sm:$0x3] }
 0x3f3   :  { %v1043_v62 = vpop.permute.xlu1 %1042  ;;  %v785_v6 = vpop.permute.xlu0 %784 }
 0x3f4   :  { %7883 = vst [vmem:[#allocation25_spill] sm:$0xff] %v5372_v1  ;;  %v5380_v12 = vsub.f32 %v5372_v1, %v1043_v62  ;;  %v790_v45 = vmul.f32 %v5130_v44, %v785_v6 }
 0x3f6   :  { %7884 = vst [vmem:[#allocation26_spill] sm:$0xff] %v5380_v12  ;;  %1411 = vrot.lane.b32.xlu1 %v5380_v12, %s4872_s11  ;;  %1389 = vrot.lane.b32.xlu0 %v5377_v53, %s4872_s11 }
 0x3f7   :  { %v787_v9 = vpop.permute.xlu1 %786  ;;  %v963_v4 = vpop.permute.xlu0 %962 }
 0x3f8   :  { %v791_v10 = vmul.f32 %v5145_v47, %v787_v9  ;;  %v5409_v28 = vmul.f32 %v963_v4, %v956_v20 }
 0x3fa   :  { %1391 = vrot.lane.b32.xlu1 %v5391_v18, %s4872_s11  ;;  %1479 = vrot.lane.b32.xlu0 %v5377_v53, %s4874_s1  ;;  %7885 = vst [vmem:[#allocation27_spill] sm:$0xff] %v5409_v28  ;;  %v1016_v6 = vsub.f32 1.0, %v5409_v28 }
 0x3fb   :  { %v965_v11 = vpop.permute.xlu1 %964 }
 0x3fc   :  { %v5418_v54 = vmul.f32 %v965_v11, %v957_v7  ;;  %v5434_v7 = vmul.f32 %v5305_v57, %v1016_v6 }
 0x3fe   :  { %1481 = vrot.lane.b32.xlu1 %v5391_v18, %s4874_s1  ;;  %776 = vrot.lane.b32.xlu0 %v5338_v29, %s4877_s18  ;;  %7886 = vst [vmem:[#allocation28_spill] sm:$0xff] %v5418_v54  ;;  %7888 = vst [vmem:[#allocation30_spill] sm:$0xff] %v5434_v7 }
 0x402   :  { %778 = vrot.lane.b32.xlu1 %v5341_v37, %s4877_s18  ;;  %794 = vrot.lane.b32.xlu0 %v790_v45, %s4872_s11 }
 0x406   :  { %796 = vrot.lane.b32.xlu1 %v791_v10, %s4872_s11  ;;  %v1017_v10 = vsub.f32 1.0, %v5418_v54 }
 0x408   :  { %v5443_v11 = vmul.f32 %v5318_v13, %v1017_v10 }
 0x40a   :  { %7890 = vst [vmem:[#allocation32_spill] sm:$0xff] %v5443_v11 }
 0x454   :  { %v985_v22 = vpop.permute.xlu0 %984 }
 0x455   :  { %v5412_v33 = vsub.f32 %v5130_v44, %v985_v22  ;;  %v5447_v22 = vmul.f32 %v5377_v53, %v5377_v53 }
 0x457   :  { %v1004_v30 = vmul.f32 %v5412_v33, %v5309_v3 }
 0x458   :  { %v987_v49 = vpop.permute.xlu1 %986  ;;  %v1021_v61 = vpop.permute.xlu0 %1020 }
 0x459   :  { %v5421_v62 = vsub.f32 %v5145_v47, %v987_v49  ;;  %1008 = vrot.lane.b32.xlu0 %v1004_v30, %s4875_s16  ;;  %v5427_v45 = vmul.f32 %v1021_v61, %v1016_v6  ;;  %v5456_v49 = vmul.f32 %v5391_v18, %v5391_v18 }
 0x45b   :  { %v1005_v20 = vmul.f32 %v5421_v62, %v5322_v16  ;;  %7887 = vst [vmem:[#allocation29_spill] sm:$0xff] %v5427_v45 }
 0x45c   :  { %v1023_v9 = vpop.permute.xlu1 %1022 }
 0x45d   :  { %1010 = vrot.lane.b32.xlu1 %v1005_v20, %s4875_s16  ;;  %1379 = vrot.lane.b32.xlu0 %v5427_v45, %s4877_s18  ;;  %v5436_v4 = vmul.f32 %v1023_v9, %v1017_v10 }
 0x45f   :  { %7889 = vst [vmem:[#allocation31_spill] sm:$0xff] %v5436_v4 }
 0x461   :  { %1381 = vrot.lane.b32.xlu1 %v5436_v4, %s4877_s18  ;;  %1399 = vrot.lane.b32.xlu0 %v5434_v7, %s4877_s18 }
 0x464   :  { %v1410_v30 = vpop.permute.xlu0 %1409 }
 0x465   :  { %1401 = vrot.lane.b32.xlu1 %v5443_v11, %s4877_s18  ;;  %1427 = vrot.lane.b32.xlu0 %v5377_v53, %s4875_s16  ;;  %v1415_v57 = vmul.f32 %v1410_v30, %v5447_v22 }
 0x468   :  { %v1412_v61 = vpop.permute.xlu1 %1411  ;;  %v1390_v13 = vpop.permute.xlu0 %1389 }
 0x469   :  { %1429 = vrot.lane.b32.xlu1 %v5391_v18, %s4875_s16  ;;  %1419 = vrot.lane.b32.xlu0 %v1415_v57, %s4872_s11  ;;  %v1416_v6 = vmul.f32 %v1412_v61, %v5456_v49  ;;  %v1395_v10 = vmul.f32 %v5377_v53, %v1390_v13 }
 0x46c   :  { %v1392_v20 = vpop.permute.xlu1 %1391  ;;  %v1480_v9 = vpop.permute.xlu0 %1479 }
 0x46d   :  { %1421 = vrot.lane.b32.xlu1 %v1416_v6, %s4872_s11  ;;  %1517 = vrot.lane.b32.xlu0 %v5377_v53, %s4878_s19  ;;  %v1485_v57 = vmul.f32 %v5377_v53, %v1480_v9  ;;  %v1396_v31 = vmul.f32 %v5391_v18, %v1392_v20 }
 0x46f   :  { %v1505_v6 = vmul.f32 %v1485_v57, %v1410_v30 }
 0x470   :  { %v1482_v0 = vpop.permute.xlu1 %1481  ;;  %v777_v41 = vpop.permute.xlu0 %776 }
 0x471   :  { %1519 = vrot.lane.b32.xlu1 %v5391_v18, %s4878_s19  ;;  %1471 = vrot.lane.b32.xlu0 %v5377_v53, %s4879_s20  ;;  %v1486_v63 = vmul.f32 %v5391_v18, %v1482_v0  ;;  %v782_v20 = vmul.f32 %v5130_v44, %v777_v41 }
 0x473   :  { %v1506_v13 = vmul.f32 %v1486_v63, %v1412_v61 }
 0x474   :  { %v779_v9 = vpop.permute.xlu1 %778  ;;  %v795_v50 = vpop.permute.xlu0 %794 }
 0x475   :  { %1473 = vrot.lane.b32.xlu1 %v5391_v18, %s4879_s20  ;;  %1493 = vrot.lane.b32.xlu0 %v1395_v10, %s4872_s11  ;;  %v5480_v3 = vadd.f32 %v795_v50, %v782_v20  ;;  %v783_v30 = vmul.f32 %v5145_v47, %v779_v9  ;;  %v5497_v47 = vmul.f32 2.0, %v1395_v10  ;;  %v5502_v9 = vmul.f32 2.0, %v1396_v31 }
 0x477   :  { %7891 = vst [vmem:[#allocation33_spill] sm:$0xff] %v5480_v3 }
 0x478   :  { %v797_v16 = vpop.permute.xlu1 %796 }
 0x479   :  { %1495 = vrot.lane.b32.xlu1 %v1396_v31, %s4872_s11  ;;  %1509 = vrot.lane.b32.xlu0 %v1505_v6, %s4872_s11  ;;  %v5486_v36 = vadd.f32 %v797_v16, %v783_v30 }
 0x47b   :  { %7893 = vst [vmem:[#allocation35_spill] sm:$0xff] %v5486_v36 }
 0x47d   :  { %1511 = vrot.lane.b32.xlu1 %v1506_v13, %s4872_s11 }
 0x4cb   :  { %v1009_v21 = vpop.permute.xlu0 %1008 }
 0x4cc   :  { %v5484_v0 = vadd.f32 %v1009_v21, %v5480_v3 }
 0x4ce   :  { %7892 = vst [vmem:[#allocation34_spill] sm:$0xff] %v5484_v0  ;;  %1333 = vrot.lane.b32.xlu0 %v5484_v0, %s4872_s11 }
 0x4cf   :  { %v1011_v61 = vpop.permute.xlu1 %1010  ;;  %v1380_v6 = vpop.permute.xlu0 %1379 }
 0x4d0   :  { %v5491_v13 = vadd.f32 %v1011_v61, %v5486_v36  ;;  %v1385_v20 = vmul.f32 %v1380_v6, %v5447_v22 }
 0x4d2   :  { %7894 = vst [vmem:[#allocation36_spill] sm:$0xff] %v5491_v13  ;;  %1335 = vrot.lane.b32.xlu1 %v5491_v13, %s4872_s11  ;;  %1453 = vrot.lane.b32.xlu0 %v5367_v43, %s4878_s19 }
 0x4d3   :  { %v1382_v41 = vpop.permute.xlu1 %1381  ;;  %v1400_v44 = vpop.permute.xlu0 %1399 }
 0x4d4   :  { %v1405_v50 = vmul.f32 %v1400_v44, %v5497_v47  ;;  %v1386_v5 = vmul.f32 %v1382_v41, %v5456_v49 }
 0x4d6   :  { %1455 = vrot.lane.b32.xlu1 %v5380_v12, %s4878_s19  ;;  %v1407_v61 = vadd.f32 %v1405_v50, %v1385_v20 }
 0x4d7   :  { %v1402_v21 = vpop.permute.xlu1 %1401  ;;  %v1428_v16 = vpop.permute.xlu0 %1427 }
 0x4d8   :  { %v1406_v30 = vmul.f32 %v1402_v21, %v5502_v9 }
 0x4da   :  { %v1408_v3 = vadd.f32 %v1406_v30, %v1386_v5 }
 0x4db   :  { %v1430_v1 = vpop.permute.xlu1 %1429  ;;  %v1420_v25 = vpop.permute.xlu0 %1419 }
 0x4dc   :  { %v1425_v10 = vadd.f32 %v1420_v25, %v1407_v61 }
 0x4de   :  { %v5507_v2 = vadd.f32 %v1428_v16, %v1425_v10 }
 0x4df   :  { %v1422_v36 = vpop.permute.xlu1 %1421  ;;  %v1518_v43 = vpop.permute.xlu0 %1517 }
 0x4e0   :  { %7895 = vst [vmem:[#allocation37_spill] sm:$0xff] %v5507_v2  ;;  %v1426_v12 = vadd.f32 %v1422_v36, %v1408_v3  ;;  %v1523_v23 = vadd.f32 %v1518_v43, %v5507_v2  ;;  %v1487_v43 = vmul.f32 %v1485_v57, %v1380_v6 }
 0x4e2   :  { %v5510_v31 = vadd.f32 %v1430_v1, %v1426_v12  ;;  %v1525_v56 = vadd.f32 1e-12, %v1523_v23 }
 0x4e3   :  { %v1520_v40 = vpop.permute.xlu1 %1519  ;;  %v5512_v34 = vpop.permute.xlu0 %1471 }
 0x4e4   :  { %7896 = vst [vmem:[#allocation38_spill] sm:$0xff] %v5510_v31  ;;  %4846 = vrcp.f32 %v1525_v56  ;;  %v1524_v50 = vadd.f32 %v1520_v40, %v5510_v31  ;;  %v1489_v25 = vmul.f32 %v5377_v53, %v5512_v34  ;;  %v1488_v40 = vmul.f32 %v1486_v63, %v1382_v41 }
 0x4e5   :  { %v992_v63 = vmul.f32 %v5412_v33, %v5409_v28 }
 0x4e6   :  { %v1526_v16 = vadd.f32 1e-12, %v1524_v50 }
 0x4e7   :  { %v5517_v20 = vpop.permute.xlu1 %1473  ;;  %v1494_v5 = vpop.permute.xlu0 %1493 }
 0x4e8   :  { %4848 = vrcp.f32 %v1526_v16  ;;  %v1490_v36 = vmul.f32 %v5391_v18, %v5517_v20  ;;  %v1499_v3 = vadd.f32 %v1494_v5, %v1489_v25 }
 0x4ea   :  { %v1501_v23 = vmul.f32 %v1499_v3, %v1400_v44 }
 0x4eb   :  { %v1496_v1 = vpop.permute.xlu1 %1495  ;;  %v1510_v56 = vpop.permute.xlu0 %1509 }
 0x4ec   :  { %v1500_v12 = vadd.f32 %v1496_v1, %v1490_v36  ;;  %v1503_v30 = vadd.f32 %v1501_v23, %v1487_v43  ;;  %v1531_v36 = vrot.slane %v5377_v53, 1  ;;  %v1532_v23 = vrot.slane %v5391_v18, 1 }
 0x4ee   :  { %v4847_v61 = vpop.eup %4846  ;;  %v1502_v10 = vmul.f32 %v1500_v12, %v1402_v21  ;;  %v5521_v46 = vadd.f32 %v1510_v56, %v1503_v30 }
 0x4ef   :  { %v1512_v39 = vpop.permute.xlu1 %1511 }
 0x4f0   :  { %7897 = vst [vmem:[#allocation39_spill] sm:$0xff] %v5521_v46  ;;  %v1545_v50 = vmul.f32 %v4847_v61, %v5521_v46  ;;  %v1504_v48 = vadd.f32 %v1502_v10, %v1488_v40 }
 0x4f2   :  { %v4849_v16 = vpop.eup %4848  ;;  %v5524_v55 = vadd.f32 %v1512_v39, %v1504_v48  ;;  %1549 = vrot.lane.b32.xlu0 %v1545_v50, %s4874_s1  ;;  %v993_v48 = vmul.f32 %v5421_v62, %v5418_v54 }
 0x4f4   :  { %7898 = vst [vmem:[#allocation40_spill] sm:$0xff] %v5524_v55  ;;  %v1546_v57 = vmul.f32 %v4849_v16, %v5524_v55 }
 0x4f6   :  { %1551 = vrot.lane.b32.xlu1 %v1546_v57, %s4874_s1  ;;  %1605 = vrot.lane.b32.xlu0 %v5521_v46, %s4874_s1 }
 0x4fa   :  { %1607 = vrot.lane.b32.xlu1 %v5524_v55, %s4874_s1  ;;  %996 = vrot.lane.b32.xlu0 %v992_v63, %s4877_s18 }
 0x4fe   :  { %998 = vrot.lane.b32.xlu1 %v993_v48, %s4877_s18 }
 0x540   :  { %v1334_v39 = vpop.permute.xlu0 %1333 }
 0x541   :  { %v1339_v41 = vmul.f32 %v5377_v53, %v1334_v39 }
 0x543   :  { %1343 = vrot.lane.b32.xlu0 %v1339_v41, %s4872_s11 }
 0x544   :  { %v1336_v44 = vpop.permute.xlu1 %1335  ;;  %v1454_v33 = vpop.permute.xlu0 %1453 }
 0x545   :  { %v1340_v21 = vmul.f32 %v5391_v18, %v1336_v44  ;;  %v1459_v62 = vmul.f32 %v1454_v33, %v5447_v22 }
 0x547   :  { %1345 = vrot.lane.b32.xlu1 %v1340_v21, %s4872_s11  ;;  %1435 = vrot.lane.b32.xlu0 %v5427_v45, %s4875_s16 }
 0x548   :  { %v1456_v25 = vpop.permute.xlu1 %1455 }
 0x549   :  { %v1460_v5 = vmul.f32 %v1456_v25, %v5456_v49 }
 0x54b   :  { %1437 = vrot.lane.b32.xlu1 %v5436_v4, %s4875_s16  ;;  %1443 = vrot.lane.b32.xlu0 %v5434_v7, %s4875_s16 }
 0x54f   :  { %1445 = vrot.lane.b32.xlu1 %v5443_v11, %s4875_s16  ;;  %1463 = vrot.lane.b32.xlu0 %v1459_v62, %s4872_s11 }
 0x553   :  { %1465 = vrot.lane.b32.xlu1 %v1460_v5, %s4872_s11  ;;  %v1529_v5 = vmul.f32 %v4847_v61, %v5507_v2 }
 0x564   :  { %v1550_v3 = vpop.permute.xlu0 %1549 }
 0x565   :  { %v5560_v43 = vmul.f32 %v1550_v3, %v1531_v36 }
 0x567   :  { %7899 = vst [vmem:[#allocation41_spill] sm:$0xff] %v5560_v43 }
 0x568   :  { %v1552_v1 = vpop.permute.xlu1 %1551  ;;  %v5563_v12 = vpop.permute.xlu0 %1605 }
 0x569   :  { %v1611_v30 = vmul.f32 %v5563_v12, %v5560_v43  ;;  %v5569_v56 = vmul.f32 %v1552_v1, %v1532_v23 }
 0x56b   :  { %7900 = vst [vmem:[#allocation42_spill] sm:$0xff] %v5569_v56  ;;  %1615 = vrot.lane.b32.xlu0 %v1611_v30, %s4875_s16 }
 0x56c   :  { %v5572_v40 = vpop.permute.xlu1 %1607  ;;  %v997_v50 = vpop.permute.xlu0 %996 }
 0x56d   :  { %v1612_v10 = vmul.f32 %v5572_v40, %v5569_v56  ;;  %v5582_v57 = vadd.f32 %v997_v50, %v5345_v17  ;;  %v1530_v50 = vmul.f32 %v4849_v16, %v5510_v31 }
 0x56f   :  { %1617 = vrot.lane.b32.xlu1 %v1612_v10, %s4875_s16  ;;  %1359 = vrot.lane.b32.xlu0 %v5484_v0, %s4878_s19  ;;  %v1331_v39 = vmul.f32 %v5377_v53, %v5582_v57 }
 0x570   :  { %v999_v63 = vpop.permute.xlu1 %998 }
 0x571   :  { %v5585_v48 = vadd.f32 %v999_v63, %v5351_v15 }
 0x573   :  { %1361 = vrot.lane.b32.xlu1 %v5491_v13, %s4878_s19  ;;  %v1332_v21 = vmul.f32 %v5391_v18, %v5585_v48 }
 0x5b5   :  { %v1344_v41 = vpop.permute.xlu0 %1343 }
 0x5b6   :  { %v5589_v44 = vadd.f32 %v1344_v41, %v1331_v39 }
 0x5b8   :  { %7901 = vst [vmem:[#allocation43_spill] sm:$0xff] %v5589_v44  ;;  %1559 = vrot.lane.b32.xlu0 %v5589_v44, %s4874_s1 }
 0x5b9   :  { %v1346_v33 = vpop.permute.xlu1 %1345  ;;  %v1436_v62 = vpop.permute.xlu0 %1435 }
 0x5ba   :  { %v5595_v25 = vadd.f32 %v1346_v33, %v1332_v21  ;;  %v1441_v30 = vmul.f32 %v1436_v62, %v5447_v22 }
 0x5bc   :  { %7902 = vst [vmem:[#allocation44_spill] sm:$0xff] %v5595_v25  ;;  %1561 = vrot.lane.b32.xlu1 %v5595_v25, %s4874_s1  ;;  %1537 = vrot.lane.b32.xlu0 %v1529_v5, %s4874_s1 }
 0x5bd   :  { %v1438_v3 = vpop.permute.xlu1 %1437  ;;  %v1444_v1 = vpop.permute.xlu0 %1443 }
 0x5be   :  { %v1449_v10 = vmul.f32 %v1444_v1, %v5497_v47  ;;  %v1442_v41 = vmul.f32 %v1438_v3, %v5456_v49  ;;  %v5627_v3 = vld [vmem:[%s7729_s0 + $0x3] ss:$8 sm:$0x3] }
 0x5c0   :  { %1539 = vrot.lane.b32.xlu1 %v1530_v50, %s4874_s1  ;;  %1595 = vrot.lane.b32.xlu0 %v5507_v2, %s4874_s1  ;;  %v1451_v63 = vadd.f32 %v1449_v10, %v1441_v30 }
 0x5c1   :  { %v1446_v61 = vpop.permute.xlu1 %1445  ;;  %v1464_v39 = vpop.permute.xlu0 %1463 }
 0x5c2   :  { %v1450_v21 = vmul.f32 %v1446_v61, %v5502_v9  ;;  %v1469_v33 = vadd.f32 %v1464_v39, %v1451_v63 }
 0x5c4   :  { %1597 = vrot.lane.b32.xlu1 %v5510_v31, %s4874_s1  ;;  %v1452_v22 = vadd.f32 %v1450_v21, %v1442_v41  ;;  %v5612_v16 = vadd.f32 %v5512_v34, %v1469_v33 }
 0x5c5   :  { %v1466_v47 = vpop.permute.xlu1 %1465 }
 0x5c6   :  { %v1470_v62 = vadd.f32 %v1466_v47, %v1452_v22  ;;  %7903 = vst [vmem:[#allocation45_spill] sm:$0xff] %v5612_v16 }
 0x5c8   :  { %v5615_v5 = vadd.f32 %v5517_v20, %v1470_v62  ;;  %v5639_v20 = vld [vmem:[%s7729_s0 + $0x13] ss:$8 sm:$0x3] }
 0x5ca   :  { %7904 = vst [vmem:[#allocation46_spill] sm:$0xff] %v5615_v5 }
 0x5dd   :  { %v1616_v30 = vpop.permute.xlu0 %1615 }
 0x5de   :  { %v5620_v49 = vsub.f32 %v5612_v16, %v1616_v30 }
 0x5e0   :  { %7905 = vst [vmem:[#allocation47_spill] sm:$0xff] %v5620_v49  ;;  %1984 = vrot.lane.b32.xlu0 %v5620_v49, %s4872_s11 }
 0x5e1   :  { %v1618_v9 = vpop.permute.xlu1 %1617  ;;  %v1360_v10 = vpop.permute.xlu0 %1359 }
 0x5e2   :  { %v5630_v34 = vsub.f32 %v5615_v5, %v1618_v9  ;;  %v1365_v50 = vmul.f32 %v5377_v53, %v1360_v10 }
 0x5e4   :  { %7906 = vst [vmem:[#allocation48_spill] sm:$0xff] %v5630_v34  ;;  %1986 = vrot.lane.b32.xlu1 %v5630_v34, %s4872_s11  ;;  %1964 = vrot.lane.b32.xlu0 %v5627_v3, %s4872_s11 }
 0x5e5   :  { %v1362_v63 = vpop.permute.xlu1 %1361 }
 0x5e6   :  { %v1366_v61 = vmul.f32 %v5391_v18, %v1362_v63 }
 0x5e8   :  { %1966 = vrot.lane.b32.xlu1 %v5639_v20, %s4872_s11  ;;  %2054 = vrot.lane.b32.xlu0 %v5627_v3, %s4874_s1 }
 0x5ec   :  { %2056 = vrot.lane.b32.xlu1 %v5639_v20, %s4874_s1  ;;  %1351 = vrot.lane.b32.xlu0 %v5582_v57, %s4877_s18 }
 0x5f0   :  { %1353 = vrot.lane.b32.xlu1 %v5585_v48, %s4877_s18  ;;  %1369 = vrot.lane.b32.xlu0 %v1365_v50, %s4872_s11 }
 0x5f4   :  { %1371 = vrot.lane.b32.xlu1 %v1366_v61, %s4872_s11 }
 0x62a   :  { %v1560_v39 = vpop.permute.xlu0 %1559 }
 0x62b   :  { %v1565_v41 = vsub.f32 %v5377_v53, %v1560_v39 }
 0x62d   :  { %v1579_v21 = vmul.f32 %v1565_v41, %v5560_v43 }
 0x62e   :  { %v1562_v33 = vpop.permute.xlu1 %1561  ;;  %v1538_v22 = vpop.permute.xlu0 %1537 }
 0x62f   :  { %v1566_v47 = vsub.f32 %v5391_v18, %v1562_v33  ;;  %v5660_v62 = vmul.f32 %v1538_v22, %v1531_v36  ;;  %1583 = vrot.lane.b32.xlu0 %v1579_v21, %s4875_s16 }
 0x631   :  { %7907 = vst [vmem:[#allocation49_spill] sm:$0xff] %v5660_v62  ;;  %v1580_v30 = vmul.f32 %v1566_v47, %v5569_v56  ;;  %v5665_v9 = vmul.f32 %v1565_v41, %v5660_v62  ;;  %v1591_v10 = vsub.f32 1.0, %v5660_v62 }
 0x632   :  { %v1540_v50 = vpop.permute.xlu1 %1539  ;;  %v1596_v63 = vpop.permute.xlu0 %1595 }
 0x633   :  { %v5670_v61 = vmul.f32 %v1540_v50, %v1532_v23  ;;  %v5672_v39 = vmul.f32 %v1596_v63, %v1591_v10  ;;  %1585 = vrot.lane.b32.xlu1 %v1580_v30, %s4875_s16  ;;  %v5684_v22 = vmul.f32 %v5563_v12, %v1591_v10  ;;  %v5703_v12 = vmul.f32 %v5627_v3, %v5627_v3 }
 0x635   :  { %7908 = vst [vmem:[#allocation50_spill] sm:$0xff] %v5670_v61  ;;  %7909 = vst [vmem:[#allocation51_spill] sm:$0xff] %v5672_v39  ;;  %v5676_v36 = vmul.f32 %v1566_v47, %v5670_v61  ;;  %1954 = vrot.lane.b32.xlu0 %v5672_v39, %s4877_s18  ;;  %v1592_v41 = vsub.f32 1.0, %v5670_v61 }
 0x636   :  { %v1598_v33 = vpop.permute.xlu1 %1597  ;;  %7910 = vst [vmem:[#allocation52_spill] sm:$0xff] %v5684_v22 }
 0x637   :  { %v5686_v23 = vmul.f32 %v1598_v33, %v1592_v41  ;;  %v5693_v47 = vmul.f32 %v5572_v40, %v1592_v41  ;;  %v5708_v40 = vmul.f32 %v5639_v20, %v5639_v20 }
 0x639   :  { %7911 = vst [vmem:[#allocation53_spill] sm:$0xff] %v5686_v23  ;;  %1956 = vrot.lane.b32.xlu1 %v5686_v23, %s4877_s18  ;;  %1974 = vrot.lane.b32.xlu0 %v5684_v22, %s4877_s18  ;;  %7912 = vst [vmem:[#allocation54_spill] sm:$0xff] %v5693_v47 }
 0x63d   :  { %1976 = vrot.lane.b32.xlu1 %v5693_v47, %s4877_s18  ;;  %2002 = vrot.lane.b32.xlu0 %v5627_v3, %s4875_s16 }
 0x641   :  { %2004 = vrot.lane.b32.xlu1 %v5639_v20, %s4875_s16 }
 0x652   :  { %v1985_v30 = vpop.permute.xlu0 %1984 }
 0x653   :  { %v1990_v10 = vmul.f32 %v1985_v30, %v5703_v12 }
 0x655   :  { %1994 = vrot.lane.b32.xlu0 %v1990_v10, %s4872_s11 }
 0x656   :  { %v1987_v50 = vpop.permute.xlu1 %1986  ;;  %v1965_v63 = vpop.permute.xlu0 %1964 }
 0x657   :  { %v1991_v41 = vmul.f32 %v1987_v50, %v5708_v40  ;;  %v1970_v6 = vmul.f32 %v5627_v3, %v1965_v63 }
 0x659   :  { %1996 = vrot.lane.b32.xlu1 %v1991_v41, %s4872_s11  ;;  %2092 = vrot.lane.b32.xlu0 %v5627_v3, %s4878_s19 }
 0x65a   :  { %v1967_v33 = vpop.permute.xlu1 %1966  ;;  %v2055_v21 = vpop.permute.xlu0 %2054 }
 0x65b   :  { %v2060_v61 = vmul.f32 %v5627_v3, %v2055_v21  ;;  %v1971_v62 = vmul.f32 %v5639_v20, %v1967_v33 }
 0x65d   :  { %2094 = vrot.lane.b32.xlu1 %v5639_v20, %s4878_s19  ;;  %2046 = vrot.lane.b32.xlu0 %v5627_v3, %s4879_s20  ;;  %v2080_v43 = vmul.f32 %v2060_v61, %v1985_v30 }
 0x65e   :  { %v2057_v10 = vpop.permute.xlu1 %2056  ;;  %v1352_v1 = vpop.permute.xlu0 %1351 }
 0x65f   :  { %v2061_v63 = vmul.f32 %v5639_v20, %v2057_v10  ;;  %v1357_v55 = vmul.f32 %v5377_v53, %v1352_v1  ;;  %v5751_v1 = vmul.f32 2.0, %v1970_v6 }
 0x661   :  { %2048 = vrot.lane.b32.xlu1 %v5639_v20, %s4879_s20  ;;  %2068 = vrot.lane.b32.xlu0 %v1970_v6, %s4872_s11  ;;  %v2081_v33 = vmul.f32 %v2061_v63, %v1987_v50 }
 0x662   :  { %v1354_v41 = vpop.permute.xlu1 %1353  ;;  %v1370_v56 = vpop.permute.xlu0 %1369 }
 0x663   :  { %v1358_v46 = vmul.f32 %v5391_v18, %v1354_v41  ;;  %v5730_v5 = vadd.f32 %v1370_v56, %v1357_v55 }
 0x665   :  { %2070 = vrot.lane.b32.xlu1 %v1971_v62, %s4872_s11  ;;  %2084 = vrot.lane.b32.xlu0 %v2080_v43, %s4872_s11  ;;  %7913 = vst [vmem:[#allocation55_spill] sm:$0xff] %v5730_v5 }
 0x666   :  { %v1372_v21 = vpop.permute.xlu1 %1371 }
 0x667   :  { %v5732_v16 = vadd.f32 %v1372_v21, %v1358_v46 }
 0x669   :  { %7914 = vst [vmem:[#allocation56_spill] sm:$0xff] %v5732_v16  ;;  %2086 = vrot.lane.b32.xlu1 %v2081_v33, %s4872_s11  ;;  %v5754_v33 = vmul.f32 2.0, %v1971_v62 }
 0x6a1   :  { %v1584_v10 = vpop.permute.xlu0 %1583 }
 0x6a2   :  { %v5738_v53 = vadd.f32 %v1584_v10, %v5730_v5 }
 0x6a4   :  { %7915 = vst [vmem:[#allocation57_spill] sm:$0xff] %v5738_v53  ;;  %1908 = vrot.lane.b32.xlu0 %v5738_v53, %s4872_s11 }
 0x6a5   :  { %v1586_v18 = vpop.permute.xlu1 %1585 }
 0x6a6   :  { %v5743_v43 = vadd.f32 %v1586_v18, %v5732_v16 }
 0x6a7   :  { %v1955_v46 = vpop.permute.xlu0 %1954 }
 0x6a8   :  { %1910 = vrot.lane.b32.xlu1 %v5743_v43, %s4872_s11  ;;  %2028 = vrot.lane.b32.xlu0 %v5620_v49, %s4878_s19  ;;  %v1960_v10 = vmul.f32 %v1955_v46, %v5703_v12 }
 0x6ab   :  { %v1957_v55 = vpop.permute.xlu1 %1956  ;;  %v1975_v56 = vpop.permute.xlu0 %1974 }
 0x6ac   :  { %2030 = vrot.lane.b32.xlu1 %v5630_v34, %s4878_s19  ;;  %v1980_v21 = vmul.f32 %v1975_v56, %v5751_v1  ;;  %v1961_v2 = vmul.f32 %v1957_v55, %v5708_v40 }
 0x6ae   :  { %v1982_v16 = vadd.f32 %v1980_v21, %v1960_v10 }
 0x6af   :  { %v1977_v50 = vpop.permute.xlu1 %1976  ;;  %v2003_v41 = vpop.permute.xlu0 %2002 }
 0x6b0   :  { %v1981_v30 = vmul.f32 %v1977_v50, %v5754_v33 }
 0x6b2   :  { %v1983_v6 = vadd.f32 %v1981_v30, %v1961_v2 }
 0x6b3   :  { %v2005_v18 = vpop.permute.xlu1 %2004 }
 0x6c7   :  { %v1995_v5 = vpop.permute.xlu0 %1994 }
 0x6c8   :  { %v2000_v31 = vadd.f32 %v1995_v5, %v1982_v16 }
 0x6ca   :  { %v5759_v49 = vadd.f32 %v2003_v41, %v2000_v31 }
 0x6cb   :  { %v1997_v34 = vpop.permute.xlu1 %1996  ;;  %v2093_v28 = vpop.permute.xlu0 %2092 }
 0x6cc   :  { %7916 = vst [vmem:[#allocation58_spill] sm:$0xff] %v5759_v49  ;;  %v2001_v54 = vadd.f32 %v1997_v34, %v1983_v6  ;;  %v2098_v17 = vadd.f32 %v2093_v28, %v5759_v49  ;;  %v2062_v34 = vmul.f32 %v2060_v61, %v1955_v46 }
 0x6ce   :  { %v5762_v62 = vadd.f32 %v2005_v18, %v2001_v54  ;;  %v2100_v15 = vadd.f32 1e-12, %v2098_v17 }
 0x6cf   :  { %v2095_v7 = vpop.permute.xlu1 %2094  ;;  %v5764_v11 = vpop.permute.xlu0 %2046 }
 0x6d0   :  { %7917 = vst [vmem:[#allocation59_spill] sm:$0xff] %v5762_v62  ;;  %4850 = vrcp.f32 %v2100_v15  ;;  %v2099_v21 = vadd.f32 %v2095_v7, %v5762_v62  ;;  %v2064_v16 = vmul.f32 %v5627_v3, %v5764_v11  ;;  %v2063_v7 = vmul.f32 %v2061_v63, %v1957_v55 }
 0x6d2   :  { %v2101_v31 = vadd.f32 1e-12, %v2099_v21 }
 0x6d3   :  { %v5769_v5 = vpop.permute.xlu1 %2048  ;;  %v2069_v2 = vpop.permute.xlu0 %2068 }
 0x6d4   :  { %4852 = vrcp.f32 %v2101_v31  ;;  %v2065_v28 = vmul.f32 %v5639_v20, %v5769_v5  ;;  %v2074_v54 = vadd.f32 %v2069_v2, %v2064_v16  ;;  %v2106_v16 = vrot.slane %v5627_v3, 1 }
 0x6d6   :  { %v2076_v17 = vmul.f32 %v2074_v54, %v1975_v56  ;;  %v2107_v54 = vrot.slane %v5639_v20, 1 }
 0x6d7   :  { %v2071_v30 = vpop.permute.xlu1 %2070  ;;  %v2085_v15 = vpop.permute.xlu0 %2084 }
 0x6d8   :  { %v2075_v41 = vadd.f32 %v2071_v30, %v2065_v28  ;;  %v2078_v10 = vadd.f32 %v2076_v17, %v2062_v34 }
 0x6da   :  { %v4851_v18 = vpop.eup %4850  ;;  %v2077_v6 = vmul.f32 %v2075_v41, %v1977_v50  ;;  %v5773_v0 = vadd.f32 %v2085_v15, %v2078_v10 }
 0x6db   :  { %v2087_v45 = vpop.permute.xlu1 %2086 }
 0x6dc   :  { %7918 = vst [vmem:[#allocation60_spill] sm:$0xff] %v5773_v0  ;;  %v2120_v21 = vmul.f32 %v4851_v18, %v5773_v0  ;;  %v2079_v13 = vadd.f32 %v2077_v6, %v2063_v7 }
 0x6de   :  { %v4853_v31 = vpop.eup %4852  ;;  %v5776_v4 = vadd.f32 %v2087_v45, %v2079_v13  ;;  %2124 = vrot.lane.b32.xlu0 %v2120_v21, %s4874_s1 }
 0x6e0   :  { %7919 = vst [vmem:[#allocation61_spill] sm:$0xff] %v5776_v4  ;;  %v2121_v61 = vmul.f32 %v4853_v31, %v5776_v4 }
 0x6e2   :  { %2126 = vrot.lane.b32.xlu1 %v2121_v61, %s4874_s1  ;;  %2180 = vrot.lane.b32.xlu0 %v5773_v0, %s4874_s1 }
 0x6e6   :  { %2182 = vrot.lane.b32.xlu1 %v5776_v4, %s4874_s1  ;;  %1571 = vrot.lane.b32.xlu0 %v5665_v9, %s4877_s18 }
 0x6ea   :  { %1573 = vrot.lane.b32.xlu1 %v5676_v36, %s4877_s18 }
 0x716   :  { %v1909_v45 = vpop.permute.xlu0 %1908 }
 0x717   :  { %v1914_v13 = vmul.f32 %v5627_v3, %v1909_v45 }
 0x719   :  { %1918 = vrot.lane.b32.xlu0 %v1914_v13, %s4872_s11 }
 0x71a   :  { %v1911_v63 = vpop.permute.xlu1 %1910  ;;  %v2029_v56 = vpop.permute.xlu0 %2028 }
 0x71b   :  { %v1915_v55 = vmul.f32 %v5639_v20, %v1911_v63  ;;  %v2034_v9 = vmul.f32 %v2029_v56, %v5703_v12 }
 0x71d   :  { %1920 = vrot.lane.b32.xlu1 %v1915_v55, %s4872_s11  ;;  %2010 = vrot.lane.b32.xlu0 %v5672_v39, %s4875_s16 }
 0x71e   :  { %v2031_v36 = vpop.permute.xlu1 %2030 }
 0x71f   :  { %v2035_v50 = vmul.f32 %v2031_v36, %v5708_v40 }
 0x721   :  { %2012 = vrot.lane.b32.xlu1 %v5686_v23, %s4875_s16  ;;  %2018 = vrot.lane.b32.xlu0 %v5684_v22, %s4875_s16 }
 0x725   :  { %2020 = vrot.lane.b32.xlu1 %v5693_v47, %s4875_s16  ;;  %2038 = vrot.lane.b32.xlu0 %v2034_v9, %s4872_s11 }
 0x729   :  { %2040 = vrot.lane.b32.xlu1 %v2035_v50, %s4872_s11  ;;  %v2104_v50 = vmul.f32 %v4851_v18, %v5759_v49 }
 0x750   :  { %v2125_v2 = vpop.permute.xlu0 %2124 }
 0x751   :  { %v5810_v28 = vmul.f32 %v2125_v2, %v2106_v16 }
 0x753   :  { %7920 = vst [vmem:[#allocation62_spill] sm:$0xff] %v5810_v28 }
 0x754   :  { %v2127_v34 = vpop.permute.xlu1 %2126  ;;  %v5813_v17 = vpop.permute.xlu0 %2180 }
 0x755   :  { %v2186_v30 = vmul.f32 %v5813_v17, %v5810_v28  ;;  %v5819_v41 = vmul.f32 %v2127_v34, %v2107_v54 }
 0x757   :  { %7921 = vst [vmem:[#allocation63_spill] sm:$0xff] %v5819_v41  ;;  %2190 = vrot.lane.b32.xlu0 %v2186_v30, %s4875_s16 }
 0x758   :  { %v5822_v10 = vpop.permute.xlu1 %2182  ;;  %v1572_v7 = vpop.permute.xlu0 %1571 }
 0x759   :  { %v2187_v15 = vmul.f32 %v5822_v10, %v5819_v41  ;;  %v5832_v6 = vadd.f32 %v1572_v7, %v5589_v44  ;;  %v2105_v7 = vmul.f32 %v4853_v31, %v5762_v62 }
 0x75b   :  { %2192 = vrot.lane.b32.xlu1 %v2187_v15, %s4875_s16  ;;  %1934 = vrot.lane.b32.xlu0 %v5738_v53, %s4878_s19  ;;  %7922 = vst [vmem:[#allocation64_spill] sm:$0xff] %v5832_v6  ;;  %v1906_v45 = vmul.f32 %v5627_v3, %v5832_v6 }
 0x75c   :  { %v1574_v21 = vpop.permute.xlu1 %1573 }
 0x75d   :  { %v5835_v61 = vadd.f32 %v1574_v21, %v5595_v25 }
 0x75f   :  { %1936 = vrot.lane.b32.xlu1 %v5743_v43, %s4878_s19  ;;  %7923 = vst [vmem:[#allocation65_spill] sm:$0xff] %v5835_v61  ;;  %v1907_v55 = vmul.f32 %v5639_v20, %v5835_v61 }
 0x78b   :  { %v1919_v13 = vpop.permute.xlu0 %1918 }
 0x78c   :  { %v5839_v63 = vadd.f32 %v1919_v13, %v1906_v45  ;;  %v5860_v13 = vld [vmem:[%s7729_s0 + $0x4] ss:$8 sm:$0x3] }
 0x78e   :  { %7924 = vst [vmem:[#allocation66_spill] sm:$0xff] %v5839_v63  ;;  %2134 = vrot.lane.b32.xlu0 %v5839_v63, %s4874_s1 }
 0x78f   :  { %v1921_v56 = vpop.permute.xlu1 %1920  ;;  %v2011_v9 = vpop.permute.xlu0 %2010 }
 0x790   :  { %v5845_v36 = vadd.f32 %v1921_v56, %v1907_v55  ;;  %v2016_v30 = vmul.f32 %v2011_v9, %v5703_v12  ;;  %v5871_v9 = vld [vmem:[%s7729_s0 + $0x14] ss:$8 sm:$0x3] }
 0x792   :  { %7925 = vst [vmem:[#allocation67_spill] sm:$0xff] %v5845_v36  ;;  %2136 = vrot.lane.b32.xlu1 %v5845_v36, %s4874_s1  ;;  %2112 = vrot.lane.b32.xlu0 %v2104_v50, %s4874_s1 }
 0x793   :  { %v2013_v2 = vpop.permute.xlu1 %2012  ;;  %v2019_v34 = vpop.permute.xlu0 %2018 }
 0x794   :  { %v2024_v15 = vmul.f32 %v2019_v34, %v5751_v1  ;;  %v2017_v55 = vmul.f32 %v2013_v2, %v5708_v40 }
 0x796   :  { %2114 = vrot.lane.b32.xlu1 %v2105_v7, %s4874_s1  ;;  %2170 = vrot.lane.b32.xlu0 %v5759_v49, %s4874_s1  ;;  %v2026_v21 = vadd.f32 %v2024_v15, %v2016_v30 }
 0x797   :  { %v2021_v18 = vpop.permute.xlu1 %2020  ;;  %v2039_v45 = vpop.permute.xlu0 %2038 }
 0x798   :  { %v2025_v12 = vmul.f32 %v2021_v18, %v5754_v33  ;;  %v2044_v1 = vadd.f32 %v2039_v45, %v2026_v21 }
 0x79a   :  { %2172 = vrot.lane.b32.xlu1 %v5762_v62, %s4874_s1  ;;  %v2027_v31 = vadd.f32 %v2025_v12, %v2017_v55  ;;  %2539 = vrot.lane.b32.xlu0 %v5860_v13, %s4872_s11  ;;  %v5874_v34 = vadd.f32 %v5764_v11, %v2044_v1 }
 0x79b   :  { %v2041_v56 = vpop.permute.xlu1 %2040 }
 0x79c   :  { %v2045_v50 = vadd.f32 %v2041_v56, %v2027_v31  ;;  %7926 = vst [vmem:[#allocation68_spill] sm:$0xff] %v5874_v34 }
 0x79e   :  { %2541 = vrot.lane.b32.xlu1 %v5871_v9, %s4872_s11  ;;  %v5879_v40 = vadd.f32 %v5769_v5, %v2045_v50 }
 0x7a0   :  { %7927 = vst [vmem:[#allocation69_spill] sm:$0xff] %v5879_v40 }
 0x7c9   :  { %v2191_v2 = vpop.permute.xlu0 %2190 }
 0x7ca   :  { %v5884_v30 = vsub.f32 %v5874_v34, %v2191_v2 }
 0x7cc   :  { %7928 = vst [vmem:[#allocation70_spill] sm:$0xff] %v5884_v30  ;;  %2559 = vrot.lane.b32.xlu0 %v5884_v30, %s4872_s11 }
 0x7cd   :  { %v2193_v15 = vpop.permute.xlu1 %2192  ;;  %v1935_v7 = vpop.permute.xlu0 %1934 }
 0x7ce   :  { %v5889_v11 = vsub.f32 %v5879_v40, %v2193_v15  ;;  %v1940_v5 = vmul.f32 %v5627_v3, %v1935_v7 }
 0x7d0   :  { %7929 = vst [vmem:[#allocation71_spill] sm:$0xff] %v5889_v11  ;;  %2561 = vrot.lane.b32.xlu1 %v5889_v11, %s4872_s11  ;;  %1926 = vrot.lane.b32.xlu0 %v5832_v6, %s4877_s18 }
 0x7d1   :  { %v1937_v21 = vpop.permute.xlu1 %1936 }
 0x7d2   :  { %v1941_v18 = vmul.f32 %v5639_v20, %v1937_v21 }
 0x7d4   :  { %1928 = vrot.lane.b32.xlu1 %v5835_v61, %s4877_s18  ;;  %1944 = vrot.lane.b32.xlu0 %v1940_v5, %s4872_s11 }
 0x7d8   :  { %1946 = vrot.lane.b32.xlu1 %v1941_v18, %s4872_s11  ;;  %2629 = vrot.lane.b32.xlu0 %v5860_v13, %s4874_s1 }
 0x7dc   :  { %2631 = vrot.lane.b32.xlu1 %v5871_v9, %s4874_s1 }
 0x800   :  { %v2135_v45 = vpop.permute.xlu0 %2134 }
 0x801   :  { %v2140_v55 = vsub.f32 %v5627_v3, %v2135_v45 }
 0x803   :  { %v2154_v12 = vmul.f32 %v2140_v55, %v5810_v28 }
 0x804   :  { %v2137_v1 = vpop.permute.xlu1 %2136  ;;  %v2113_v31 = vpop.permute.xlu0 %2112 }
 0x805   :  { %v2141_v56 = vsub.f32 %v5639_v20, %v2137_v1  ;;  %v5910_v50 = vmul.f32 %v2113_v31, %v2106_v16  ;;  %2158 = vrot.lane.b32.xlu0 %v2154_v12, %s4875_s16 }
 0x807   :  { %7930 = vst [vmem:[#allocation72_spill] sm:$0xff] %v5910_v50  ;;  %v2155_v2 = vmul.f32 %v2141_v56, %v5819_v41  ;;  %v2142_v15 = vmul.f32 %v2140_v55, %v5910_v50  ;;  %v2166_v7 = vsub.f32 1.0, %v5910_v50 }
 0x808   :  { %v2115_v5 = vpop.permute.xlu1 %2114  ;;  %v2171_v21 = vpop.permute.xlu0 %2170 }
 0x809   :  { %v5918_v18 = vmul.f32 %v2115_v5, %v2107_v54  ;;  %v5920_v45 = vmul.f32 %v2171_v21, %v2166_v7  ;;  %2160 = vrot.lane.b32.xlu1 %v2155_v2, %s4875_s16  ;;  %v5930_v31 = vmul.f32 %v5813_v17, %v2166_v7  ;;  %v5949_v2 = vmul.f32 %v5860_v13, %v5860_v13 }
 0x80b   :  { %7931 = vst [vmem:[#allocation73_spill] sm:$0xff] %v5918_v18  ;;  %7932 = vst [vmem:[#allocation74_spill] sm:$0xff] %v5920_v45  ;;  %v2143_v16 = vmul.f32 %v2141_v56, %v5918_v18  ;;  %2529 = vrot.lane.b32.xlu0 %v5920_v45, %s4877_s18  ;;  %v2167_v55 = vsub.f32 1.0, %v5918_v18 }
 0x80c   :  { %v2173_v1 = vpop.permute.xlu1 %2172  ;;  %7933 = vst [vmem:[#allocation75_spill] sm:$0xff] %v5930_v31  ;;  %v2540_v17 = vpop.permute.xlu0 %2539 }
 0x80d   :  { %v5932_v54 = vmul.f32 %v2173_v1, %v2167_v55  ;;  %v5939_v56 = vmul.f32 %v5822_v10, %v2167_v55  ;;  %v5954_v10 = vmul.f32 %v5871_v9, %v5871_v9  ;;  %v2545_v28 = vmul.f32 %v5860_v13, %v2540_v17 }
 0x80f   :  { %7934 = vst [vmem:[#allocation76_spill] sm:$0xff] %v5932_v54  ;;  %2531 = vrot.lane.b32.xlu1 %v5932_v54, %s4877_s18  ;;  %2549 = vrot.lane.b32.xlu0 %v5930_v31, %s4877_s18  ;;  %7935 = vst [vmem:[#allocation77_spill] sm:$0xff] %v5939_v56  ;;  %v5997_v40 = vmul.f32 2.0, %v2545_v28 }
 0x810   :  { %v2542_v7 = vpop.permute.xlu1 %2541 }
 0x811   :  { %v2546_v18 = vmul.f32 %v5871_v9, %v2542_v7 }
 0x813   :  { %2551 = vrot.lane.b32.xlu1 %v5939_v56, %s4877_s18  ;;  %2577 = vrot.lane.b32.xlu0 %v5860_v13, %s4875_s16 }
 0x817   :  { %2579 = vrot.lane.b32.xlu1 %v5871_v9, %s4875_s16 }
 0x83e   :  { %v2560_v5 = vpop.permute.xlu0 %2559 }
 0x83f   :  { %v2565_v21 = vmul.f32 %v2560_v5, %v5949_v2 }
 0x841   :  { %2569 = vrot.lane.b32.xlu0 %v2565_v21, %s4872_s11 }
 0x842   :  { %v2562_v55 = vpop.permute.xlu1 %2561  ;;  %v1927_v1 = vpop.permute.xlu0 %1926 }
 0x843   :  { %v2566_v46 = vmul.f32 %v2562_v55, %v5954_v10  ;;  %v1932_v41 = vmul.f32 %v5627_v3, %v1927_v1 }
 0x845   :  { %2571 = vrot.lane.b32.xlu1 %v2566_v46, %s4872_s11  ;;  %2667 = vrot.lane.b32.xlu0 %v5860_v13, %s4878_s19 }
 0x846   :  { %v1929_v12 = vpop.permute.xlu1 %1928  ;;  %v1945_v33 = vpop.permute.xlu0 %1944 }
 0x847   :  { %v1933_v4 = vmul.f32 %v5639_v20, %v1929_v12  ;;  %v5968_v0 = vadd.f32 %v1945_v33, %v1932_v41 }
 0x849   :  { %2669 = vrot.lane.b32.xlu1 %v5871_v9, %s4878_s19  ;;  %2621 = vrot.lane.b32.xlu0 %v5860_v13, %s4879_s20  ;;  %7936 = vst [vmem:[#allocation78_spill] sm:$0xff] %v5968_v0 }
 0x84a   :  { %v1947_v21 = vpop.permute.xlu1 %1946  ;;  %v2630_v3 = vpop.permute.xlu0 %2629 }
 0x84b   :  { %v5970_v46 = vadd.f32 %v1947_v21, %v1933_v4  ;;  %v2635_v41 = vmul.f32 %v5860_v13, %v2630_v3 }
 0x84d   :  { %7937 = vst [vmem:[#allocation79_spill] sm:$0xff] %v5970_v46  ;;  %2623 = vrot.lane.b32.xlu1 %v5871_v9, %s4879_s20  ;;  %2643 = vrot.lane.b32.xlu0 %v2545_v28, %s4872_s11  ;;  %v2655_v7 = vmul.f32 %v2635_v41, %v2560_v5 }
 0x84e   :  { %v2632_v20 = vpop.permute.xlu1 %2631 }
 0x84f   :  { %v2636_v1 = vmul.f32 %v5871_v9, %v2632_v20 }
 0x851   :  { %2645 = vrot.lane.b32.xlu1 %v2546_v18, %s4872_s11  ;;  %v2656_v17 = vmul.f32 %v2636_v1, %v2562_v55 }
 0x877   :  { %v2159_v12 = vpop.permute.xlu0 %2158 }
 0x878   :  { %v5981_v4 = vadd.f32 %v2159_v12, %v5968_v0 }
 0x87a   :  { %7938 = vst [vmem:[#allocation80_spill] sm:$0xff] %v5981_v4  ;;  %2483 = vrot.lane.b32.xlu0 %v5981_v4, %s4872_s11 }
 0x87b   :  { %v2161_v33 = vpop.permute.xlu1 %2160 }
 0x87c   :  { %v5987_v21 = vadd.f32 %v2161_v33, %v5970_v46 }
 0x87d   :  { %v2530_v5 = vpop.permute.xlu0 %2529 }
 0x87e   :  { %7939 = vst [vmem:[#allocation81_spill] sm:$0xff] %v5987_v21  ;;  %2485 = vrot.lane.b32.xlu1 %v5987_v21, %s4872_s11  ;;  %2659 = vrot.lane.b32.xlu0 %v2655_v7, %s4872_s11  ;;  %v5999_v7 = vmul.f32 2.0, %v2546_v18 }
 0x881   :  { %v2532_v3 = vpop.permute.xlu1 %2531  ;;  %v2550_v20 = vpop.permute.xlu0 %2549 }
 0x882   :  { %2661 = vrot.lane.b32.xlu1 %v2656_v17, %s4872_s11  ;;  %2146 = vrot.lane.b32.xlu0 %v2142_v15, %s4877_s18  ;;  %v2555_v55 = vmul.f32 %v2550_v20, %v5997_v40  ;;  %v2535_v15 = vmul.f32 %v2530_v5, %v5949_v2  ;;  %v2536_v46 = vmul.f32 %v2532_v3, %v5954_v10 }
 0x883   :  { %v2638_v61 = vmul.f32 %v2636_v1, %v2532_v3 }
 0x884   :  { %v2557_v0 = vadd.f32 %v2555_v55, %v2535_v15 }
 0x885   :  { %v2552_v12 = vpop.permute.xlu1 %2551  ;;  %v2578_v33 = vpop.permute.xlu0 %2577 }
 0x886   :  { %2148 = vrot.lane.b32.xlu1 %v2143_v16, %s4877_s18  ;;  %v2556_v16 = vmul.f32 %v2552_v12, %v5999_v7 }
 0x889   :  { %v2580_v50 = vpop.permute.xlu1 %2579 }
 0x88a   :  { %2605 = vrot.lane.b32.xlu1 %v5889_v11, %s4878_s19  ;;  %v2558_v11 = vadd.f32 %v2556_v16, %v2536_v46 }
 0x8b3   :  { %v2570_v34 = vpop.permute.xlu0 %2569 }
 0x8b4   :  { %v2575_v62 = vadd.f32 %v2570_v34, %v2557_v0 }
 0x8b6   :  { %v6005_v28 = vadd.f32 %v2578_v33, %v2575_v62  ;;  %v2637_v33 = vmul.f32 %v2635_v41, %v2530_v5 }
 0x8b7   :  { %v2572_v17 = vpop.permute.xlu1 %2571  ;;  %v2668_v49 = vpop.permute.xlu0 %2667 }
 0x8b8   :  { %v2576_v44 = vadd.f32 %v2572_v17, %v2558_v11  ;;  %7940 = vst [vmem:[#allocation82_spill] sm:$0xff] %v6005_v28  ;;  %v2673_v47 = vadd.f32 %v2668_v49, %v6005_v28 }
 0x8ba   :  { %v6009_v18 = vadd.f32 %v2580_v50, %v2576_v44  ;;  %v2675_v0 = vadd.f32 1e-12, %v2673_v47 }
 0x8bb   :  { %v2670_v25 = vpop.permute.xlu1 %2669  ;;  %v6007_v22 = vpop.permute.xlu0 %2621 }
 0x8bc   :  { %7941 = vst [vmem:[#allocation83_spill] sm:$0xff] %v6009_v18  ;;  %v2639_v23 = vmul.f32 %v5860_v13, %v6007_v22  ;;  %v2674_v55 = vadd.f32 %v2670_v25, %v6009_v18  ;;  %4854 = vrcp.f32 %v2675_v0 }
 0x8be   :  { %v2676_v11 = vadd.f32 1e-12, %v2674_v55 }
 0x8bf   :  { %v6012_v39 = vpop.permute.xlu1 %2623  ;;  %v2644_v15 = vpop.permute.xlu0 %2643 }
 0x8c0   :  { %v2640_v34 = vmul.f32 %v5871_v9, %v6012_v39  ;;  %v2649_v62 = vadd.f32 %v2644_v15, %v2639_v23  ;;  %4856 = vrcp.f32 %v2676_v11 }
 0x8c2   :  { %v2651_v44 = vmul.f32 %v2649_v62, %v2550_v20 }
 0x8c3   :  { %v2646_v46 = vpop.permute.xlu1 %2645 }
 0x8c4   :  { %v2650_v50 = vadd.f32 %v2646_v46, %v2640_v34  ;;  %v2653_v25 = vadd.f32 %v2651_v44, %v2637_v33 }
 0x8c6   :  { %v2652_v17 = vmul.f32 %v2650_v50, %v2552_v12  ;;  %v4855_v41 = vpop.eup %4854 }
 0x8c8   :  { %v2654_v20 = vadd.f32 %v2652_v17, %v2638_v61  ;;  %v2681_v17 = vrot.slane %v5860_v13, 1 }
 0x8ca   :  { %v4857_v15 = vpop.eup %4856 }
 0x8ec   :  { %v2484_v49 = vpop.permute.xlu0 %2483 }
 0x8ed   :  { %v2489_v16 = vmul.f32 %v5860_v13, %v2484_v49 }
 0x8ef   :  { %2493 = vrot.lane.b32.xlu0 %v2489_v16, %s4872_s11 }
 0x8f0   :  { %v2486_v6 = vpop.permute.xlu1 %2485  ;;  %v2660_v47 = vpop.permute.xlu0 %2659 }
 0x8f1   :  { %v2490_v53 = vmul.f32 %v5871_v9, %v2486_v6  ;;  %v6022_v23 = vadd.f32 %v2660_v47, %v2653_v25 }
 0x8f3   :  { %7942 = vst [vmem:[#allocation84_spill] sm:$0xff] %v6022_v23  ;;  %2495 = vrot.lane.b32.xlu1 %v2490_v53, %s4872_s11  ;;  %2603 = vrot.lane.b32.xlu0 %v5884_v30, %s4878_s19  ;;  %v2695_v12 = vmul.f32 %v4855_v41, %v6022_v23 }
 0x8f4   :  { %v2662_v5 = vpop.permute.xlu1 %2661  ;;  %v2147_v53 = vpop.permute.xlu0 %2146 }
 0x8f5   :  { %v6028_v55 = vadd.f32 %v2662_v5, %v2654_v20  ;;  %v6052_v1 = vadd.f32 %v2147_v53, %v5839_v63  ;;  %v2682_v20 = vrot.slane %v5871_v9, 1 }
 0x8f7   :  { %7943 = vst [vmem:[#allocation85_spill] sm:$0xff] %v6028_v55  ;;  %v2696_v0 = vmul.f32 %v4857_v15, %v6028_v55  ;;  %2699 = vrot.lane.b32.xlu0 %v2695_v12, %s4874_s1  ;;  %v2481_v34 = vmul.f32 %v5860_v13, %v6052_v1 }
 0x8f8   :  { %v2149_v61 = vpop.permute.xlu1 %2148 }
 0x8f9   :  { %2701 = vrot.lane.b32.xlu1 %v2696_v0, %s4874_s1  ;;  %v6055_v3 = vadd.f32 %v2149_v61, %v5845_v36 }
 0x8fb   :  { %2755 = vrot.lane.b32.xlu0 %v6022_v23, %s4874_s1  ;;  %v2482_v44 = vmul.f32 %v5871_v9, %v6055_v3 }
 0x8fc   :  { %v2606_v62 = vpop.permute.xlu1 %2605 }
 0x8fd   :  { %2757 = vrot.lane.b32.xlu1 %v6028_v55, %s4874_s1  ;;  %v2610_v47 = vmul.f32 %v2606_v62, %v5954_v10 }
 0x8ff   :  { %2585 = vrot.lane.b32.xlu0 %v5920_v45, %s4875_s16 }
 0x901   :  { %2587 = vrot.lane.b32.xlu1 %v5932_v54, %s4875_s16 }
 0x903   :  { %2593 = vrot.lane.b32.xlu0 %v5930_v31, %s4875_s16 }
 0x905   :  { %2595 = vrot.lane.b32.xlu1 %v5939_v56, %s4875_s16 }
 0x907   :  { %2509 = vrot.lane.b32.xlu0 %v5981_v4, %s4878_s19 }
 0x909   :  { %2511 = vrot.lane.b32.xlu1 %v5987_v21, %s4878_s19 }
 0x961   :  { %v2494_v11 = vpop.permute.xlu0 %2493 }
 0x962   :  { %v6059_v46 = vadd.f32 %v2494_v11, %v2481_v34 }
 0x964   :  { %7944 = vst [vmem:[#allocation86_spill] sm:$0xff] %v6059_v46  ;;  %2709 = vrot.lane.b32.xlu0 %v6059_v46, %s4874_s1 }
 0x965   :  { %v2496_v50 = vpop.permute.xlu1 %2495  ;;  %v2604_v49 = vpop.permute.xlu0 %2603 }
 0x966   :  { %v6065_v33 = vadd.f32 %v2496_v50, %v2482_v44  ;;  %v2609_v16 = vmul.f32 %v2604_v49, %v5949_v2  ;;  %v2679_v44 = vmul.f32 %v4855_v41, %v6005_v28  ;;  %v2680_v49 = vmul.f32 %v4857_v15, %v6009_v18 }
 0x968   :  { %7945 = vst [vmem:[#allocation87_spill] sm:$0xff] %v6065_v33  ;;  %2711 = vrot.lane.b32.xlu1 %v6065_v33, %s4874_s1  ;;  %2613 = vrot.lane.b32.xlu0 %v2609_v16, %s4872_s11 }
 0x969   :  { %v2700_v25 = vpop.permute.xlu0 %2699 }
 0x96a   :  { %v6074_v12 = vmul.f32 %v2700_v25, %v2681_v17 }
 0x96b   :  { %v2702_v5 = vpop.permute.xlu1 %2701 }
 0x96c   :  { %7946 = vst [vmem:[#allocation88_spill] sm:$0xff] %v6074_v12  ;;  %2615 = vrot.lane.b32.xlu1 %v2610_v47, %s4872_s11  ;;  %v6079_v53 = vmul.f32 %v2702_v5, %v2682_v20 }
 0x96d   :  { %v6077_v0 = vpop.permute.xlu0 %2755 }
 0x96e   :  { %7947 = vst [vmem:[#allocation89_spill] sm:$0xff] %v6079_v53  ;;  %v2761_v61 = vmul.f32 %v6077_v0, %v6074_v12 }
 0x96f   :  { %v6083_v34 = vpop.permute.xlu1 %2757 }
 0x970   :  { %v2762_v11 = vmul.f32 %v6083_v34, %v6079_v53  ;;  %2765 = vrot.lane.b32.xlu0 %v2761_v61, %s4875_s16 }
 0x971   :  { %v2586_v62 = vpop.permute.xlu0 %2585 }
 0x972   :  { %2767 = vrot.lane.b32.xlu1 %v2762_v11, %s4875_s16 }
 0x973   :  { %v2588_v50 = vpop.permute.xlu1 %2587 }
 0x974   :  { %2687 = vrot.lane.b32.xlu0 %v2679_v44, %s4874_s1 }
 0x975   :  { %v2594_v16 = vpop.permute.xlu0 %2593 }
 0x976   :  { %2689 = vrot.lane.b32.xlu1 %v2680_v49, %s4874_s1  ;;  %v2599_v11 = vmul.f32 %v2594_v16, %v5997_v40  ;;  %v2591_v49 = vmul.f32 %v2586_v62, %v5949_v2 }
 0x977   :  { %v2596_v25 = vpop.permute.xlu1 %2595 }
 0x978   :  { %2501 = vrot.lane.b32.xlu0 %v6052_v1, %s4877_s18  ;;  %v2601_v23 = vadd.f32 %v2599_v11, %v2591_v49 }
 0x979   :  { %v2510_v47 = vpop.permute.xlu0 %2509 }
 0x97a   :  { %v2515_v5 = vmul.f32 %v5860_v13, %v2510_v47  ;;  %2503 = vrot.lane.b32.xlu1 %v6055_v3, %s4877_s18  ;;  %v2600_v47 = vmul.f32 %v2596_v25, %v5999_v7 }
 0x97b   :  { %v2512_v61 = vpop.permute.xlu1 %2511 }
 0x97c   :  { %v2516_v41 = vmul.f32 %v5871_v9, %v2512_v61  ;;  %2519 = vrot.lane.b32.xlu0 %v2515_v5, %s4872_s11 }
 0x97e   :  { %2521 = vrot.lane.b32.xlu1 %v2516_v41, %s4872_s11  ;;  %v2592_v41 = vmul.f32 %v2588_v50, %v5954_v10 }
 0x980   :  { %2745 = vrot.lane.b32.xlu0 %v6005_v28, %s4874_s1  ;;  %v2602_v16 = vadd.f32 %v2600_v47, %v2592_v41 }
 0x982   :  { %2747 = vrot.lane.b32.xlu1 %v6009_v18, %s4874_s1 }
 0x9d6   :  { %v2710_v15 = vpop.permute.xlu0 %2709 }
 0x9d7   :  { %v2715_v44 = vsub.f32 %v5860_v13, %v2710_v15 }
 0x9d9   :  { %v2729_v61 = vmul.f32 %v2715_v44, %v6074_v12 }
 0x9da   :  { %v2712_v5 = vpop.permute.xlu1 %2711  ;;  %v2614_v6 = vpop.permute.xlu0 %2613 }
 0x9db   :  { %v2716_v55 = vsub.f32 %v5871_v9, %v2712_v5  ;;  %2733 = vrot.lane.b32.xlu0 %v2729_v61, %s4875_s16  ;;  %v2619_v40 = vadd.f32 %v2614_v6, %v2601_v23  ;;  %v6143_v6 = vld [vmem:[%s7729_s0 + $0x15] ss:$8 sm:$0x3] }
 0x9dd   :  { %v2730_v28 = vmul.f32 %v2716_v55, %v6079_v53  ;;  %v6116_v2 = vadd.f32 %v6007_v22, %v2619_v40 }
 0x9de   :  { %v2616_v15 = vpop.permute.xlu1 %2615 }
 0x9df   :  { %v2620_v18 = vadd.f32 %v2616_v15, %v2602_v16  ;;  %2735 = vrot.lane.b32.xlu1 %v2730_v28, %s4875_s16  ;;  %7948 = vst [vmem:[#allocation90_spill] sm:$0xff] %v6116_v2 }
 0x9e1   :  { %v6119_v7 = vadd.f32 %v6012_v39, %v2620_v18  ;;  %v6134_v39 = vld [vmem:[%s7729_s0 + $0x5] ss:$8 sm:$0x3] }
 0x9e2   :  { %v2766_v10 = vpop.permute.xlu0 %2765 }
 0x9e3   :  { %7949 = vst [vmem:[#allocation91_spill] sm:$0xff] %v6119_v7  ;;  %v6122_v62 = vsub.f32 %v6116_v2, %v2766_v10 }
 0x9e4   :  { %v2768_v25 = vpop.permute.xlu1 %2767 }
 0x9e5   :  { %7950 = vst [vmem:[#allocation92_spill] sm:$0xff] %v6122_v62  ;;  %v6127_v23 = vsub.f32 %v6119_v7, %v2768_v25  ;;  %3134 = vrot.lane.b32.xlu0 %v6122_v62, %s4872_s11 }
 0x9e6   :  { %v2688_v28 = vpop.permute.xlu0 %2687 }
 0x9e7   :  { %7951 = vst [vmem:[#allocation93_spill] sm:$0xff] %v6127_v23  ;;  %v6136_v22 = vmul.f32 %v2688_v28, %v2681_v17  ;;  %3136 = vrot.lane.b32.xlu1 %v6127_v23, %s4872_s11 }
 0x9e8   :  { %v2690_v18 = vpop.permute.xlu1 %2689 }
 0x9e9   :  { %7952 = vst [vmem:[#allocation94_spill] sm:$0xff] %v6136_v22  ;;  %v2717_v11 = vmul.f32 %v2715_v44, %v6136_v22  ;;  %v6146_v49 = vmul.f32 %v2690_v18, %v2682_v20  ;;  %3114 = vrot.lane.b32.xlu0 %v6134_v39, %s4872_s11  ;;  %v2741_v44 = vsub.f32 1.0, %v6136_v22 }
 0x9ea   :  { %v2502_v47 = vpop.permute.xlu0 %2501 }
 0x9eb   :  { %7953 = vst [vmem:[#allocation95_spill] sm:$0xff] %v6146_v49  ;;  %v2718_v17 = vmul.f32 %v2716_v55, %v6146_v49  ;;  %3116 = vrot.lane.b32.xlu1 %v6143_v6, %s4872_s11  ;;  %v2742_v55 = vsub.f32 1.0, %v6146_v49  ;;  %v6168_v25 = vmul.f32 %v6077_v0, %v2741_v44  ;;  %v2507_v18 = vmul.f32 %v5860_v13, %v2502_v47 }
 0x9ec   :  { %v2504_v5 = vpop.permute.xlu1 %2503  ;;  %v6201_v13 = vmul.f32 %v6134_v39, %v6134_v39 }
 0x9ed   :  { %3204 = vrot.lane.b32.xlu0 %v6134_v39, %s4874_s1  ;;  %7956 = vst [vmem:[#allocation98_spill] sm:$0xff] %v6168_v25  ;;  %v6173_v28 = vmul.f32 %v6083_v34, %v2742_v55 }
 0x9ee   :  { %v2520_v41 = vpop.permute.xlu0 %2519 }
 0x9ef   :  { %3206 = vrot.lane.b32.xlu1 %v6143_v6, %s4874_s1  ;;  %7957 = vst [vmem:[#allocation99_spill] sm:$0xff] %v6173_v28 }
 0x9f0   :  { %v2522_v20 = vpop.permute.xlu1 %2521 }
 0x9f2   :  { %v2746_v40 = vpop.permute.xlu0 %2745 }
 0x9f3   :  { %v6160_v16 = vmul.f32 %v2746_v40, %v2741_v44  ;;  %v6182_v40 = vadd.f32 %v2520_v41, %v2507_v18  ;;  %v2508_v44 = vmul.f32 %v5871_v9, %v2504_v5  ;;  %v6205_v9 = vmul.f32 %v6143_v6, %v6143_v6 }
 0x9f4   :  { %v2748_v15 = vpop.permute.xlu1 %2747 }
 0x9f5   :  { %7954 = vst [vmem:[#allocation96_spill] sm:$0xff] %v6160_v16  ;;  %v6163_v10 = vmul.f32 %v2748_v15, %v2742_v55  ;;  %3104 = vrot.lane.b32.xlu0 %v6160_v16, %s4877_s18  ;;  %7958 = vst [vmem:[#allocation100_spill] sm:$0xff] %v6182_v40  ;;  %v6188_v34 = vadd.f32 %v2522_v20, %v2508_v44 }
 0x9f7   :  { %7955 = vst [vmem:[#allocation97_spill] sm:$0xff] %v6163_v10  ;;  %3106 = vrot.lane.b32.xlu1 %v6163_v10, %s4877_s18  ;;  %7960 = vst [vmem:[#allocation102_spill] sm:$0xff] %v6188_v34 }
 0x9f9   :  { %3124 = vrot.lane.b32.xlu0 %v6168_v25, %s4877_s18 }
 0x9fb   :  { %3126 = vrot.lane.b32.xlu1 %v6173_v28, %s4877_s18 }
 0x9ff   :  { %3154 = vrot.lane.b32.xlu1 %v6143_v6, %s4875_s16 }
 0xa4d   :  { %v2734_v0 = vpop.permute.xlu0 %2733 }
 0xa4e   :  { %v6186_v15 = vadd.f32 %v2734_v0, %v6182_v40 }
 0xa50   :  { %7959 = vst [vmem:[#allocation101_spill] sm:$0xff] %v6186_v15  ;;  %3058 = vrot.lane.b32.xlu0 %v6186_v15, %s4872_s11 }
 0xa51   :  { %v2736_v55 = vpop.permute.xlu1 %2735 }
 0xa52   :  { %v6193_v61 = vadd.f32 %v2736_v55, %v6188_v34 }
 0xa54   :  { %7961 = vst [vmem:[#allocation103_spill] sm:$0xff] %v6193_v61  ;;  %3060 = vrot.lane.b32.xlu1 %v6193_v61, %s4872_s11  ;;  %3152 = vrot.lane.b32.xlu0 %v6134_v39, %s4875_s16 }
 0xa57   :  { %v3135_v47 = vpop.permute.xlu0 %3134 }
 0xa58   :  { %v3140_v5 = vmul.f32 %v3135_v47, %v6201_v13 }
 0xa59   :  { %v3137_v41 = vpop.permute.xlu1 %3136 }
 0xa5a   :  { %v3141_v20 = vmul.f32 %v3137_v41, %v6205_v9  ;;  %3144 = vrot.lane.b32.xlu0 %v3140_v5, %s4872_s11 }
 0xa5b   :  { %v3115_v18 = vpop.permute.xlu0 %3114 }
 0xa5c   :  { %3146 = vrot.lane.b32.xlu1 %v3141_v20, %s4872_s11  ;;  %v3120_v55 = vmul.f32 %v6134_v39, %v3115_v18 }
 0xa5d   :  { %v3117_v0 = vpop.permute.xlu1 %3116 }
 0xa5e   :  { %3242 = vrot.lane.b32.xlu0 %v6134_v39, %s4878_s19  ;;  %v3121_v12 = vmul.f32 %v6143_v6, %v3117_v0  ;;  %v6229_v2 = vmul.f32 2.0, %v3120_v55 }
 0xa5f   :  { %v3205_v44 = vpop.permute.xlu0 %3204 }
 0xa60   :  { %3244 = vrot.lane.b32.xlu1 %v6143_v6, %s4878_s19  ;;  %v3210_v5 = vmul.f32 %v6134_v39, %v3205_v44  ;;  %v6232_v40 = vmul.f32 2.0, %v3121_v12 }
 0xa61   :  { %v3207_v50 = vpop.permute.xlu1 %3206 }
 0xa62   :  { %3196 = vrot.lane.b32.xlu0 %v6134_v39, %s4879_s20  ;;  %v3211_v20 = vmul.f32 %v6143_v6, %v3207_v50  ;;  %v3230_v53 = vmul.f32 %v3210_v5, %v3135_v47 }
 0xa64   :  { %3198 = vrot.lane.b32.xlu1 %v6143_v6, %s4879_s20  ;;  %v3231_v49 = vmul.f32 %v3211_v20, %v3137_v41 }
 0xa66   :  { %3218 = vrot.lane.b32.xlu0 %v3120_v55, %s4872_s11 }
 0xa67   :  { %v3105_v0 = vpop.permute.xlu0 %3104 }
 0xa68   :  { %3220 = vrot.lane.b32.xlu1 %v3121_v12, %s4872_s11  ;;  %v3110_v41 = vmul.f32 %v3105_v0, %v6201_v13 }
 0xa69   :  { %v3107_v18 = vpop.permute.xlu1 %3106 }
 0xa6a   :  { %3234 = vrot.lane.b32.xlu0 %v3230_v53, %s4872_s11  ;;  %v3111_v12 = vmul.f32 %v3107_v18, %v6205_v9 }
 0xa6b   :  { %v3125_v22 = vpop.permute.xlu0 %3124 }
 0xa6c   :  { %3236 = vrot.lane.b32.xlu1 %v3231_v49, %s4872_s11 }
 0xa6d   :  { %v3127_v44 = vpop.permute.xlu1 %3126 }
 0xa6e   :  { %2721 = vrot.lane.b32.xlu0 %v2717_v11, %s4877_s18  ;;  %v3130_v11 = vmul.f32 %v3125_v22, %v6229_v2  ;;  %v3131_v34 = vmul.f32 %v3127_v44, %v6232_v40 }
 0xa70   :  { %2723 = vrot.lane.b32.xlu1 %v2718_v17, %s4877_s18  ;;  %v3132_v55 = vadd.f32 %v3130_v11, %v3110_v41  ;;  %v3133_v63 = vadd.f32 %v3131_v34, %v3111_v12 }
 0xa71   :  { %v3155_v7 = vpop.permute.xlu1 %3154 }
 0xac2   :  { %v3059_v50 = vpop.permute.xlu0 %3058 }
 0xac3   :  { %v3064_v47 = vmul.f32 %v6134_v39, %v3059_v50 }
 0xac5   :  { %3068 = vrot.lane.b32.xlu0 %v3064_v47, %s4872_s11 }
 0xac6   :  { %v3061_v53 = vpop.permute.xlu1 %3060  ;;  %v3153_v49 = vpop.permute.xlu0 %3152 }
 0xac7   :  { %v3065_v17 = vmul.f32 %v6143_v6, %v3061_v53 }
 0xac9   :  { %3070 = vrot.lane.b32.xlu1 %v3065_v17, %s4872_s11  ;;  %3178 = vrot.lane.b32.xlu0 %v6122_v62, %s4878_s19 }
 0xacc   :  { %v3145_v50 = vpop.permute.xlu0 %3144 }
 0xacd   :  { %v3150_v47 = vadd.f32 %v3145_v50, %v3132_v55  ;;  %3180 = vrot.lane.b32.xlu1 %v6127_v23, %s4878_s19 }
 0xace   :  { %v3147_v36 = vpop.permute.xlu1 %3146 }
 0xacf   :  { %v6245_v53 = vadd.f32 %v3153_v49, %v3150_v47  ;;  %v3151_v31 = vadd.f32 %v3147_v36, %v3133_v63 }
 0xad0   :  { %v3243_v56 = vpop.permute.xlu0 %3242 }
 0xad1   :  { %7962 = vst [vmem:[#allocation104_spill] sm:$0xff] %v6245_v53  ;;  %v6247_v30 = vadd.f32 %v3155_v7, %v3151_v31  ;;  %v3248_v17 = vadd.f32 %v3243_v56, %v6245_v53  ;;  %v3212_v7 = vmul.f32 %v3210_v5, %v3105_v0 }
 0xad2   :  { %v3245_v4 = vpop.permute.xlu1 %3244 }
 0xad3   :  { %7963 = vst [vmem:[#allocation105_spill] sm:$0xff] %v6247_v30  ;;  %v3250_v62 = vadd.f32 1e-12, %v3248_v17  ;;  %v3249_v21 = vadd.f32 %v3245_v4, %v6247_v30  ;;  %v3213_v4 = vmul.f32 %v3211_v20, %v3107_v18 }
 0xad4   :  { %v6251_v11 = vpop.permute.xlu0 %3196 }
 0xad5   :  { %4858 = vrcp.f32 %v3250_v62  ;;  %v3251_v41 = vadd.f32 1e-12, %v3249_v21  ;;  %v3214_v34 = vmul.f32 %v6134_v39, %v6251_v11 }
 0xad6   :  { %v6255_v12 = vpop.permute.xlu1 %3198 }
 0xad7   :  { %4860 = vrcp.f32 %v3251_v41  ;;  %v3215_v63 = vmul.f32 %v6143_v6, %v6255_v12 }
 0xad8   :  { %v3219_v36 = vpop.permute.xlu0 %3218 }
 0xad9   :  { %v3224_v31 = vadd.f32 %v3219_v36, %v3214_v34 }
 0xada   :  { %v3221_v56 = vpop.permute.xlu1 %3220 }
 0xadb   :  { %v3226_v49 = vmul.f32 %v3224_v31, %v3125_v22  ;;  %v3225_v55 = vadd.f32 %v3221_v56, %v3215_v63 }
 0xadc   :  { %v3235_v62 = vpop.permute.xlu0 %3234 }
 0xadd   :  { %v3227_v50 = vmul.f32 %v3225_v55, %v3127_v44  ;;  %v3228_v47 = vadd.f32 %v3226_v49, %v3212_v7 }
 0xade   :  { %v3237_v45 = vpop.permute.xlu1 %3236 }
 0xadf   :  { %v6259_v21 = vpop.eup %4858  ;;  %v6261_v17 = vadd.f32 %v3235_v62, %v3228_v47  ;;  %v3229_v23 = vadd.f32 %v3227_v50, %v3213_v4  ;;  %v7823_v4 = vrot.slane %v6134_v39, 1  ;;  %v7822_v47 = vrot.slane %v6143_v6, 1 }
 0xae1   :  { %7964 = vst [vmem:[#allocation106_spill] sm:$0xff] %v6261_v17  ;;  %v6263_v41 = vpop.eup %4860  ;;  %v3270_v54 = vmul.f32 %v6259_v21, %v6261_v17  ;;  %v6267_v34 = vadd.f32 %v3237_v45, %v3229_v23  ;;  %v2722_v45 = vpop.permute.xlu0 %2721 }
 0xae2   :  { %v6284_v23 = vadd.f32 %v2722_v45, %v6059_v46  ;;  %v2724_v20 = vpop.permute.xlu1 %2723 }
 0xae3   :  { %7965 = vst [vmem:[#allocation107_spill] sm:$0xff] %v6267_v34  ;;  %v3271_v22 = vmul.f32 %v6263_v41, %v6267_v34  ;;  %3274 = vrot.lane.b32.xlu0 %v3270_v54, %s4874_s1  ;;  %v6287_v54 = vadd.f32 %v2724_v20, %v6065_v33 }
 0xae4   :  { %7966 = vst [vmem:[#allocation108_spill] sm:$0xff] %v6284_v23  ;;  %v3056_v18 = vmul.f32 %v6134_v39, %v6284_v23 }
 0xae5   :  { %3276 = vrot.lane.b32.xlu1 %v3271_v22, %s4874_s1  ;;  %7967 = vst [vmem:[#allocation109_spill] sm:$0xff] %v6287_v54  ;;  %v3057_v63 = vmul.f32 %v6143_v6, %v6287_v54 }
 0xae7   :  { %3330 = vrot.lane.b32.xlu0 %v6261_v17, %s4874_s1 }
 0xae9   :  { %3332 = vrot.lane.b32.xlu1 %v6267_v34, %s4874_s1 }
 0xaeb   :  { %3084 = vrot.lane.b32.xlu0 %v6186_v15, %s4878_s19 }
 0xaed   :  { %3086 = vrot.lane.b32.xlu1 %v6193_v61, %s4878_s19 }
 0xb37   :  { %v3069_v0 = vpop.permute.xlu0 %3068 }
 0xb38   :  { %v6291_v44 = vadd.f32 %v3069_v0, %v3056_v18 }
 0xb3a   :  { %7968 = vst [vmem:[#allocation110_spill] sm:$0xff] %v6291_v44  ;;  %3284 = vrot.lane.b32.xlu0 %v6291_v44, %s4874_s1 }
 0xb3b   :  { %v3071_v36 = vpop.permute.xlu1 %3070  ;;  %v3179_v56 = vpop.permute.xlu0 %3178 }
 0xb3c   :  { %v6297_v31 = vadd.f32 %v3071_v36, %v3057_v63  ;;  %v3184_v7 = vmul.f32 %v3179_v56, %v6201_v13 }
 0xb3e   :  { %7969 = vst [vmem:[#allocation111_spill] sm:$0xff] %v6297_v31  ;;  %3286 = vrot.lane.b32.xlu1 %v6297_v31, %s4874_s1  ;;  %3160 = vrot.lane.b32.xlu0 %v6160_v16, %s4875_s16 }
 0xb3f   :  { %v3181_v49 = vpop.permute.xlu1 %3180 }
 0xb40   :  { %v3185_v55 = vmul.f32 %v3181_v49, %v6205_v9 }
 0xb42   :  { %3162 = vrot.lane.b32.xlu1 %v6163_v10, %s4875_s16  ;;  %3168 = vrot.lane.b32.xlu0 %v6168_v25, %s4875_s16 }
 0xb46   :  { %3170 = vrot.lane.b32.xlu1 %v6173_v28, %s4875_s16  ;;  %3188 = vrot.lane.b32.xlu0 %v3184_v7, %s4872_s11 }
 0xb4a   :  { %3190 = vrot.lane.b32.xlu1 %v3185_v55, %s4872_s11 }
 0xb55   :  { %v3275_v50 = vpop.permute.xlu0 %3274 }
 0xb56   :  { %v6317_v22 = vmul.f32 %v3275_v50, %v7823_v4 }
 0xb57   :  { %v3277_v62 = vpop.permute.xlu1 %3276 }
 0xb58   :  { %7970 = vst [vmem:[#allocation112_spill] sm:$0xff] %v6317_v22  ;;  %v6323_v20 = vmul.f32 %v3277_v62, %v7822_v47 }
 0xb59   :  { %v6319_v45 = vpop.permute.xlu0 %3330 }
 0xb5a   :  { %7971 = vst [vmem:[#allocation113_spill] sm:$0xff] %v6323_v20  ;;  %v3336_v18 = vmul.f32 %v6319_v45, %v6317_v22 }
 0xb5b   :  { %v6327_v0 = vpop.permute.xlu1 %3332 }
 0xb5c   :  { %v3337_v63 = vmul.f32 %v6327_v0, %v6323_v20  ;;  %3340 = vrot.lane.b32.xlu0 %v3336_v18, %s4875_s16 }
 0xb5d   :  { %v3085_v36 = vpop.permute.xlu0 %3084 }
 0xb5e   :  { %3342 = vrot.lane.b32.xlu1 %v3337_v63, %s4875_s16  ;;  %v3090_v7 = vmul.f32 %v6134_v39, %v3085_v36 }
 0xb5f   :  { %v3087_v56 = vpop.permute.xlu1 %3086 }
 0xb60   :  { %3076 = vrot.lane.b32.xlu0 %v6284_v23, %s4877_s18  ;;  %v3091_v49 = vmul.f32 %v6143_v6, %v3087_v56 }
 0xb62   :  { %3078 = vrot.lane.b32.xlu1 %v6287_v54, %s4877_s18 }
 0xb64   :  { %3094 = vrot.lane.b32.xlu0 %v3090_v7, %s4872_s11  ;;  %v3254_v7 = vmul.f32 %v6259_v21, %v6245_v53 }
 0xb66   :  { %3096 = vrot.lane.b32.xlu1 %v3091_v49, %s4872_s11 }
 0xbac   :  { %v3285_v55 = vpop.permute.xlu0 %3284 }
 0xbad   :  { %v6342_v50 = vsub.f32 %v6134_v39, %v3285_v55 }
 0xbaf   :  { %v3304_v62 = vmul.f32 %v6342_v50, %v6317_v22 }
 0xbb0   :  { %v3287_v18 = vpop.permute.xlu1 %3286  ;;  %v3161_v63 = vpop.permute.xlu0 %3160 }
 0xbb1   :  { %v6347_v36 = vsub.f32 %v6143_v6, %v3287_v18  ;;  %3308 = vrot.lane.b32.xlu0 %v3304_v62, %s4875_s16  ;;  %v3166_v55 = vmul.f32 %v3161_v63, %v6201_v13  ;;  %v3255_v62 = vmul.f32 %v6263_v41, %v6247_v30 }
 0xbb3   :  { %v3305_v56 = vmul.f32 %v6347_v36, %v6323_v20 }
 0xbb4   :  { %v3163_v49 = vpop.permute.xlu1 %3162  ;;  %v3169_v5 = vpop.permute.xlu0 %3168 }
 0xbb5   :  { %v3174_v47 = vmul.f32 %v3169_v5, %v6229_v2  ;;  %3310 = vrot.lane.b32.xlu1 %v3305_v56, %s4875_s16  ;;  %3262 = vrot.lane.b32.xlu0 %v3254_v7, %s4874_s1  ;;  %v3167_v20 = vmul.f32 %v3163_v49, %v6205_v9 }
 0xbb7   :  { %v3176_v18 = vadd.f32 %v3174_v47, %v3166_v55 }
 0xbb8   :  { %v3171_v4 = vpop.permute.xlu1 %3170  ;;  %v3189_v22 = vpop.permute.xlu0 %3188 }
 0xbb9   :  { %v3175_v21 = vmul.f32 %v3171_v4, %v6232_v40  ;;  %3264 = vrot.lane.b32.xlu1 %v3255_v62, %s4874_s1  ;;  %3320 = vrot.lane.b32.xlu0 %v6245_v53, %s4874_s1  ;;  %v3194_v2 = vadd.f32 %v3189_v22, %v3176_v18 }
 0xbbb   :  { %v3177_v13 = vadd.f32 %v3175_v21, %v3167_v20  ;;  %v6368_v41 = vadd.f32 %v6251_v11, %v3194_v2  ;;  %v6386_v11 = vld [vmem:[%s7729_s0 + $0x6] ss:$8 sm:$0x3] }
 0xbbc   :  { %v3191_v5 = vpop.permute.xlu1 %3190 }
 0xbbd   :  { %v3195_v63 = vadd.f32 %v3191_v5, %v3177_v13  ;;  %3322 = vrot.lane.b32.xlu1 %v6247_v30, %s4874_s1  ;;  %7972 = vst [vmem:[#allocation114_spill] sm:$0xff] %v6368_v41 }
 0xbbf   :  { %v6371_v47 = vadd.f32 %v6255_v12, %v3195_v63  ;;  %v6393_v12 = vld [vmem:[%s7729_s0 + $0x16] ss:$8 sm:$0x3] }
 0xbc1   :  { %7973 = vst [vmem:[#allocation115_spill] sm:$0xff] %v6371_v47 }
 0xbce   :  { %v3341_v9 = vpop.permute.xlu0 %3340 }
 0xbcf   :  { %v6376_v4 = vsub.f32 %v6368_v41, %v3341_v9 }
 0xbd0   :  { %v3343_v22 = vpop.permute.xlu1 %3342 }
 0xbd1   :  { %7974 = vst [vmem:[#allocation116_spill] sm:$0xff] %v6376_v4  ;;  %v6379_v20 = vsub.f32 %v6371_v47, %v3343_v22  ;;  %3709 = vrot.lane.b32.xlu0 %v6376_v4, %s4872_s11 }
 0xbd2   :  { %v3077_v56 = vpop.permute.xlu0 %3076 }
 0xbd3   :  { %7975 = vst [vmem:[#allocation117_spill] sm:$0xff] %v6379_v20  ;;  %3711 = vrot.lane.b32.xlu1 %v6379_v20, %s4872_s11  ;;  %v3082_v55 = vmul.f32 %v6134_v39, %v3077_v56  ;;  %v7978_v56 = vrot.slane %v6134_v39, 1 }
 0xbd4   :  { %v3079_v7 = vpop.permute.xlu1 %3078 }
 0xbd5   :  { %3689 = vrot.lane.b32.xlu0 %v6386_v11, %s4872_s11  ;;  %v3083_v2 = vmul.f32 %v6143_v6, %v3079_v7 }
 0xbd6   :  { %v3095_v49 = vpop.permute.xlu0 %3094 }
 0xbd7   :  { %3691 = vrot.lane.b32.xlu1 %v6393_v12, %s4872_s11  ;;  %v6404_v18 = vadd.f32 %v3095_v49, %v3082_v55 }
 0xbd8   :  { %v3097_v62 = vpop.permute.xlu1 %3096 }
 0xbd9   :  { %3779 = vrot.lane.b32.xlu0 %v6386_v11, %s4874_s1  ;;  %7976 = vst [vmem:[#allocation118_spill] sm:$0xff] %v6404_v18  ;;  %v6410_v5 = vadd.f32 %v3097_v62, %v3083_v2 }
 0xbdb   :  { %3781 = vrot.lane.b32.xlu1 %v6393_v12, %s4874_s1  ;;  %7977 = vst [vmem:[#allocation119_spill] sm:$0xff] %v6410_v5 }
 0xc23   :  { %v3309_v21 = vpop.permute.xlu0 %3308 }
 0xc24   :  { %v6408_v13 = vadd.f32 %v3309_v21, %v6404_v18  ;;  %v7980_v21 = vrot.slane %v6143_v6, 1 }
 0xc26   :  { %3633 = vrot.lane.b32.xlu0 %v6408_v13, %s4872_s11 }
 0xc27   :  { %v3311_v63 = vpop.permute.xlu1 %3310  ;;  %v3263_v9 = vpop.permute.xlu0 %3262 }
 0xc28   :  { %v6415_v22 = vadd.f32 %v3311_v63, %v6410_v5  ;;  %v6419_v49 = vmul.f32 %v3263_v9, %v7978_v56 }
 0xc2a   :  { %7979 = vst [vmem:[#allocation120_spill] sm:$0xff] %v6419_v49  ;;  %3635 = vrot.lane.b32.xlu1 %v6415_v22, %s4872_s11  ;;  %v3316_v7 = vsub.f32 1.0, %v6419_v49 }
 0xc2b   :  { %v3265_v55 = vpop.permute.xlu1 %3264  ;;  %v3321_v62 = vpop.permute.xlu0 %3320 }
 0xc2c   :  { %v6426_v2 = vmul.f32 %v3265_v55, %v7980_v21  ;;  %v6428_v40 = vmul.f32 %v3321_v62, %v3316_v7  ;;  %v6436_v56 = vmul.f32 %v6319_v45, %v3316_v7  ;;  %v6455_v45 = vmul.f32 %v6386_v11, %v6386_v11 }
 0xc2d   :  { %v6459_v7 = vmul.f32 %v6393_v12, %v6393_v12 }
 0xc2e   :  { %7981 = vst [vmem:[#allocation121_spill] sm:$0xff] %v6426_v2  ;;  %3679 = vrot.lane.b32.xlu0 %v6428_v40, %s4877_s18  ;;  %v3317_v39 = vsub.f32 1.0, %v6426_v2 }
 0xc2f   :  { %v3323_v9 = vpop.permute.xlu1 %3322 }
 0xc30   :  { %v6438_v53 = vmul.f32 %v3323_v9, %v3317_v39  ;;  %v6445_v6 = vmul.f32 %v6327_v0, %v3317_v39 }
 0xc32   :  { %3681 = vrot.lane.b32.xlu1 %v6438_v53, %s4877_s18  ;;  %3699 = vrot.lane.b32.xlu0 %v6436_v56, %s4877_s18 }
 0xc36   :  { %3701 = vrot.lane.b32.xlu1 %v6445_v6, %s4877_s18  ;;  %3727 = vrot.lane.b32.xlu0 %v6386_v11, %s4875_s16 }
 0xc3a   :  { %3729 = vrot.lane.b32.xlu1 %v6393_v12, %s4875_s16 }
 0xc43   :  { %v3710_v55 = vpop.permute.xlu0 %3709 }
 0xc44   :  { %v3715_v0 = vmul.f32 %v3710_v55, %v6455_v45 }
 0xc45   :  { %v3712_v62 = vpop.permute.xlu1 %3711 }
 0xc46   :  { %v3716_v21 = vmul.f32 %v3712_v62, %v6459_v7  ;;  %3719 = vrot.lane.b32.xlu0 %v3715_v0, %s4872_s11 }
 0xc47   :  { %v3690_v39 = vpop.permute.xlu0 %3689 }
 0xc48   :  { %3721 = vrot.lane.b32.xlu1 %v3716_v21, %s4872_s11  ;;  %v3695_v30 = vmul.f32 %v6386_v11, %v3690_v39  ;;  %v3292_v39 = vmul.f32 %v6342_v50, %v6419_v49 }
 0xc49   :  { %v3692_v9 = vpop.permute.xlu1 %3691 }
 0xc4a   :  { %3817 = vrot.lane.b32.xlu0 %v6386_v11, %s4878_s19  ;;  %v3696_v17 = vmul.f32 %v6393_v12, %v3692_v9 }
 0xc4b   :  { %v3780_v63 = vpop.permute.xlu0 %3779 }
 0xc4c   :  { %3819 = vrot.lane.b32.xlu1 %v6393_v12, %s4878_s19  ;;  %v3785_v0 = vmul.f32 %v6386_v11, %v3780_v63  ;;  %v3293_v63 = vmul.f32 %v6347_v36, %v6426_v2 }
 0xc4d   :  { %v3782_v34 = vpop.permute.xlu1 %3781 }
 0xc4e   :  { %3771 = vrot.lane.b32.xlu0 %v6386_v11, %s4879_s20  ;;  %v3786_v21 = vmul.f32 %v6393_v12, %v3782_v34  ;;  %v3805_v18 = vmul.f32 %v3785_v0, %v3710_v55 }
 0xc50   :  { %3773 = vrot.lane.b32.xlu1 %v6393_v12, %s4879_s20  ;;  %v3806_v5 = vmul.f32 %v3786_v21, %v3712_v62 }
 0xc52   :  { %3793 = vrot.lane.b32.xlu0 %v3695_v30, %s4872_s11 }
 0xc54   :  { %3795 = vrot.lane.b32.xlu1 %v3696_v17, %s4872_s11 }
 0xc56   :  { %3809 = vrot.lane.b32.xlu0 %v3805_v18, %s4872_s11 }
 0xc58   :  { %3811 = vrot.lane.b32.xlu1 %v3806_v5, %s4872_s11 }
 0xc5a   :  { %3296 = vrot.lane.b32.xlu0 %v3292_v39, %s4877_s18  ;;  %v6495_v39 = vmul.f32 2.0, %v3695_v30 }
 0xc5c   :  { %3298 = vrot.lane.b32.xlu1 %v3293_v63, %s4877_s18 }
 0xc98   :  { %v3634_v34 = vpop.permute.xlu0 %3633 }
 0xc99   :  { %v3639_v55 = vmul.f32 %v6386_v11, %v3634_v34  ;;  %v6497_v34 = vmul.f32 2.0, %v3696_v17 }
 0xc9b   :  { %3643 = vrot.lane.b32.xlu0 %v3639_v55, %s4872_s11 }
 0xc9c   :  { %v3636_v62 = vpop.permute.xlu1 %3635 }
 0xc9d   :  { %v3640_v18 = vmul.f32 %v6393_v12, %v3636_v62 }
 0xc9f   :  { %3645 = vrot.lane.b32.xlu1 %v3640_v18, %s4872_s11  ;;  %3753 = vrot.lane.b32.xlu0 %v6376_v4, %s4878_s19 }
 0xca0   :  { %v3680_v50 = vpop.permute.xlu0 %3679 }
 0xca1   :  { %v3685_v18 = vmul.f32 %v3680_v50, %v6455_v45 }
 0xca3   :  { %3755 = vrot.lane.b32.xlu1 %v6379_v20, %s4878_s19 }
 0xca4   :  { %v3682_v36 = vpop.permute.xlu1 %3681  ;;  %v3700_v5 = vpop.permute.xlu0 %3699 }
 0xca5   :  { %v3705_v55 = vmul.f32 %v3700_v5, %v6495_v39  ;;  %v3686_v49 = vmul.f32 %v3682_v36, %v6459_v7 }
 0xca7   :  { %v3707_v47 = vadd.f32 %v3705_v55, %v3685_v18 }
 0xca8   :  { %v3702_v9 = vpop.permute.xlu1 %3701  ;;  %v3728_v63 = vpop.permute.xlu0 %3727 }
 0xca9   :  { %v3706_v2 = vmul.f32 %v3702_v9, %v6497_v34 }
 0xcab   :  { %v3708_v20 = vadd.f32 %v3706_v2, %v3686_v49  ;;  %v3787_v49 = vmul.f32 %v3785_v0, %v3680_v50 }
 0xcac   :  { %v3730_v62 = vpop.permute.xlu1 %3729 }
 0xcb8   :  { %v3720_v41 = vpop.permute.xlu0 %3719 }
 0xcb9   :  { %v3725_v4 = vadd.f32 %v3720_v41, %v3707_v47 }
 0xcba   :  { %v3722_v46 = vpop.permute.xlu1 %3721 }
 0xcbb   :  { %v6503_v33 = vadd.f32 %v3728_v63, %v3725_v4  ;;  %v3726_v30 = vadd.f32 %v3722_v46, %v3708_v20 }
 0xcbc   :  { %v3818_v15 = vpop.permute.xlu0 %3817 }
 0xcbd   :  { %7982 = vst [vmem:[#allocation122_spill] sm:$0xff] %v6503_v33  ;;  %v6505_v17 = vadd.f32 %v3730_v62, %v3726_v30  ;;  %v3823_v61 = vadd.f32 %v3818_v15, %v6503_v33 }
 0xcbe   :  { %v3820_v25 = vpop.permute.xlu1 %3819 }
 0xcbf   :  { %7983 = vst [vmem:[#allocation123_spill] sm:$0xff] %v6505_v17  ;;  %v3825_v28 = vadd.f32 1e-12, %v3823_v61  ;;  %v3824_v16 = vadd.f32 %v3820_v25, %v6505_v17  ;;  %v3788_v25 = vmul.f32 %v3786_v21, %v3682_v36 }
 0xcc0   :  { %v6509_v10 = vpop.permute.xlu0 %3771 }
 0xcc1   :  { %4862 = vrcp.f32 %v3825_v28  ;;  %v3826_v55 = vadd.f32 1e-12, %v3824_v16  ;;  %v3789_v41 = vmul.f32 %v6386_v11, %v6509_v10 }
 0xcc2   :  { %v6513_v47 = vpop.permute.xlu1 %3773 }
 0xcc3   :  { %4864 = vrcp.f32 %v3826_v55  ;;  %v3790_v46 = vmul.f32 %v6393_v12, %v6513_v47 }
 0xcc4   :  { %v3794_v4 = vpop.permute.xlu0 %3793 }
 0xcc5   :  { %v3799_v20 = vadd.f32 %v3794_v4, %v3789_v41 }
 0xcc6   :  { %v3796_v15 = vpop.permute.xlu1 %3795 }
 0xcc7   :  { %v3801_v61 = vmul.f32 %v3799_v20, %v3700_v5  ;;  %v3800_v2 = vadd.f32 %v3796_v15, %v3790_v46 }
 0xcc8   :  { %v3810_v28 = vpop.permute.xlu0 %3809 }
 0xcc9   :  { %v3802_v63 = vmul.f32 %v3800_v2, %v3702_v9  ;;  %v3803_v62 = vadd.f32 %v3801_v61, %v3787_v49 }
 0xcca   :  { %v3812_v23 = vpop.permute.xlu1 %3811 }
 0xccb   :  { %v6517_v16 = vpop.eup %4862  ;;  %v6519_v18 = vadd.f32 %v3810_v28, %v3803_v62  ;;  %v3804_v30 = vadd.f32 %v3802_v63, %v3788_v25  ;;  %v7849_v63 = vrot.slane %v6386_v11, 1  ;;  %v7848_v28 = vrot.slane %v6393_v12, 1 }
 0xccd   :  { %7984 = vst [vmem:[#allocation124_spill] sm:$0xff] %v6519_v18  ;;  %v6521_v55 = vpop.eup %4864  ;;  %v3845_v54 = vmul.f32 %v6517_v16, %v6519_v18  ;;  %v6525_v41 = vadd.f32 %v3812_v23, %v3804_v30  ;;  %v3297_v23 = vpop.permute.xlu0 %3296 }
 0xcce   :  { %v6542_v50 = vadd.f32 %v3297_v23, %v6291_v44  ;;  %v3299_v36 = vpop.permute.xlu1 %3298 }
 0xccf   :  { %7985 = vst [vmem:[#allocation125_spill] sm:$0xff] %v6525_v41  ;;  %v3846_v0 = vmul.f32 %v6521_v55, %v6525_v41  ;;  %3849 = vrot.lane.b32.xlu0 %v3845_v54, %s4874_s1  ;;  %v6545_v54 = vadd.f32 %v3299_v36, %v6297_v31 }
 0xcd0   :  { %v3631_v5 = vmul.f32 %v6386_v11, %v6542_v50 }
 0xcd1   :  { %3851 = vrot.lane.b32.xlu1 %v3846_v0, %s4874_s1  ;;  %v3632_v4 = vmul.f32 %v6393_v12, %v6545_v54 }
 0xcd3   :  { %3905 = vrot.lane.b32.xlu0 %v6519_v18, %s4874_s1 }
 0xcd5   :  { %3907 = vrot.lane.b32.xlu1 %v6525_v41, %s4874_s1 }
 0xcd7   :  { %3659 = vrot.lane.b32.xlu0 %v6408_v13, %s4878_s19 }
 0xcd9   :  { %3661 = vrot.lane.b32.xlu1 %v6415_v22, %s4878_s19 }
 0xd0d   :  { %v3644_v9 = vpop.permute.xlu0 %3643 }
 0xd0e   :  { %v6549_v46 = vadd.f32 %v3644_v9, %v3631_v5 }
 0xd10   :  { %3859 = vrot.lane.b32.xlu0 %v6549_v46, %s4874_s1 }
 0xd11   :  { %v3646_v20 = vpop.permute.xlu1 %3645  ;;  %v3754_v49 = vpop.permute.xlu0 %3753 }
 0xd12   :  { %v6555_v15 = vadd.f32 %v3646_v20, %v3632_v4  ;;  %v3759_v61 = vmul.f32 %v3754_v49, %v6455_v45 }
 0xd14   :  { %3861 = vrot.lane.b32.xlu1 %v6555_v15, %s4874_s1  ;;  %3735 = vrot.lane.b32.xlu0 %v6428_v40, %s4875_s16 }
 0xd15   :  { %v3756_v2 = vpop.permute.xlu1 %3755 }
 0xd16   :  { %v3760_v25 = vmul.f32 %v3756_v2, %v6459_v7 }
 0xd18   :  { %3737 = vrot.lane.b32.xlu1 %v6438_v53, %s4875_s16  ;;  %3743 = vrot.lane.b32.xlu0 %v6436_v56, %s4875_s16 }
 0xd1c   :  { %3745 = vrot.lane.b32.xlu1 %v6445_v6, %s4875_s16  ;;  %3763 = vrot.lane.b32.xlu0 %v3759_v61, %s4872_s11 }
 0xd20   :  { %3765 = vrot.lane.b32.xlu1 %v3760_v25, %s4872_s11 }
 0xd41   :  { %v3850_v62 = vpop.permute.xlu0 %3849 }
 0xd42   :  { %v6575_v0 = vmul.f32 %v3850_v62, %v7849_v63 }
 0xd43   :  { %v3852_v30 = vpop.permute.xlu1 %3851 }
 0xd44   :  { %7986 = vst [vmem:[#allocation126_spill] sm:$0xff] %v6575_v0  ;;  %v6581_v36 = vmul.f32 %v3852_v30, %v7848_v28 }
 0xd45   :  { %v6577_v23 = vpop.permute.xlu0 %3905 }
 0xd46   :  { %7987 = vst [vmem:[#allocation127_spill] sm:$0xff] %v6581_v36  ;;  %v3911_v5 = vmul.f32 %v6577_v23, %v6575_v0 }
 0xd47   :  { %v6585_v9 = vpop.permute.xlu1 %3907 }
 0xd48   :  { %v3912_v4 = vmul.f32 %v6585_v9, %v6581_v36  ;;  %3915 = vrot.lane.b32.xlu0 %v3911_v5, %s4875_s16 }
 0xd49   :  { %v3660_v20 = vpop.permute.xlu0 %3659 }
 0xd4a   :  { %3917 = vrot.lane.b32.xlu1 %v3912_v4, %s4875_s16  ;;  %v3665_v61 = vmul.f32 %v6386_v11, %v3660_v20 }
 0xd4b   :  { %v3662_v49 = vpop.permute.xlu1 %3661 }
 0xd4c   :  { %3651 = vrot.lane.b32.xlu0 %v6542_v50, %s4877_s18  ;;  %v3666_v2 = vmul.f32 %v6393_v12, %v3662_v49 }
 0xd4e   :  { %3653 = vrot.lane.b32.xlu1 %v6545_v54, %s4877_s18 }
 0xd50   :  { %3669 = vrot.lane.b32.xlu0 %v3665_v61, %s4872_s11  ;;  %v3829_v61 = vmul.f32 %v6517_v16, %v6503_v33 }
 0xd52   :  { %3671 = vrot.lane.b32.xlu1 %v3666_v2, %s4872_s11 }
 0xd82   :  { %v3860_v25 = vpop.permute.xlu0 %3859 }
 0xd83   :  { %v6600_v62 = vsub.f32 %v6386_v11, %v3860_v25 }
 0xd85   :  { %v3879_v30 = vmul.f32 %v6600_v62, %v6575_v0 }
 0xd86   :  { %v3862_v5 = vpop.permute.xlu1 %3861  ;;  %v3736_v4 = vpop.permute.xlu0 %3735 }
 0xd87   :  { %v6605_v20 = vsub.f32 %v6393_v12, %v3862_v5  ;;  %3883 = vrot.lane.b32.xlu0 %v3879_v30, %s4875_s16  ;;  %v3741_v25 = vmul.f32 %v3736_v4, %v6455_v45  ;;  %v3830_v30 = vmul.f32 %v6521_v55, %v6505_v17  ;;  %v6626_v45 = vld [vmem:[%s7729_s0 + $0x7] ss:$8 sm:$0x3] }
 0xd89   :  { %v3880_v49 = vmul.f32 %v6605_v20, %v6581_v36 }
 0xd8a   :  { %v3738_v2 = vpop.permute.xlu1 %3737  ;;  %v3744_v21 = vpop.permute.xlu0 %3743 }
 0xd8b   :  { %v3749_v28 = vmul.f32 %v3744_v21, %v6495_v39  ;;  %3885 = vrot.lane.b32.xlu1 %v3880_v49, %s4875_s16  ;;  %3837 = vrot.lane.b32.xlu0 %v3829_v61, %s4874_s1  ;;  %v3742_v36 = vmul.f32 %v3738_v2, %v6459_v7  ;;  %v467_v39 = vcombine.low %v5338_v29, %v5341_v37 }
 0xd8c   :  { %v507_v7 = vcombine.low %v5156_v52, %v5163_v26  ;;  %v487_v29 = vcombine.low %v5260_v59, %v5265_v19  ;;  %v527_v26 = vcombine.low %v5105_v35, %v5113_v51  ;;  %v547_v19 = vcombine.low %v5166_v24, %v5173_v58 }
 0xd8d   :  { %v3751_v5 = vadd.f32 %v3749_v28, %v3741_v25  ;;  %v474_v37 = vrot.slane %v467_v39, %v4929_v14  ;;  %v565_v49 = vcombine.low %v5120_v38, %v5132_v42 }
 0xd8e   :  { %v3746_v63 = vpop.permute.xlu1 %3745  ;;  %v3764_v0 = vpop.permute.xlu0 %3763  ;;  %v514_v59 = vrot.slane %v507_v7, %v4929_v14  ;;  %v554_v24 = vrot.slane %v547_v19, %v4929_v14  ;;  %v8031_v7 = vld [vmem:[#allocation57_spill] sm:$0xff] }
 0xd8f   :  { %v3750_v16 = vmul.f32 %v3746_v63, %v6497_v34  ;;  %3839 = vrot.lane.b32.xlu1 %v3830_v30, %s4874_s1  ;;  %3895 = vrot.lane.b32.xlu0 %v6503_v33, %s4874_s1  ;;  %v3769_v55 = vadd.f32 %v3764_v0, %v3751_v5  ;;  %v6639_v34 = vld [vmem:[%s7729_s0 + $0x17] ss:$8 sm:$0x3]  ;;  %v572_v58 = vrot.slane %v565_v49, %v4929_v14  ;;  %v7994_v49 = vrot.slane %v6393_v12, 1  ;;  %v8033_v33 = vld [vmem:[#allocation47_spill] sm:$0xff] }
 0xd90   :  { %v521_v51 = vrot.slane %v514_v59, %v4929_v14  ;;  %v561_v2 = vrot.slane %v554_v24, %v4929_v14  ;;  %v7992_v59 = vrot.slane %v6386_v11, 1  ;;  %v1647_v52 = vcombine.low %v8031_v7, %v5743_v43  ;;  %v8034_v43 = vld [vmem:[#allocation65_spill] sm:$0xff]  ;;  %v8035_v7 = vld [vmem:[#allocation64_spill] sm:$0xff] }
 0xd91   :  { %v3752_v21 = vadd.f32 %v3750_v16, %v3742_v36  ;;  %v6645_v63 = vadd.f32 %v6509_v10, %v3769_v55  ;;  %v494_v10 = vrot.slane %v487_v29, %v4929_v14  ;;  %v534_v36 = vrot.slane %v527_v26, %v4929_v14 }
 0xd92   :  { %v3766_v28 = vpop.permute.xlu1 %3765  ;;  %v579_v38 = vrot.slane %v572_v58, %v4929_v14 }
 0xd93   :  { %v3770_v4 = vadd.f32 %v3766_v28, %v3752_v21  ;;  %3897 = vrot.lane.b32.xlu1 %v6505_v17, %s4874_s1  ;;  %4264 = vrot.lane.b32.xlu0 %v6626_v45, %s4872_s11  ;;  %7988 = vst [vmem:[#allocation128_spill] sm:$0xff] %v6645_v63  ;;  %v501_v35 = vrot.slane %v494_v10, %v4929_v14 }
 0xd94   :  { %v541_v61 = vrot.slane %v534_v36, %v4929_v14 }
 0xd95   :  { %v6648_v0 = vadd.f32 %v6513_v47, %v3770_v4  ;;  %v481_v47 = vrot.slane %v474_v37, %v4929_v14 }
 0xd97   :  { %7989 = vst [vmem:[#allocation129_spill] sm:$0xff] %v6648_v0  ;;  %4266 = vrot.lane.b32.xlu1 %v6639_v34, %s4872_s11  ;;  %4354 = vrot.lane.b32.xlu0 %v6626_v45, %s4874_s1 }
 0xd9b   :  { %4356 = vrot.lane.b32.xlu1 %v6639_v34, %s4874_s1  ;;  %482 = vrot.lane.b32.xlu0 %v481_v47, %s4874_s1 }
 0xd9f   :  { %502 = vrot.lane.b32.xlu1 %v501_v35, %s4879_s20  ;;  %522 = vrot.lane.b32.xlu0 %v521_v51, %s4877_s18 }
 0xda3   :  { %542 = vrot.lane.b32.xlu1 %v541_v61, %s4872_s11  ;;  %562 = vrot.lane.b32.xlu0 %v561_v2, %s4875_s16 }
 0xda7   :  { %580 = vrot.lane.b32.xlu1 %v579_v38, %s4876_s17 }
 0xdba   :  { %v3916_v42 = vpop.permute.xlu0 %3915 }
 0xdbc   :  { %v3918_v25 = vpop.permute.xlu1 %3917 }
 0xdbe   :  { %v3652_v5 = vpop.permute.xlu0 %3651 }
 0xdbf   :  { %v3657_v39 = vmul.f32 %v6386_v11, %v3652_v5 }
 0xdc0   :  { %v3654_v30 = vpop.permute.xlu1 %3653 }
 0xdc1   :  { %v3658_v55 = vmul.f32 %v6393_v12, %v3654_v30  ;;  %v6715_v12 = vsub.f32 %v6645_v63, %v3916_v42 }
 0xdc2   :  { %v3670_v16 = vpop.permute.xlu0 %3669 }
 0xdc3   :  { %v6683_v28 = vadd.f32 %v3670_v16, %v3657_v39  ;;  %v603_v16 = vcombine.low %v5002_v60, %v5006_v8  ;;  %v623_v39 = vcombine.low %v5102_v32, %v5110_v27  ;;  %v8000_v32 = vld [vmem:[#allocation12_spill] sm:$0xff]  ;;  %v8001_v27 = vld [vmem:[#allocation11_spill] sm:$0xff] }
 0xdc4   :  { %v3672_v21 = vpop.permute.xlu1 %3671 }
 0xdc5   :  { %7990 = vst [vmem:[#allocation130_spill] sm:$0xff] %v6683_v28  ;;  %v6685_v4 = vadd.f32 %v3672_v21, %v3658_v55  ;;  %v7997_v55 = vld [vmem:[#allocation15_spill] sm:$0xff]  ;;  %v7998_v21 = vld [vmem:[#allocation16_spill] sm:$0xff]  ;;  %v610_v60 = vrot.slane %v603_v16, %v4929_v14  ;;  %v630_v8 = vrot.slane %v623_v39, %v4929_v14 }
 0xdc7   :  { %7991 = vst [vmem:[#allocation131_spill] sm:$0xff] %v6685_v4 }
 0xdf9   :  { %v3884_v29 = vpop.permute.xlu0 %3883 }
 0xdfa   :  { %v6732_v42 = vadd.f32 %v3884_v29, %v6683_v28  ;;  %v7999_v29 = vcombine.low %v7997_v55, %v7998_v21  ;;  %v1052_v55 = vcombine.low %v5582_v57, %v5585_v48  ;;  %v637_v21 = vrot.slane %v630_v8, %v4929_v14  ;;  %v8012_v8 = vld [vmem:[#allocation24_spill] sm:$0xff]  ;;  %v8037_v28 = vld [vmem:[#allocation51_spill] sm:$0xff] }
 0xdfc   :  { %7996 = vst [vmem:[#allocation134_spill] sm:$0xff] %v6732_v42  ;;  %v1059_v57 = vrot.slane %v1052_v55, %v4929_v14 }
 0xdfd   :  { %v3886_v37 = vpop.permute.xlu1 %3885  ;;  %v3838_v26 = vpop.permute.xlu0 %3837 }
 0xdfe   :  { %v6691_v19 = vmul.f32 %v3838_v26, %v7992_v59  ;;  %v592_v26 = vrot.slane %v7999_v29, %v4929_v14  ;;  %v6765_v59 = vadd.f32 %v3886_v37, %v6685_v4  ;;  %v1066_v55 = vrot.slane %v1059_v57, %v4929_v14  ;;  %v8020_v57 = vld [vmem:[#allocation13_spill] sm:$0xff] }
 0xdff   :  { %v1627_v4 = vcombine.low %v8035_v7, %v8034_v43 }
 0xe00   :  { %7993 = vst [vmem:[#allocation132_spill] sm:$0xff] %v6691_v19  ;;  %v3891_v10 = vsub.f32 1.0, %v6691_v19  ;;  %v599_v37 = vrot.slane %v592_v26, %v4929_v14 }
 0xe01   :  { %v3840_v47 = vpop.permute.xlu1 %3839  ;;  %v3896_v36 = vpop.permute.xlu0 %3895 }
 0xe02   :  { %v6696_v35 = vmul.f32 %v3840_v47, %v7994_v49  ;;  %v6698_v51 = vmul.f32 %v3896_v36, %v3891_v10  ;;  %v6706_v61 = vmul.f32 %v6577_v23, %v3891_v10  ;;  %v6725_v23 = vsub.f32 %v6648_v0, %v3918_v25  ;;  %v8003_v49 = vld [vmem:[#allocation8_spill] sm:$0xff] }
 0xe03   :  { %v3867_v10 = vmul.f32 %v6600_v62, %v6691_v19  ;;  %v661_v47 = vcombine.low %v8001_v27, %v8000_v32  ;;  %v8002_v62 = vld [vmem:[#allocation7_spill] sm:$0xff]  ;;  %v8008_v32 = vld [vmem:[#allocation29_spill] sm:$0xff]  ;;  %v1654_v19 = vrot.slane %v1647_v52, %v4929_v14  ;;  %v1634_v0 = vrot.slane %v1627_v4, %v4929_v14 }
 0xe04   :  { %7995 = vst [vmem:[#allocation133_spill] sm:$0xff] %v6696_v35  ;;  %4254 = vrot.lane.b32.xlu0 %v6698_v51, %s4877_s18  ;;  %v3892_v11 = vsub.f32 1.0, %v6696_v35  ;;  %v3868_v36 = vmul.f32 %v6605_v20, %v6696_v35  ;;  %v617_v20 = vrot.slane %v610_v60, %v4929_v14  ;;  %v8011_v60 = vld [vmem:[#allocation26_spill] sm:$0xff] }
 0xe05   :  { %v3898_v58 = vpop.permute.xlu1 %3897  ;;  %v668_v39 = vrot.slane %v661_v47, %v4929_v14  ;;  %v8010_v47 = vld [vmem:[#allocation34_spill] sm:$0xff] }
 0xe06   :  { %v6708_v2 = vmul.f32 %v3898_v58, %v3892_v11  ;;  %v6718_v38 = vmul.f32 %v6585_v9, %v3892_v11  ;;  %v4265_v9 = vpop.permute.xlu0 %4264  ;;  %v8004_v11 = vcombine.low %v8002_v62, %v8003_v49  ;;  %v1112_v62 = vcombine.low %v8012_v8, %v8011_v60 }
 0xe07   :  { %v6743_v5 = vmul.f32 %v6626_v45, %v4265_v9  ;;  %v8005_v9 = vld [vmem:[#allocation10_spill] sm:$0xff]  ;;  %v675_v48 = vrot.slane %v668_v39, %v4929_v14 }
 0xe08   :  { %4256 = vrot.lane.b32.xlu1 %v6708_v2, %s4877_s18  ;;  %4274 = vrot.lane.b32.xlu0 %v6706_v61, %s4877_s18  ;;  %v648_v58 = vrot.slane %v8004_v11, %v4929_v14  ;;  %v8015_v39 = vld [vmem:[#allocation22_spill] sm:$0xff] }
 0xe09   :  { %v4267_v25 = vpop.permute.xlu1 %4266 }
 0xe0a   :  { %v6746_v30 = vmul.f32 %v6639_v34, %v4267_v25  ;;  %v8006_v25 = vld [vmem:[#allocation9_spill] sm:$0xff]  ;;  %v655_v26 = vrot.slane %v648_v58, %v4929_v14  ;;  %v8013_v58 = vld [vmem:[#allocation32_spill] sm:$0xff] }
 0xe0b   :  { %v681_v16 = vcombine.low %v8006_v25, %v8005_v9  ;;  %v8014_v9 = vld [vmem:[#allocation30_spill] sm:$0xff] }
 0xe0c   :  { %4276 = vrot.lane.b32.xlu1 %v6718_v38, %s4877_s18  ;;  %4284 = vrot.lane.b32.xlu0 %v6715_v12, %s4872_s11  ;;  %v1132_v25 = vcombine.low %v8014_v9, %v8013_v58  ;;  %v8022_v58 = vld [vmem:[#allocation25_spill] sm:$0xff] }
 0xe0d   :  { %v688_v29 = vrot.slane %v681_v16, %v4929_v14 }
 0xe0f   :  { %v695_v49 = vrot.slane %v688_v29, %v4929_v14  ;;  %v8018_v29 = vld [vmem:[#allocation33_spill] sm:$0xff] }
 0xe10   :  { %4286 = vrot.lane.b32.xlu1 %v6725_v23, %s4872_s11  ;;  %4302 = vrot.lane.b32.xlu0 %v6626_v45, %s4875_s16 }
 0xe14   :  { %4304 = vrot.lane.b32.xlu1 %v6639_v34, %s4875_s16  ;;  %4208 = vrot.lane.b32.xlu0 %v6732_v42, %s4872_s11 }
 0xe18   :  { %4394 = vrot.lane.b32.xlu1 %v6639_v34, %s4878_s19  ;;  %4392 = vrot.lane.b32.xlu0 %v6626_v45, %s4878_s19 }
 0xe1c   :  { %4348 = vrot.lane.b32.xlu1 %v6639_v34, %s4879_s20  ;;  %4346 = vrot.lane.b32.xlu0 %v6626_v45, %s4879_s20 }
 0xe20   :  { %4370 = vrot.lane.b32.xlu1 %v6746_v30, %s4872_s11  ;;  %4368 = vrot.lane.b32.xlu0 %v6743_v5, %s4872_s11 }
 0xe24   :  { %4210 = vrot.lane.b32.xlu1 %v6765_v59, %s4872_s11  ;;  %3871 = vrot.lane.b32.xlu0 %v3867_v10, %s4877_s18  ;;  %v8007_v10 = vld [vmem:[#allocation31_spill] sm:$0xff] }
 0xe25   :  { %v1092_v27 = vcombine.low %v8008_v32, %v8007_v10  ;;  %v8017_v10 = vld [vmem:[#allocation35_spill] sm:$0xff] }
 0xe26   :  { %v1170_v32 = vcombine.low %v8018_v29, %v8017_v10 }
 0xe27   :  { %v1099_v11 = vrot.slane %v1092_v27, %v4929_v14 }
 0xe28   :  { %3873 = vrot.lane.b32.xlu1 %v3868_v36, %s4877_s18  ;;  %600 = vrot.lane.b32.xlu0 %v599_v37, %s4877_s18  ;;  %v8009_v36 = vld [vmem:[#allocation36_spill] sm:$0xff]  ;;  %v1177_v8 = vrot.slane %v1170_v32, %v4929_v14 }
 0xe29   :  { %v1072_v37 = vcombine.low %v8010_v47, %v8009_v36  ;;  %v1106_v36 = vrot.slane %v1099_v11, %v4929_v14  ;;  %v1139_v47 = vrot.slane %v1132_v25, %v4929_v14  ;;  %v8021_v11 = vld [vmem:[#allocation23_spill] sm:$0xff] }
 0xe2a   :  { %v8023_v9 = vcombine.low %v8021_v11, %v8022_v58 }
 0xe2b   :  { %v1079_v16 = vrot.slane %v1072_v37, %v4929_v14  ;;  %v8019_v37 = vld [vmem:[#allocation14_spill] sm:$0xff] }
 0xe2c   :  { %618 = vrot.lane.b32.xlu1 %v617_v20, %s4879_s20  ;;  %638 = vrot.lane.b32.xlu0 %v637_v21, %s4875_s16  ;;  %v8016_v20 = vld [vmem:[#allocation21_spill] sm:$0xff]  ;;  %v1215_v25 = vrot.slane %v8023_v9, %v4929_v14  ;;  %v8027_v9 = vld [vmem:[#allocation28_spill] sm:$0xff] }
 0xe2d   :  { %v1150_v21 = vcombine.low %v8016_v20, %v8015_v39  ;;  %v1086_v27 = vrot.slane %v1079_v16, %v4929_v14  ;;  %v8024_v20 = vld [vmem:[#allocation17_spill] sm:$0xff] }
 0xe2e   :  { %v1222_v32 = vrot.slane %v1215_v25, %v4929_v14  ;;  %v8028_v25 = vld [vmem:[#allocation27_spill] sm:$0xff] }
 0xe2f   :  { %v1157_v60 = vrot.slane %v1150_v21, %v4929_v14  ;;  %v8025_v21 = vld [vmem:[#allocation18_spill] sm:$0xff] }
 0xe30   :  { %656 = vrot.lane.b32.xlu1 %v655_v26, %s4872_s11  ;;  %676 = vrot.lane.b32.xlu0 %v675_v48, %s4877_s18  ;;  %v1119_v26 = vrot.slane %v1112_v62, %v4929_v14  ;;  %v1188_v48 = vcombine.low %v8020_v57, %v8019_v37 }
 0xe31   :  { %v1164_v16 = vrot.slane %v1157_v60, %v4929_v14 }
 0xe32   :  { %v1126_v62 = vrot.slane %v1119_v26, %v4929_v14  ;;  %v1195_v39 = vrot.slane %v1188_v48, %v4929_v14  ;;  %v8026_v26 = vcombine.low %v8024_v20, %v8025_v21  ;;  %v8029_v21 = vld [vmem:[#allocation20_spill] sm:$0xff] }
 0xe34   :  { %696 = vrot.lane.b32.xlu1 %v695_v49, %s4876_s17  ;;  %1067 = vrot.lane.b32.xlu0 %v1066_v55, %s4874_s1  ;;  %v1146_v49 = vrot.slane %v1139_v47, %v4929_v14  ;;  %v1184_v55 = vrot.slane %v1177_v8, %v4929_v14  ;;  %v1233_v10 = vrot.slane %v8026_v26, %v4929_v14  ;;  %v4357_v47 = vpop.permute.xlu1 %4356  ;;  %v8030_v26 = vld [vmem:[#allocation19_spill] sm:$0xff] }
 0xe35   :  { %v1202_v29 = vrot.slane %v1195_v39, %v4929_v14  ;;  %v6929_v4 = vmul.f32 %v6639_v34, %v4357_v47  ;;  %v8038_v47 = vld [vmem:[#allocation54_spill] sm:$0xff] }
 0xe38   :  { %1087 = vrot.lane.b32.xlu1 %v1086_v27, %s4879_s20  ;;  %1107 = vrot.lane.b32.xlu0 %v1106_v36, %s4877_s18  ;;  %v1240_v27 = vrot.slane %v1233_v10, %v4929_v14  ;;  %v4355_v36 = vpop.permute.xlu0 %4354  ;;  %v6853_v57 = vpop.permute.xlu1 %502  ;;  %v1266_v10 = vcombine.low %v8030_v26, %v8029_v21 }
 0xe39   :  { %v6894_v26 = vmul.f32 %v6626_v45, %v4355_v36 }
 0xe3a   :  { %v1273_v24 = vrot.slane %v1266_v10, %v4929_v14 }
 0xe3c   :  { %1127 = vrot.lane.b32.xlu1 %v1126_v62, %s4872_s11  ;;  %1147 = vrot.lane.b32.xlu0 %v1146_v49, %s4875_s16  ;;  %v6851_v37 = vpop.permute.xlu0 %482  ;;  %v6857_v60 = vpop.permute.xlu1 %542  ;;  %v1280_v36 = vrot.slane %v1273_v24, %v4929_v14 }
 0xe40   :  { %1165 = vrot.lane.b32.xlu1 %v1164_v16, %s4876_s17  ;;  %1185 = vrot.lane.b32.xlu0 %v1184_v55, %s4877_s18  ;;  %v6855_v48 = vpop.permute.xlu0 %522  ;;  %v6861_v62 = vpop.permute.xlu1 %580  ;;  %v1246_v16 = vcombine.low %v8028_v25, %v8027_v9  ;;  %v6873_v55 = vmul.f32 %v6626_v45, %v6626_v45 }
 0xe44   :  { %1203 = vrot.lane.b32.xlu1 %v1202_v29, %s4879_s20  ;;  %1223 = vrot.lane.b32.xlu0 %v1222_v32, %s4875_s16  ;;  %v6859_v8 = vpop.permute.xlu0 %562  ;;  %v1253_v29 = vrot.slane %v1246_v16, %v4929_v14 }
 0xe46   :  { %v1260_v16 = vrot.slane %v1253_v29, %v4929_v14 }
 0xe48   :  { %1241 = vrot.lane.b32.xlu1 %v1240_v27, %s4872_s11  ;;  %v6883_v27 = vmul.f32 %v6639_v34, %v6639_v34 }
 0xe76   :  { %v6863_v49 = vpop.permute.xlu0 %4254 }
 0xe7a   :  { %v6865_v11 = vpop.permute.xlu1 %4256  ;;  %v6867_v58 = vpop.permute.xlu0 %4274 }
 0xe7e   :  { %v6875_v39 = vpop.permute.xlu1 %4276  ;;  %v4285_v20 = vpop.permute.xlu0 %4284 }
 0xe7f   :  { %v4290_v32 = vmul.f32 %v4285_v20, %v6873_v55  ;;  %v4380_v29 = vmul.f32 %v6894_v26, %v4285_v20  ;;  %v1661_v20 = vrot.slane %v1654_v19, %v4929_v14 }
 0xe81   :  { %4294 = vrot.lane.b32.xlu0 %v4290_v32, %s4872_s11  ;;  %v8032_v32 = vld [vmem:[#allocation48_spill] sm:$0xff] }
 0xe82   :  { %v4287_v9 = vpop.permute.xlu1 %4286  ;;  %v6886_v25 = vpop.permute.xlu0 %4302  ;;  %v1687_v17 = vcombine.low %v8033_v33, %v8032_v32  ;;  %v8036_v32 = vld [vmem:[#allocation53_spill] sm:$0xff] }
 0xe83   :  { %v4291_v21 = vmul.f32 %v4287_v9, %v6883_v27  ;;  %v1667_v52 = vcombine.low %v8037_v28, %v8036_v32  ;;  %v1641_v28 = vrot.slane %v1634_v0, %v4929_v14 }
 0xe85   :  { %4296 = vrot.lane.b32.xlu1 %v4291_v21, %s4872_s11  ;;  %1261 = vrot.lane.b32.xlu0 %v1260_v16, %s4877_s18  ;;  %v1694_v21 = vrot.slane %v1687_v17, %v4929_v14  ;;  %v1674_v7 = vrot.slane %v1667_v52, %v4929_v14  ;;  %v8039_v52 = vld [vmem:[#allocation52_spill] sm:$0xff] }
 0xe86   :  { %v6900_v35 = vpop.permute.xlu1 %4304  ;;  %v4209_v10 = vpop.permute.xlu0 %4208 }
 0xe87   :  { %v4214_v43 = vmul.f32 %v6626_v45, %v4209_v10  ;;  %v1681_v32 = vrot.slane %v1674_v7, %v4929_v14 }
 0xe89   :  { %1281 = vrot.lane.b32.xlu1 %v1280_v36, %s4876_s17  ;;  %4384 = vrot.lane.b32.xlu0 %v4380_v29, %s4872_s11  ;;  %v1701_v29 = vrot.slane %v1694_v21, %v4929_v14  ;;  %v4381_v36 = vmul.f32 %v6929_v4, %v4287_v9 }
 0xe8a   :  { %v6910_v16 = vpop.permute.xlu1 %4394  ;;  %v6912_v33 = vpop.permute.xlu0 %4392 }
 0xe8d   :  { %1662 = vrot.lane.b32.xlu1 %v1661_v20, %s4879_s20  ;;  %4218 = vrot.lane.b32.xlu0 %v4214_v43, %s4872_s11  ;;  %v1707_v43 = vcombine.low %v8039_v52, %v8038_v47  ;;  %v700_v47 = vsel %vm699_vm1, %v6851_v37, %v6853_v57  ;;  %v8043_v52 = vld [vmem:[#allocation37_spill] sm:$0xff] }
 0xe8e   :  { %v6921_v24 = vpop.permute.xlu1 %4348  ;;  %v6923_v17 = vpop.permute.xlu0 %4346  ;;  %v702_v44 = vsel %vm701_vm2, %v700_v47, %v6855_v48 }
 0xe8f   :  { %v704_v31 = vsel %vm703_vm3, %v702_v44, %v6857_v60 }
 0xe91   :  { %1702 = vrot.lane.b32.xlu1 %v1701_v29, %s4872_s11  ;;  %1642 = vrot.lane.b32.xlu0 %v1641_v28, %s4874_s1  ;;  %v8040_v29 = vld [vmem:[#allocation44_spill] sm:$0xff]  ;;  %v8041_v28 = vld [vmem:[#allocation43_spill] sm:$0xff] }
 0xe92   :  { %v6933_v19 = vpop.permute.xlu1 %4370  ;;  %v6935_v10 = vpop.permute.xlu0 %4368 }
 0xe95   :  { %4386 = vrot.lane.b32.xlu1 %v4381_v36, %s4872_s11  ;;  %1682 = vrot.lane.b32.xlu0 %v1681_v32, %s4877_s18  ;;  %v1725_v36 = vcombine.low %v8041_v28, %v8040_v29  ;;  %v1714_v32 = vrot.slane %v1707_v43, %v4929_v14  ;;  %v8044_v43 = vld [vmem:[#allocation55_spill] sm:$0xff]  ;;  %v8045_v28 = vld [vmem:[#allocation56_spill] sm:$0xff] }
 0xe96   :  { %v4211_v0 = vpop.permute.xlu1 %4210  ;;  %v6941_v21 = vpop.permute.xlu0 %3871  ;;  %v8046_v18 = vcombine.low %v8044_v43, %v8045_v28  ;;  %v706_v28 = vsel %vm705_vm4, %v704_v31, %v6859_v8 }
 0xe97   :  { %v4215_v20 = vmul.f32 %v6639_v34, %v4211_v0  ;;  %v8042_v0 = vld [vmem:[#allocation38_spill] sm:$0xff]  ;;  %v1732_v29 = vrot.slane %v1725_v36, %v4929_v14  ;;  %v1721_v57 = vrot.slane %v1714_v32, %v4929_v14 }
 0xe98   :  { %v1752_v37 = vrot.slane %v8046_v18, %v4929_v14 }
 0xe99   :  { %4220 = vrot.lane.b32.xlu1 %v4215_v20, %s4872_s11  ;;  %4234 = vrot.lane.b32.xlu0 %v6732_v42, %s4878_s19  ;;  %v1763_v20 = vcombine.low %v8043_v52, %v8042_v0  ;;  %v8047_v0 = vld [vmem:[#allocation45_spill] sm:$0xff]  ;;  %v8048_v52 = vld [vmem:[#allocation46_spill] sm:$0xff]  ;;  %v1739_v44 = vrot.slane %v1732_v29, %v4929_v14 }
 0xe9a   :  { %v6949_v9 = vpop.permute.xlu1 %3873  ;;  %v601_v7 = vpop.permute.xlu0 %600  ;;  %v8049_v18 = vcombine.low %v8047_v0, %v8048_v52  ;;  %v1759_v60 = vrot.slane %v1752_v37, %v4929_v14  ;;  %v708_v52 = vsel %vm707_vm5, %v706_v28, %v6861_v62  ;;  %v8053_v29 = vld [vmem:[#allocation42_spill] sm:$0xff]  ;;  %v8054_v37 = vld [vmem:[#allocation41_spill] sm:$0xff] }
 0xe9b   :  { %v1770_v36 = vrot.slane %v1763_v20, %v4929_v14  ;;  %v8050_v20 = vld [vmem:[#allocation39_spill] sm:$0xff]  ;;  %v710_v31 = vsel %vm709_vm6, %v708_v52, %v601_v7  ;;  %v8058_v7 = vlaneseq }
 0xe9c   :  { %v1790_v43 = vrot.slane %v8049_v18, %v4929_v14  ;;  %v1841_v18 = vcombine.low %v8054_v37, %v8053_v29  ;;  %v8063_v37 = vld [vmem:[#allocation81_spill] sm:$0xff] }
 0xe9d   :  { %4236 = vrot.lane.b32.xlu1 %v6765_v59, %s4878_s19  ;;  %4328 = vrot.lane.b32.xlu0 %v6715_v12, %s4878_s19  ;;  %vm7011_vm8 = vcmp.lt.s32.totalorder %v8058_v7, 192 }
 0xe9e   :  { %v619_v63 = vpop.permute.xlu1 %618  ;;  %v639_v41 = vpop.permute.xlu0 %638 }
 0xea1   :  { %4330 = vrot.lane.b32.xlu1 %v6725_v23, %s4878_s19  ;;  %1722 = vrot.lane.b32.xlu0 %v1721_v57, %s4875_s16  ;;  %v8051_v57 = vld [vmem:[#allocation40_spill] sm:$0xff] }
 0xea2   :  { %v657_v32 = vpop.permute.xlu1 %656  ;;  %v677_v47 = vpop.permute.xlu0 %676  ;;  %v8052_v42 = vcombine.low %v8050_v20, %v8051_v57  ;;  %v1797_v20 = vrot.slane %v1790_v43, %v4929_v14  ;;  %v8056_v57 = vld [vmem:[#allocation50_spill] sm:$0xff] }
 0xea3   :  { %v713_v48 = vsel %vm699_vm1, %v639_v41, %v657_v32  ;;  %v1777_v41 = vrot.slane %v1770_v36, %v4929_v14  ;;  %v712_v36 = vsel %vm711_vm7, %v710_v31, %v619_v63  ;;  %v8062_v63 = vld [vmem:[#allocation74_spill] sm:$0xff]  ;;  %v8064_v31 = vld [vmem:[#allocation80_spill] sm:$0xff] }
 0xea4   :  { %v1808_v0 = vrot.slane %v8052_v42, %v4929_v14  ;;  %v714_v8 = vsel %vm701_vm2, %v713_v48, %v677_v47  ;;  %v8055_v42 = vld [vmem:[#allocation49_spill] sm:$0xff]  ;;  %v1848_v48 = vrot.slane %v1841_v18, %v4929_v14  ;;  %v8065_v18 = vld [vmem:[#allocation71_spill] sm:$0xff] }
 0xea5   :  { %1740 = vrot.lane.b32.xlu1 %v1739_v44, %s4876_s17  ;;  %1760 = vrot.lane.b32.xlu0 %v1759_v60, %s4877_s18  ;;  %v8057_v62 = vcombine.low %v8055_v42, %v8056_v57  ;;  %v2202_v44 = vcombine.low %v6052_v1, %v6055_v3  ;;  %v8061_v3 = vld [vmem:[#allocation76_spill] sm:$0xff]  ;;  %v8066_v57 = vld [vmem:[#allocation70_spill] sm:$0xff] }
 0xea6   :  { %v697_v32 = vpop.permute.xlu1 %696  ;;  %v1815_v1 = vrot.slane %v1808_v0, %v4929_v14  ;;  %v2242_v52 = vcombine.low %v8062_v63, %v8061_v3  ;;  %v2262_v0 = vcombine.low %v8066_v57, %v8065_v18  ;;  %v8074_v18 = vld [vmem:[#allocation79_spill] sm:$0xff] }
 0xea7   :  { %v1828_v28 = vrot.slane %v8057_v62, %v4929_v14  ;;  %v715_v60 = vsel %vm703_vm3, %v714_v8, %v697_v32  ;;  %v2222_v8 = vcombine.low %v8064_v31, %v8063_v37 }
 0xea8   :  { %v718_v29 = vcombine.low %v712_v36, %v715_v60  ;;  %v8067_v36 = vld [vmem:[#allocation77_spill] sm:$0xff]  ;;  %v8068_v60 = vld [vmem:[#allocation75_spill] sm:$0xff]  ;;  %v2269_v63 = vrot.slane %v2262_v0, %v4929_v14 }
 0xea9   :  { %1778 = vrot.lane.b32.xlu1 %v1777_v41, %s4879_s20  ;;  %1798 = vrot.lane.b32.xlu0 %v1797_v20, %s4875_s16  ;;  %v2209_v41 = vrot.slane %v2202_v44, %v4929_v14  ;;  %v1835_v32 = vrot.slane %v1828_v28, %v4929_v14  ;;  %v1855_v28 = vrot.slane %v1848_v48, %v4929_v14  ;;  %v8069_v48 = vld [vmem:[#allocation67_spill] sm:$0xff] }
 0xeaa   :  { %v725_v47 = vrot.slane %v718_v29, %v4929_v14  ;;  %v2249_v44 = vrot.slane %v2242_v52, %v4929_v14  ;;  %v2282_v29 = vcombine.low %v8068_v60, %v8067_v36  ;;  %v2229_v7 = vrot.slane %v2222_v8, %v4929_v14  ;;  %v8071_v8 = vld [vmem:[#allocation59_spill] sm:$0xff] }
 0xeac   :  { %v726_v20 = vcombine.high %v725_v47, %v725_v47  ;;  %v733_v42 = vrot.slane %v725_v47, %v4929_v14  ;;  %v2216_v47 = vrot.slane %v2209_v41, %v4929_v14  ;;  %v2236_v52 = vrot.slane %v2229_v7, %v4929_v14  ;;  %v8072_v41 = vld [vmem:[#allocation58_spill] sm:$0xff]  ;;  %v1068_v7 = vpop.permute.xlu0 %1067 }
 0xead   :  { %1816 = vrot.lane.b32.xlu1 %v1815_v1, %s4872_s11  ;;  %1836 = vrot.lane.b32.xlu0 %v1835_v32, %s4877_s18  ;;  %v8070_v1 = vld [vmem:[#allocation66_spill] sm:$0xff]  ;;  %v2256_v37 = vrot.slane %v2249_v44, %v4929_v14  ;;  %v2289_v31 = vrot.slane %v2282_v29, %v4929_v14  ;;  %v2338_v32 = vcombine.low %v8072_v41, %v8071_v8 }
 0xeae   :  { %v740_v62 = vrot.slane %v726_v20, %v4929_v14  ;;  %747 = vst.msk [vmem:[%s7731_s2] ss:$8 sm:$0x3] %vm7011_vm8, %v733_v42  ;;  %v2300_v3 = vcombine.low %v8070_v1, %v8069_v48  ;;  %v8073_v42 = vld [vmem:[#allocation78_spill] sm:$0xff] }
 0xeaf   :  { %v8075_v57 = vcombine.low %v8073_v42, %v8074_v18  ;;  %v2345_v60 = vrot.slane %v2338_v32, %v4929_v14  ;;  %v7084_v32 = vmul.f32 2.0, %v6746_v30 }
 0xeb0   :  { %4801 = vst.msk [vmem:[%s7731_s2 + $0x10] ss:$8 sm:$0x3] %vm7011_vm8, %v740_v62  ;;  %v2307_v20 = vrot.slane %v2300_v3, %v4929_v14  ;;  %v2276_v62 = vrot.slane %v2269_v63, %v4929_v14  ;;  %v1108_v48 = vpop.permute.xlu0 %1107 }
 0xeb1   :  { %1856 = vrot.lane.b32.xlu1 %v1855_v28, %s4876_s17  ;;  %2217 = vrot.lane.b32.xlu0 %v2216_v47, %s4874_s1  ;;  %v2327_v0 = vrot.slane %v8075_v57, %v4929_v14  ;;  %v2296_v28 = vrot.slane %v2289_v31, %v4929_v14  ;;  %v2352_v29 = vrot.slane %v2345_v60, %v4929_v14  ;;  %v1088_v47 = vpop.permute.xlu1 %1087 }
 0xeb2   :  { %v2314_v44 = vrot.slane %v2307_v20, %v4929_v14  ;;  %v4260_v20 = vmul.f32 %v6863_v49, %v6873_v55  ;;  %v1284_v42 = vsel %vm699_vm1, %v1068_v7, %v1088_v47  ;;  %v4281_v18 = vmul.f32 %v6875_v39, %v7084_v32 }
 0xeb3   :  { %v2334_v36 = vrot.slane %v2327_v0, %v4929_v14 }
 0xeb4   :  { %v1148_v3 = vpop.permute.xlu0 %1147 }
 0xeb5   :  { %2237 = vrot.lane.b32.xlu1 %v2236_v52, %s4879_s20  ;;  %2257 = vrot.lane.b32.xlu0 %v2256_v37, %s4877_s18  ;;  %v1128_v1 = vpop.permute.xlu1 %1127  ;;  %v7079_v37 = vmul.f32 2.0, %v6743_v5  ;;  %v1285_v5 = vsel %vm701_vm2, %v1284_v42, %v1108_v48 }
 0xeb7   :  { %v4280_v8 = vmul.f32 %v6867_v58, %v7079_v37 }
 0xeb8   :  { %v1186_v52 = vpop.permute.xlu0 %1185 }
 0xeb9   :  { %2277 = vrot.lane.b32.xlu1 %v2276_v62, %s4872_s11  ;;  %2297 = vrot.lane.b32.xlu0 %v2296_v28, %s4875_s16  ;;  %v1166_v63 = vpop.permute.xlu1 %1165  ;;  %v4282_v57 = vadd.f32 %v4280_v8, %v4260_v20  ;;  %v4261_v28 = vmul.f32 %v6865_v11, %v6883_v27 }
 0xebc   :  { %v1224_v41 = vpop.permute.xlu0 %1223 }
 0xebd   :  { %2315 = vrot.lane.b32.xlu1 %v2314_v44, %s4876_s17  ;;  %2335 = vrot.lane.b32.xlu0 %v2334_v36, %s4877_s18  ;;  %v1204_v31 = vpop.permute.xlu1 %1203  ;;  %v1286_v44 = vsel %vm703_vm3, %v1285_v5, %v1128_v1  ;;  %v4364_v36 = vmul.f32 %v6626_v45, %v6923_v17 }
 0xebe   :  { %v1287_v7 = vsel %vm705_vm4, %v1286_v44, %v1148_v3 }
 0xebf   :  { %v1288_v48 = vsel %vm707_vm5, %v1287_v7, %v1166_v63  ;;  %v4374_v1 = vadd.f32 %v6935_v10, %v4364_v36  ;;  %v4362_v7 = vmul.f32 %v6894_v26, %v6863_v49 }
 0xec0   :  { %v1289_v3 = vsel %vm709_vm6, %v1288_v48, %v1186_v52 }
 0xec1   :  { %2353 = vrot.lane.b32.xlu1 %v2352_v29, %s4879_s20  ;;  %4310 = vrot.lane.b32.xlu0 %v6698_v51, %s4875_s16  ;;  %v1242_v0 = vpop.permute.xlu1 %1241  ;;  %v4283_v29 = vadd.f32 %v4281_v18, %v4261_v28  ;;  %v1290_v10 = vsel %vm711_vm7, %v1289_v3, %v1204_v31  ;;  %v4376_v52 = vmul.f32 %v4374_v1, %v6867_v58 }
 0xec3   :  { %v4378_v48 = vadd.f32 %v4376_v52, %v4362_v7 }
 0xec5   :  { %4312 = vrot.lane.b32.xlu1 %v6708_v2, %s4875_s16 }
 0xef3   :  { %v4295_v62 = vpop.permute.xlu0 %4294 }
 0xef4   :  { %v4300_v30 = vadd.f32 %v4295_v62, %v4282_v57  ;;  %v7107_v57 = vadd.f32 %v6941_v21, %v6549_v46 }
 0xef6   :  { %v7098_v60 = vadd.f32 %v6886_v25, %v4300_v30  ;;  %v1291_v25 = vsel %vm699_vm1, %v1224_v41, %v1242_v0  ;;  %v4206_v0 = vmul.f32 %v6626_v45, %v7107_v57 }
 0xef7   :  { %v4297_v47 = vpop.permute.xlu1 %4296  ;;  %v1262_v8 = vpop.permute.xlu0 %1261 }
 0xef8   :  { %v4398_v20 = vadd.f32 %v6912_v33, %v7098_v60  ;;  %v4301_v42 = vadd.f32 %v4297_v47, %v4283_v29  ;;  %v1292_v63 = vsel %vm701_vm2, %v1291_v25, %v1262_v8  ;;  %v4365_v33 = vmul.f32 %v6639_v34, %v6921_v24 }
 0xef9   :  { %v7153_v25 = vadd.f32 %v6949_v9, %v6555_v15 }
 0xefa   :  { %v4400_v5 = vadd.f32 1e-12, %v4398_v20  ;;  %v7111_v18 = vadd.f32 %v6900_v35, %v4301_v42  ;;  %v4375_v35 = vadd.f32 %v6933_v19, %v4365_v33  ;;  %v4363_v42 = vmul.f32 %v6929_v4, %v6865_v11 }
 0xefb   :  { %v1282_v62 = vpop.permute.xlu1 %1281  ;;  %v4385_v28 = vpop.permute.xlu0 %4384  ;;  %v4207_v9 = vmul.f32 %v6639_v34, %v7153_v25 }
 0xefc   :  { %4866 = vrcp.f32 %v4400_v5  ;;  %v1293_v21 = vsel %vm703_vm3, %v1292_v63, %v1282_v62  ;;  %v4399_v30 = vadd.f32 %v6910_v16, %v7111_v18  ;;  %v4377_v58 = vmul.f32 %v4375_v35, %v6875_v39 }
 0xefd   :  { %v1296_v44 = vcombine.low %v1290_v10, %v1293_v21  ;;  %v7144_v1 = vadd.f32 %v4385_v28, %v4378_v48 }
 0xefe   :  { %v4401_v20 = vadd.f32 1e-12, %v4399_v30  ;;  %v4379_v5 = vadd.f32 %v4377_v58, %v4363_v42 }
 0xeff   :  { %v1303_v36 = vrot.slane %v1296_v44, %v4929_v14  ;;  %v1663_v31 = vpop.permute.xlu1 %1662  ;;  %v4219_v29 = vpop.permute.xlu0 %4218 }
 0xf00   :  { %v7130_v47 = vadd.f32 %v4219_v29, %v4206_v0  ;;  %4868 = vrcp.f32 %v4401_v20 }
 0xf01   :  { %v1304_v8 = vcombine.high %v1303_v36, %v1303_v36  ;;  %v1311_v19 = vrot.slane %v1303_v36, %v4929_v14 }
 0xf02   :  { %4434 = vrot.lane.b32.xlu0 %v7130_v47, %s4874_s1 }
 0xf03   :  { %v1318_v16 = vrot.slane %v1304_v8, %v4929_v14  ;;  %4804 = vst.msk [vmem:[%s7731_s2 + $0x1] ss:$8 sm:$0x3] %vm7011_vm8, %v1311_v19  ;;  %v1703_v49 = vpop.permute.xlu1 %1702  ;;  %v1643_v26 = vpop.permute.xlu0 %1642 }
 0xf04   :  { %v1859_v58 = vsel %vm699_vm1, %v1643_v26, %v1663_v31  ;;  %v8077_v31 = vld [vmem:[#allocation69_spill] sm:$0xff] }
 0xf05   :  { %4805 = vst.msk [vmem:[%s7731_s2 + $0x11] ss:$8 sm:$0x3] %vm7011_vm8, %v1318_v16 }
 0xf06   :  { %v4867_v39 = vpop.eup %4866  ;;  %4480 = vrot.lane.b32.xlu0 %v7144_v1, %s4874_s1 }
 0xf07   :  { %v4387_v3 = vpop.permute.xlu1 %4386  ;;  %v1683_v11 = vpop.permute.xlu0 %1682  ;;  %v4404_v4 = vmul.f32 %v4867_v39, %v7098_v60  ;;  %v4420_v10 = vmul.f32 %v4867_v39, %v7144_v1 }
 0xf08   :  { %v7158_v63 = vadd.f32 %v4387_v3, %v4379_v5  ;;  %v1860_v48 = vsel %vm701_vm2, %v1859_v58, %v1683_v11 }
 0xf09   :  { %v1861_v39 = vsel %vm703_vm3, %v1860_v48, %v1703_v49  ;;  %v8079_v49 = vld [vmem:[#allocation72_spill] sm:$0xff] }
 0xf0a   :  { %v4676_v62 = vcombine.low %v7144_v1, %v7158_v63  ;;  %4412 = vrot.lane.b32.xlu0 %v4404_v4, %s4874_s1  ;;  %v4869_v52 = vpop.eup %4868  ;;  %v8139_v1 = vld [vmem:[#allocation121_spill] sm:$0xff] }
 0xf0b   :  { %v4221_v28 = vpop.permute.xlu1 %4220  ;;  %v4235_v33 = vpop.permute.xlu0 %4234  ;;  %v4405_v36 = vmul.f32 %v4869_v52, %v7111_v18  ;;  %v4421_v8 = vmul.f32 %v4869_v52, %v7158_v63 }
 0xf0c   :  { %v7166_v21 = vadd.f32 %v4221_v28, %v4207_v9  ;;  %v4240_v19 = vmul.f32 %v6626_v45, %v4235_v33  ;;  %v8076_v45 = vld [vmem:[#allocation68_spill] sm:$0xff]  ;;  %v8080_v33 = vld [vmem:[#allocation73_spill] sm:$0xff] }
 0xf0d   :  { %v8078_v26 = vcombine.low %v8076_v45, %v8077_v31  ;;  %v8084_v45 = vld [vmem:[#allocation97_spill] sm:$0xff]  ;;  %v8085_v31 = vld [vmem:[#allocation96_spill] sm:$0xff] }
 0xf0e   :  { %4436 = vrot.lane.b32.xlu1 %v7166_v21, %s4874_s1  ;;  %4424 = vrot.lane.b32.xlu0 %v4420_v10, %s4874_s1  ;;  %v8081_v10 = vcombine.low %v8079_v49, %v8080_v33  ;;  %v8089_v49 = vld [vmem:[#allocation63_spill] sm:$0xff]  ;;  %v8090_v33 = vld [vmem:[#allocation62_spill] sm:$0xff] }
 0xf0f   :  { %v4237_v44 = vpop.permute.xlu1 %4236  ;;  %v4329_v35 = vpop.permute.xlu0 %4328  ;;  %v2365_v5 = vrot.slane %v8078_v26, %v4929_v14  ;;  %v2817_v26 = vcombine.low %v8085_v31, %v8084_v45 }
 0xf10   :  { %v4334_v42 = vmul.f32 %v4329_v35, %v6873_v55  ;;  %v2403_v35 = vrot.slane %v8081_v10, %v4929_v14  ;;  %v4241_v48 = vmul.f32 %v6639_v34, %v4237_v44  ;;  %v2416_v10 = vcombine.low %v8090_v33, %v8089_v49  ;;  %v8101_v33 = vld [vmem:[#allocation90_spill] sm:$0xff] }
 0xf12   :  { %4482 = vrot.lane.b32.xlu1 %v7158_v63, %s4874_s1  ;;  %4318 = vrot.lane.b32.xlu0 %v6706_v61, %s4875_s16  ;;  %v2410_v34 = vrot.slane %v2403_v35, %v4929_v14  ;;  %v8091_v35 = vld [vmem:[#allocation99_spill] sm:$0xff] }
 0xf13   :  { %v4331_v0 = vpop.permute.xlu1 %4330  ;;  %v1723_v30 = vpop.permute.xlu0 %1722 }
 0xf14   :  { %v1862_v3 = vsel %vm705_vm4, %v1861_v39, %v1723_v30 }
 0xf16   :  { %4414 = vrot.lane.b32.xlu1 %v4405_v36, %s4874_s1  ;;  %4226 = vrot.lane.b32.xlu0 %v7107_v57, %s4877_s18 }
 0xf17   :  { %v1741_v29 = vpop.permute.xlu1 %1740  ;;  %v1761_v7 = vpop.permute.xlu0 %1760 }
 0xf18   :  { %v1863_v11 = vsel %vm707_vm5, %v1862_v3, %v1741_v29  ;;  %v2372_v29 = vrot.slane %v2365_v5, %v4929_v14  ;;  %v4335_v3 = vmul.f32 %v4331_v0, %v6883_v27  ;;  %v2824_v0 = vrot.slane %v2817_v26, %v4929_v14 }
 0xf19   :  { %v1864_v52 = vsel %vm709_vm6, %v1863_v11, %v1761_v7  ;;  %v8087_v11 = vld [vmem:[#allocation61_spill] sm:$0xff] }
 0xf1a   :  { %4426 = vrot.lane.b32.xlu1 %v4421_v8, %s4874_s1  ;;  %4244 = vrot.lane.b32.xlu0 %v4240_v19, %s4872_s11  ;;  %v8082_v8 = vld [vmem:[#allocation109_spill] sm:$0xff]  ;;  %v8083_v19 = vld [vmem:[#allocation108_spill] sm:$0xff]  ;;  %v2831_v45 = vrot.slane %v2824_v0, %v4929_v14 }
 0xf1b   :  { %v1779_v20 = vpop.permute.xlu1 %1778  ;;  %v1799_v16 = vpop.permute.xlu0 %1798  ;;  %v2777_v58 = vcombine.low %v8083_v19, %v8082_v8  ;;  %v2423_v8 = vrot.slane %v2416_v10, %v4929_v14  ;;  %v8102_v10 = vld [vmem:[#allocation91_spill] sm:$0xff] }
 0xf1d   :  { %v2784_v5 = vrot.slane %v2777_v58, %v4929_v14  ;;  %v8093_v58 = vld [vmem:[#allocation102_spill] sm:$0xff]  ;;  %v2430_v26 = vrot.slane %v2423_v8, %v4929_v14 }
 0xf1e   :  { %4320 = vrot.lane.b32.xlu1 %v6718_v38, %s4875_s16  ;;  %4338 = vrot.lane.b32.xlu0 %v4334_v42, %s4872_s11 }
 0xf1f   :  { %v1817_v4 = vpop.permute.xlu1 %1816  ;;  %v1837_v28 = vpop.permute.xlu0 %1836 }
 0xf20   :  { %v1866_v9 = vsel %vm699_vm1, %v1799_v16, %v1817_v4  ;;  %v1865_v16 = vsel %vm711_vm7, %v1864_v52, %v1779_v20  ;;  %v8086_v4 = vld [vmem:[#allocation60_spill] sm:$0xff] }
 0xf21   :  { %v1867_v30 = vsel %vm701_vm2, %v1866_v9, %v1837_v28  ;;  %v8088_v9 = vcombine.low %v8086_v4, %v8087_v11  ;;  %v8099_v11 = vld [vmem:[#allocation87_spill] sm:$0xff] }
 0xf22   :  { %4228 = vrot.lane.b32.xlu1 %v7153_v25, %s4877_s18  ;;  %4470 = vrot.lane.b32.xlu0 %v7098_v60, %s4874_s1 }
 0xf23   :  { %v1857_v36 = vpop.permute.xlu1 %1856  ;;  %v2383_v28 = vrot.slane %v8088_v9, %v4929_v14  ;;  %v8100_v9 = vld [vmem:[#allocation86_spill] sm:$0xff] }
 0xf24   :  { %v1868_v42 = vsel %vm703_vm3, %v1867_v30, %v1857_v36  ;;  %v8092_v30 = vld [vmem:[#allocation98_spill] sm:$0xff] }
 0xf25   :  { %v1871_v39 = vcombine.low %v1865_v16, %v1868_v42  ;;  %v2857_v36 = vcombine.low %v8092_v30, %v8091_v35  ;;  %v2390_v19 = vrot.slane %v2383_v28, %v4929_v14  ;;  %v8095_v42 = vld [vmem:[#allocation103_spill] sm:$0xff]  ;;  %v2875_v28 = vcombine.low %v8100_v9, %v8099_v11 }
 0xf26   :  { %4246 = vrot.lane.b32.xlu1 %v4241_v48, %s4872_s11  ;;  %2373 = vrot.lane.b32.xlu0 %v2372_v29, %s4875_s16  ;;  %v2791_v29 = vrot.slane %v2784_v5, %v4929_v14  ;;  %v8094_v48 = vld [vmem:[#allocation100_spill] sm:$0xff]  ;;  %v8097_v5 = vld [vmem:[#allocation93_spill] sm:$0xff] }
 0xf27   :  { %v1878_v7 = vrot.slane %v1871_v39, %v4929_v14  ;;  %v2895_v16 = vcombine.low %v8094_v48, %v8093_v58  ;;  %v8096_v39 = vld [vmem:[#allocation101_spill] sm:$0xff]  ;;  %v2864_v31 = vrot.slane %v2857_v36, %v4929_v14  ;;  %v8104_v36 = vld [vmem:[#allocation83_spill] sm:$0xff]  ;;  %v8106_v58 = vld [vmem:[#allocation94_spill] sm:$0xff] }
 0xf28   :  { %v8107_v48 = vld [vmem:[#allocation95_spill] sm:$0xff] }
 0xf29   :  { %v1879_v44 = vcombine.high %v1878_v7, %v1878_v7  ;;  %v1886_v20 = vrot.slane %v1878_v7, %v4929_v14  ;;  %v2797_v7 = vcombine.low %v8096_v39, %v8095_v42  ;;  %v2871_v4 = vrot.slane %v2864_v31, %v4929_v14 }
 0xf2a   :  { %4340 = vrot.lane.b32.xlu1 %v4335_v3, %s4872_s11  ;;  %2411 = vrot.lane.b32.xlu0 %v2410_v34, %s4877_s18  ;;  %v8098_v3 = vld [vmem:[#allocation92_spill] sm:$0xff] }
 0xf2b   :  { %v1893_v52 = vrot.slane %v1879_v44, %v4929_v14  ;;  %4808 = vst.msk [vmem:[%s7731_s2 + $0x2] ss:$8 sm:$0x3] %vm7011_vm8, %v1886_v20  ;;  %v2837_v34 = vcombine.low %v8098_v3, %v8097_v5  ;;  %v2902_v44 = vrot.slane %v2895_v16, %v4929_v14  ;;  %v2804_v20 = vrot.slane %v2797_v7, %v4929_v14  ;;  %v8109_v5 = vld [vmem:[#allocation84_spill] sm:$0xff]  ;;  %v8110_v3 = vld [vmem:[#allocation85_spill] sm:$0xff] }
 0xf2c   :  { %v8108_v16 = vcombine.low %v8106_v58, %v8107_v48 }
 0xf2d   :  { %4809 = vst.msk [vmem:[%s7731_s2 + $0x12] ss:$8 sm:$0x3] %vm7011_vm8, %v1893_v52  ;;  %v2844_v49 = vrot.slane %v2837_v34, %v4929_v14  ;;  %v8103_v52 = vcombine.low %v8101_v33, %v8102_v10  ;;  %v2811_v35 = vrot.slane %v2804_v20, %v4929_v14  ;;  %v2909_v30 = vrot.slane %v2902_v44, %v4929_v14  ;;  %v8112_v20 = vld [vmem:[#allocation89_spill] sm:$0xff]  ;;  %v7306_v10 = vpop.permute.xlu0 %2217 }
 0xf2e   :  { %4472 = vrot.lane.b32.xlu1 %v7111_v18, %s4874_s1  ;;  %2792 = vrot.lane.b32.xlu0 %v2791_v29, %s4874_s1  ;;  %v8105_v29 = vld [vmem:[#allocation82_spill] sm:$0xff]  ;;  %v2978_v42 = vrot.slane %v8108_v16, %v4929_v14  ;;  %v8111_v34 = vcombine.low %v8109_v5, %v8110_v3 }
 0xf2f   :  { %v2940_v0 = vrot.slane %v8103_v52, %v4929_v14  ;;  %v2913_v8 = vcombine.low %v8105_v29, %v8104_v36  ;;  %v2851_v39 = vrot.slane %v2844_v49, %v4929_v14  ;;  %v7327_v16 = vld [vmem:[%s7729_s0 + $0x7] ss:$8 sm:$0x3] }
 0xf30   :  { %v2985_v31 = vrot.slane %v2978_v42, %v4929_v14  ;;  %v2958_v44 = vrot.slane %v8111_v34, %v4929_v14  ;;  %v4406_v42 = vrot.slane %v7327_v16, 1 }
 0xf31   :  { %v2947_v7 = vrot.slane %v2940_v0, %v4929_v14  ;;  %v7308_v52 = vpop.permute.xlu0 %2257  ;;  %v7310_v0 = vpop.permute.xlu1 %2237 }
 0xf32   :  { %2391 = vrot.lane.b32.xlu1 %v2390_v19, %s4872_s11  ;;  %2832 = vrot.lane.b32.xlu0 %v2831_v45, %s4877_s18  ;;  %v2882_v19 = vrot.slane %v2875_v28, %v4929_v14  ;;  %v2965_v49 = vrot.slane %v2958_v44, %v4929_v14  ;;  %v3352_v44 = vcombine.low %v6542_v50, %v6545_v54 }
 0xf34   :  { %v2889_v45 = vrot.slane %v2882_v19, %v4929_v14 }
 0xf36   :  { %2431 = vrot.lane.b32.xlu1 %v2430_v26, %s4876_s17  ;;  %2872 = vrot.lane.b32.xlu0 %v2871_v4, %s4875_s16  ;;  %v2920_v26 = vrot.slane %v2913_v8, %v4929_v14  ;;  %v8113_v4 = vld [vmem:[#allocation88_spill] sm:$0xff] }
 0xf37   :  { %v2991_v11 = vcombine.low %v8113_v4, %v8112_v20 }
 0xf38   :  { %v2927_v9 = vrot.slane %v2920_v26, %v4929_v14 }
 0xf39   :  { %v2998_v28 = vrot.slane %v2991_v11, %v4929_v14 }
 0xf3a   :  { %2812 = vrot.lane.b32.xlu1 %v2811_v35, %s4879_s20  ;;  %2910 = vrot.lane.b32.xlu0 %v2909_v30, %s4877_s18  ;;  %v7312_v35 = vpop.permute.xlu0 %2297  ;;  %v7314_v30 = vpop.permute.xlu1 %2277 }
 0xf3b   :  { %v3005_v33 = vrot.slane %v2998_v28, %v4929_v14 }
 0xf3e   :  { %2852 = vrot.lane.b32.xlu1 %v2851_v39, %s4872_s11  ;;  %2948 = vrot.lane.b32.xlu0 %v2947_v7, %s4875_s16  ;;  %v7316_v36 = vpop.permute.xlu0 %2335  ;;  %v7318_v29 = vpop.permute.xlu1 %2315 }
 0xf42   :  { %2890 = vrot.lane.b32.xlu1 %v2889_v45, %s4876_s17  ;;  %2986 = vrot.lane.b32.xlu0 %v2985_v31, %s4877_s18  ;;  %v7320_v8 = vpop.permute.xlu0 %4310  ;;  %v7322_v58 = vpop.permute.xlu1 %2353 }
 0xf46   :  { %2928 = vrot.lane.b32.xlu1 %v2927_v9, %s4879_s20  ;;  %v7330_v39 = vpop.permute.xlu1 %4312  ;;  %v7346_v9 = vld [vmem:[%s7729_s0 + $0x17] ss:$8 sm:$0x3] }
 0xf47   :  { %v4407_v28 = vrot.slane %v7346_v9, 1 }
 0xf4a   :  { %2966 = vrot.lane.b32.xlu1 %v2965_v49, %s4872_s11  ;;  %v3359_v49 = vrot.slane %v3352_v44, %v4929_v14 }
 0xf4e   :  { %3006 = vrot.lane.b32.xlu1 %v3005_v33, %s4876_s17  ;;  %v3927_v33 = vcombine.low %v7107_v57, %v7153_v25  ;;  %v3366_v25 = vrot.slane %v3359_v49, %v4929_v14 }
 0xf74   :  { %v4435_v19 = vpop.permute.xlu0 %4434 }
 0xf75   :  { %v4440_v45 = vsub.f32 %v7327_v16, %v4435_v19 }
 0xf78   :  { %v4481_v48 = vpop.permute.xlu0 %4480 }
 0xf7c   :  { %v4413_v7 = vpop.permute.xlu0 %4412 }
 0xf7d   :  { %v7333_v31 = vmul.f32 %v4413_v7, %v4406_v42 }
 0xf7f   :  { %v4442_v26 = vmul.f32 %v4440_v45, %v7333_v31 }
 0xf80   :  { %v4437_v5 = vpop.permute.xlu1 %4436  ;;  %v4425_v3 = vpop.permute.xlu0 %4424 }
 0xf81   :  { %v7336_v34 = vmul.f32 %v4425_v3, %v4406_v42  ;;  %4446 = vrot.lane.b32.xlu0 %v4442_v26, %s4877_s18  ;;  %v4441_v42 = vsub.f32 %v7346_v9, %v4437_v5  ;;  %v4466_v26 = vsub.f32 1.0, %v7333_v31  ;;  %v3934_v3 = vrot.slane %v3927_v33, %v4929_v14 }
 0xf83   :  { %v4454_v20 = vmul.f32 %v4440_v45, %v7336_v34  ;;  %v4486_v50 = vmul.f32 %v4481_v48, %v7336_v34  ;;  %v3392_v45 = vcombine.low %v6428_v40, %v6438_v53  ;;  %v3372_v53 = vcombine.low %v6408_v13, %v6415_v22 }
 0xf84   :  { %v4483_v4 = vpop.permute.xlu1 %4482  ;;  %v4319_v11 = vpop.permute.xlu0 %4318  ;;  %v3987_v40 = vcombine.low %v6715_v12, %v6725_v23  ;;  %v4498_v49 = vmul.f32 %v4481_v48, %v4466_v26  ;;  %v3432_v23 = vcombine.low %v6436_v56, %v6445_v6 }
 0xf85   :  { %4458 = vrot.lane.b32.xlu0 %v4454_v20, %s4875_s16  ;;  %v3379_v12 = vrot.slane %v3372_v53, %v4929_v14  ;;  %v3967_v53 = vcombine.low %v6698_v51, %v6708_v2  ;;  %v8117_v2 = vld [vmem:[#allocation114_spill] sm:$0xff] }
 0xf86   :  { %v3994_v48 = vrot.slane %v3987_v40, %v4929_v14  ;;  %v4324_v40 = vmul.f32 %v4319_v11, %v7079_v37  ;;  %v8118_v37 = vld [vmem:[#allocation115_spill] sm:$0xff] }
 0xf87   :  { %v3386_v56 = vrot.slane %v3379_v12, %v4929_v14  ;;  %v4316_v12 = vmul.f32 %v7320_v8, %v6873_v55  ;;  %v3974_v8 = vrot.slane %v3967_v53, %v4929_v14 }
 0xf88   :  { %v4415_v54 = vpop.permute.xlu1 %4414  ;;  %v7353_v19 = vpop.permute.xlu0 %4226  ;;  %v4001_v6 = vrot.slane %v3994_v48, %v4929_v14  ;;  %v8115_v48 = vld [vmem:[#allocation117_spill] sm:$0xff] }
 0xf89   :  { %v7356_v7 = vmul.f32 %v4415_v54, %v4407_v28  ;;  %4490 = vrot.lane.b32.xlu0 %v4486_v50, %s4875_s16  ;;  %v3399_v50 = vrot.slane %v3392_v45, %v4929_v14  ;;  %v8114_v45 = vld [vmem:[#allocation134_spill] sm:$0xff] }
 0xf8b   :  { %v4443_v57 = vmul.f32 %v4441_v42, %v7356_v7  ;;  %v4467_v44 = vsub.f32 1.0, %v7356_v7 }
 0xf8c   :  { %v4427_v20 = vpop.permute.xlu1 %4426  ;;  %v7366_v41 = vpop.permute.xlu0 %4244 }
 0xf8d   :  { %v7368_v5 = vmul.f32 %v4427_v20, %v4407_v28  ;;  %4448 = vrot.lane.b32.xlu1 %v4443_v57, %s4877_s18  ;;  %3367 = vrot.lane.b32.xlu0 %v3366_v25, %s4874_s1  ;;  %v4499_v33 = vmul.f32 %v4483_v4, %v4467_v44  ;;  %v3941_v57 = vrot.slane %v3934_v3, %v4929_v14 }
 0xf8e   :  { %v3947_v20 = vcombine.low %v8114_v45, %v6765_v59  ;;  %v3439_v59 = vrot.slane %v3432_v23, %v4929_v14  ;;  %v4317_v23 = vmul.f32 %v7330_v39, %v6883_v27  ;;  %v8116_v45 = vld [vmem:[#allocation116_spill] sm:$0xff]  ;;  %v4326_v27 = vadd.f32 %v4324_v40, %v4316_v12 }
 0xf8f   :  { %v4455_v28 = vmul.f32 %v4441_v42, %v7368_v5  ;;  %v4716_v54 = vcombine.low %v7336_v34, %v7368_v5  ;;  %v4582_v22 = vcombine.low %v4498_v49, %v4499_v33  ;;  %v4487_v3 = vmul.f32 %v4483_v4, %v7368_v5 }
 0xf90   :  { %v4321_v25 = vpop.permute.xlu1 %4320  ;;  %v4339_v13 = vpop.permute.xlu0 %4338  ;;  %v3406_v49 = vrot.slane %v3399_v50, %v4929_v14  ;;  %v3954_v4 = vrot.slane %v3947_v20, %v4929_v14  ;;  %v3412_v51 = vcombine.low %v8116_v45, %v8115_v48  ;;  %v3446_v55 = vrot.slane %v3439_v59, %v4929_v14  ;;  %v8123_v45 = vld [vmem:[#allocation125_spill] sm:$0xff] }
 0xf91   :  { %4460 = vrot.lane.b32.xlu1 %v4455_v28, %s4875_s16  ;;  %3942 = vrot.lane.b32.xlu0 %v3941_v57, %s4874_s1  ;;  %v4589_v42 = vrot.slane %v4582_v22, %v4929_v14  ;;  %v4325_v50 = vmul.f32 %v4321_v25, %v7084_v32  ;;  %v8119_v32 = vcombine.low %v8117_v2, %v8118_v37 }
 0xf92   :  { %v4025_v25 = vcombine.low %v6549_v46, %v6555_v15  ;;  %v3961_v20 = vrot.slane %v3954_v4, %v4929_v14  ;;  %v3419_v46 = vrot.slane %v3412_v51, %v4929_v14  ;;  %v4007_v4 = vcombine.low %v6706_v61, %v6718_v38 }
 0xf93   :  { %v7399_v57 = vrot.slane %v4589_v42, %v4929_v14  ;;  %v3515_v11 = vrot.slane %v8119_v32, %v4929_v14  ;;  %v4327_v39 = vadd.f32 %v4325_v50, %v4317_v23 }
 0xf94   :  { %v7396_v33 = vpop.permute.xlu1 %4228  ;;  %v4471_v28 = vpop.permute.xlu0 %4470  ;;  %v4032_v15 = vrot.slane %v4025_v25, %v4929_v14  ;;  %v3426_v2 = vrot.slane %v3419_v46, %v4929_v14  ;;  %v4014_v37 = vrot.slane %v4007_v4, %v4929_v14 }
 0xf95   :  { %4492 = vrot.lane.b32.xlu1 %v4487_v3, %s4875_s16  ;;  %3407 = vrot.lane.b32.xlu0 %v3406_v49, %s4877_s18  ;;  %4790 = vst.msk [vmem:[#allocation6] sm:$0x3] %vm20_vm0, %v7399_v57  ;;  %v2434_v3 = vsel %vm699_vm1, %v7306_v10, %v7310_v0  ;;  %v3522_v59 = vrot.slane %v3515_v11, %v4929_v14 }
 0xf96   :  { %v2435_v10 = vsel %vm701_vm2, %v2434_v3, %v7308_v52  ;;  %v4476_v12 = vmul.f32 %v4471_v28, %v4466_v26  ;;  %v8121_v52 = vld [vmem:[#allocation110_spill] sm:$0xff]  ;;  %v4039_v28 = vrot.slane %v4032_v15, %v4929_v14  ;;  %v4233_v4 = vmul.f32 %v7346_v9, %v7396_v33 }
 0xf97   :  { %v2436_v53 = vsel %vm703_vm3, %v2435_v10, %v7314_v30  ;;  %v8122_v30 = vld [vmem:[#allocation124_spill] sm:$0xff]  ;;  %v4232_v9 = vmul.f32 %v7327_v16, %v7353_v19 }
 0xf98   :  { %v7413_v22 = vpop.permute.xlu1 %4246  ;;  %v2374_v42 = vpop.permute.xlu0 %2373  ;;  %v2437_v32 = vsel %vm705_vm4, %v2436_v53, %v7312_v35 }
 0xf99   :  { %3387 = vrot.lane.b32.xlu1 %v3386_v56, %s4879_s20  ;;  %4002 = vrot.lane.b32.xlu0 %v4001_v6, %s4872_s11  ;;  %v4344_v6 = vadd.f32 %v4339_v13, %v4326_v27  ;;  %v3981_v13 = vrot.slane %v3974_v8, %v4929_v14  ;;  %v2438_v25 = vsel %vm707_vm5, %v2437_v32, %v7318_v29 }
 0xf9a   :  { %v4021_v29 = vrot.slane %v4014_v37, %v4929_v14  ;;  %v7509_v33 = vadd.f32 %v7413_v22, %v4233_v4  ;;  %v4600_v32 = vcombine.low %v7130_v47, %v7166_v21 }
 0xf9b   :  { %v7451_v50 = vadd.f32 %v6923_v17, %v4344_v6  ;;  %v8124_v17 = vcombine.low %v8122_v30, %v8123_v45 }
 0xf9c   :  { %v4341_v49 = vpop.permute.xlu1 %4340  ;;  %v2412_v56 = vpop.permute.xlu0 %2411 }
 0xf9d   :  { %v4345_v48 = vadd.f32 %v4341_v49, %v4327_v39  ;;  %3962 = vrot.lane.b32.xlu1 %v3961_v20, %s4879_s20  ;;  %3447 = vrot.lane.b32.xlu0 %v3446_v55, %s4875_s16  ;;  %v4108_v51 = vrot.slane %v8124_v17, %v4929_v14  ;;  %v8125_v39 = vld [vmem:[#allocation119_spill] sm:$0xff]  ;;  %v8126_v20 = vld [vmem:[#allocation118_spill] sm:$0xff]  ;;  %v8130_v17 = vld [vmem:[#allocation128_spill] sm:$0xff] }
 0xf9e   :  { %v3470_v3 = vcombine.low %v8126_v20, %v8125_v39  ;;  %v4607_v20 = vrot.slane %v4600_v32, %v4929_v14 }
 0xf9f   :  { %v7445_v0 = vadd.f32 %v6921_v24, %v4345_v48  ;;  %v8120_v24 = vld [vmem:[#allocation111_spill] sm:$0xff]  ;;  %v4115_v48 = vrot.slane %v4108_v51, %v4929_v14  ;;  %v8131_v51 = vld [vmem:[#allocation129_spill] sm:$0xff] }
 0xfa0   :  { %v4473_v40 = vpop.permute.xlu1 %4472  ;;  %v7457_v38 = vpop.permute.xlu0 %2792  ;;  %v3450_v23 = vcombine.low %v8121_v52, %v8120_v24  ;;  %v4614_v4 = vrot.slane %v4607_v20, %v4929_v14 }
 0xfa1   :  { %v4477_v61 = vmul.f32 %v4473_v40, %v4467_v44  ;;  %3982 = vrot.lane.b32.xlu1 %v3981_v13, %s4877_s18  ;;  %3523 = vrot.lane.b32.xlu0 %v3522_v59, %s4875_s16  ;;  %v4658_v26 = vcombine.low %v7451_v50, %v7445_v0  ;;  %v8128_v13 = vld [vmem:[#allocation107_spill] sm:$0xff]  ;;  %v3477_v40 = vrot.slane %v3470_v3, %v4929_v14 }
 0xfa2   :  { %v3457_v27 = vrot.slane %v3450_v23, %v4929_v14  ;;  %v7515_v23 = vadd.f32 %v7366_v41, %v4232_v9  ;;  %v8133_v41 = vld [vmem:[#allocation130_spill] sm:$0xff] }
 0xfa3   :  { %v4542_v44 = vcombine.low %v4476_v12, %v4477_v61  ;;  %v4665_v49 = vrot.slane %v4658_v26, %v4929_v14  ;;  %v3484_v22 = vrot.slane %v3477_v40, %v4929_v14 }
 0xfa4   :  { %v2392_v11 = vpop.permute.xlu1 %2391  ;;  %v2833_v6 = vpop.permute.xlu0 %2832  ;;  %v3464_v12 = vrot.slane %v3457_v27, %v4929_v14  ;;  %v8137_v27 = vld [vmem:[#allocation104_spill] sm:$0xff] }
 0xfa5   :  { %v4549_v55 = vrot.slane %v4542_v44, %v4929_v14  ;;  %v2441_v8 = vsel %vm699_vm1, %v2374_v42, %v2392_v11  ;;  %3427 = vrot.lane.b32.xlu1 %v3426_v2, %s4872_s11  ;;  %4040 = vrot.lane.b32.xlu0 %v4039_v28, %s4876_s17  ;;  %v2439_v42 = vsel %vm709_vm6, %v2438_v25, %v7316_v36  ;;  %v8127_v36 = vld [vmem:[#allocation106_spill] sm:$0xff]  ;;  %v8134_v44 = vld [vmem:[#allocation131_spill] sm:$0xff] }
 0xfa6   :  { %v2442_v15 = vsel %vm701_vm2, %v2441_v8, %v2412_v56  ;;  %v2440_v59 = vsel %vm711_vm7, %v2439_v42, %v7322_v58  ;;  %v8129_v53 = vcombine.low %v8127_v36, %v8128_v13  ;;  %v4672_v61 = vrot.slane %v4665_v49, %v4929_v14  ;;  %v8136_v8 = vld [vmem:[#allocation105_spill] sm:$0xff] }
 0xfa7   :  { %v7485_v35 = vrot.slane %v4549_v55, %v4929_v14  ;;  %v8132_v2 = vcombine.low %v8130_v17, %v8131_v51  ;;  %v8135_v28 = vcombine.low %v8133_v41, %v8134_v44  ;;  %v4620_v11 = vcombine.low %v7515_v23, %v7509_v33 }
 0xfa8   :  { %v2432_v46 = vpop.permute.xlu1 %2431  ;;  %v3533_v56 = vrot.slane %v8129_v53, %v4929_v14  ;;  %v2873_v30 = vpop.permute.xlu0 %2872  ;;  %v3488_v39 = vcombine.low %v8137_v27, %v8136_v8 }
 0xfa9   :  { %4784 = vst.msk [vmem:[#allocation4] sm:$0x3] %vm20_vm0, %v7485_v35  ;;  %v2443_v10 = vsel %vm703_vm3, %v2442_v15, %v2432_v46  ;;  %4022 = vrot.lane.b32.xlu1 %v4021_v29, %s4875_s16  ;;  %4116 = vrot.lane.b32.xlu0 %v4115_v48, %s4872_s11  ;;  %v4090_v26 = vrot.slane %v8132_v2, %v4929_v14 }
 0xfaa   :  { %v2446_v58 = vcombine.low %v2440_v59, %v2443_v10  ;;  %v3540_v19 = vrot.slane %v3533_v56, %v4929_v14  ;;  %v4052_v37 = vrot.slane %v8135_v28, %v4929_v14  ;;  %v4627_v3 = vrot.slane %v4620_v11, %v4929_v14  ;;  %v8138_v56 = vld [vmem:[#allocation120_spill] sm:$0xff] }
 0xfab   :  { %v4097_v29 = vrot.slane %v4090_v26, %v4929_v14  ;;  %v4683_v15 = vrot.slane %v4676_v62, %v4929_v14  ;;  %v3495_v10 = vrot.slane %v3488_v39, %v4929_v14  ;;  %v8140_v63 = vcombine.low %v8138_v56, %v8139_v1  ;;  %v8146_v39 = vld [vmem:[#allocation127_spill] sm:$0xff] }
 0xfac   :  { %v2453_v24 = vrot.slane %v2446_v58, %v4929_v14  ;;  %v2813_v52 = vpop.permute.xlu1 %2812  ;;  %v2911_v49 = vpop.permute.xlu0 %2910  ;;  %v4059_v48 = vrot.slane %v4052_v37, %v4929_v14  ;;  %v4634_v59 = vrot.slane %v4627_v3, %v4929_v14  ;;  %v4696_v11 = vcombine.low %v7333_v31, %v7356_v7 }
 0xfad   :  { %3465 = vrot.lane.b32.xlu1 %v3464_v12, %s4876_s17  ;;  %4673 = vrot.lane.b32.xlu0 %v4672_v61, %s4875_s16  ;;  %v3009_v46 = vsel %vm699_vm1, %v7457_v38, %v2813_v52  ;;  %v3553_v62 = vrot.slane %v8140_v63, %v4929_v14  ;;  %v4690_v40 = vrot.slane %v4683_v15, %v4929_v14  ;;  %v8142_v52 = vld [vmem:[#allocation112_spill] sm:$0xff] }
 0xfae   :  { %v2454_v45 = vcombine.high %v2453_v24, %v2453_v24  ;;  %v2461_v16 = vrot.slane %v2453_v24, %v4929_v14  ;;  %v3010_v36 = vsel %vm701_vm2, %v3009_v46, %v2833_v6  ;;  %v3502_v58 = vrot.slane %v3495_v10, %v4929_v14  ;;  %v8141_v24 = vld [vmem:[#allocation113_spill] sm:$0xff] }
 0xfaf   :  { %v4703_v3 = vrot.slane %v4696_v11, %v4929_v14 }
 0xfb0   :  { %v2468_v25 = vrot.slane %v2454_v45, %v4929_v14  ;;  %4812 = vst.msk [vmem:[%s7731_s2 + $0x3] ss:$8 sm:$0x3] %vm7011_vm8, %v2461_v16  ;;  %v2853_v55 = vpop.permute.xlu1 %2852  ;;  %v2949_v53 = vpop.permute.xlu0 %2948  ;;  %v3566_v45 = vcombine.low %v8142_v52, %v8141_v24  ;;  %v8143_v16 = vld [vmem:[#allocation132_spill] sm:$0xff] }
 0xfb1   :  { %3541 = vrot.lane.b32.xlu1 %v3540_v19, %s4872_s11  ;;  %3485 = vrot.lane.b32.xlu0 %v3484_v22, %s4877_s18  ;;  %v3011_v38 = vsel %vm703_vm3, %v3010_v36, %v2853_v55  ;;  %v8144_v19 = vld [vmem:[#allocation133_spill] sm:$0xff] }
 0xfb2   :  { %4813 = vst.msk [vmem:[%s7731_s2 + $0x13] ss:$8 sm:$0x3] %vm7011_vm8, %v2468_v25  ;;  %v3012_v9 = vsel %vm705_vm4, %v3011_v38, %v2873_v30  ;;  %v8145_v22 = vcombine.low %v8143_v16, %v8144_v19  ;;  %v3560_v30 = vrot.slane %v3553_v62, %v4929_v14  ;;  %v3573_v32 = vrot.slane %v3566_v45, %v4929_v14  ;;  %v8149_v38 = vld [vmem:[#allocation122_spill] sm:$0xff] }
 0xfb3   :  { %v8150_v45 = vcombine.low %v7098_v60, %v7111_v18 }
 0xfb4   :  { %v2891_v42 = vpop.permute.xlu1 %2890  ;;  %v4128_v17 = vrot.slane %v8145_v22, %v4929_v14  ;;  %v2987_v51 = vpop.permute.xlu0 %2986 }
 0xfb5   :  { %4098 = vrot.lane.b32.xlu1 %v4097_v29, %s4875_s16  ;;  %4060 = vrot.lane.b32.xlu0 %v4059_v48, %s4877_s18  ;;  %v3013_v12 = vsel %vm707_vm5, %v3012_v9, %v2891_v42  ;;  %v4645_v16 = vrot.slane %v8150_v45, %v4929_v14 }
 0xfb6   :  { %v3014_v2 = vsel %vm709_vm6, %v3013_v12, %v2911_v49  ;;  %v4135_v25 = vrot.slane %v4128_v17, %v4929_v14  ;;  %v3580_v49 = vrot.slane %v3573_v32, %v4929_v14 }
 0xfb8   :  { %v2929_v13 = vpop.permute.xlu1 %2928 }
 0xfb9   :  { %4615 = vrot.lane.b32.xlu1 %v4614_v4, %s4876_s17  ;;  %4635 = vrot.lane.b32.xlu0 %v4634_v59, %s4877_s18  ;;  %v3015_v44 = vsel %vm711_vm7, %v3014_v2, %v2929_v13  ;;  %v8148_v13 = vld [vmem:[#allocation123_spill] sm:$0xff] }
 0xfbc   :  { %v2967_v6 = vpop.permute.xlu1 %2966 }
 0xfbd   :  { %v3016_v61 = vsel %vm699_vm1, %v2949_v53, %v2967_v6  ;;  %4691 = vrot.lane.b32.xlu1 %v4690_v40, %s4872_s11  ;;  %3503 = vrot.lane.b32.xlu0 %v3502_v58, %s4879_s20  ;;  %v4063_v53 = vcombine.low %v8149_v38, %v8148_v13 }
 0xfbe   :  { %v3017_v41 = vsel %vm701_vm2, %v3016_v61, %v2987_v51  ;;  %v4652_v51 = vrot.slane %v4645_v16, %v4929_v14 }
 0xfbf   :  { %v4070_v6 = vrot.slane %v4063_v53, %v4929_v14 }
 0xfc0   :  { %v3007_v26 = vpop.permute.xlu1 %3006 }
 0xfc1   :  { %v3018_v28 = vsel %vm703_vm3, %v3017_v41, %v3007_v26  ;;  %3561 = vrot.lane.b32.xlu1 %v3560_v30, %s4877_s18  ;;  %4557 = vrot.lane.b32.xlu0 %v7485_v35, %s4877_s18  ;;  %v8147_v35 = vld [vmem:[#allocation126_spill] sm:$0xff] }
 0xfc2   :  { %v3021_v37 = vcombine.low %v3015_v44, %v3018_v28  ;;  %v4141_v20 = vcombine.low %v8147_v35, %v8146_v39 }
 0xfc4   :  { %v3028_v55 = vrot.slane %v3021_v37, %v4929_v14  ;;  %v4148_v7 = vrot.slane %v4141_v20, %v4929_v14 }
 0xfc5   :  { %4136 = vrot.lane.b32.xlu1 %v4135_v25, %s4877_s18  ;;  %4597 = vrot.lane.b32.xlu0 %v7399_v57, %s4875_s16  ;;  %v4710_v57 = vrot.slane %v4703_v3, %v4929_v14 }
 0xfc6   :  { %v3029_v8 = vcombine.high %v3028_v55, %v3028_v55  ;;  %v3036_v27 = vrot.slane %v3028_v55, %v4929_v14  ;;  %v4155_v29 = vrot.slane %v4148_v7, %v4929_v14 }
 0xfc8   :  { %v3043_v31 = vrot.slane %v3029_v8, %v4929_v14  ;;  %4816 = vst.msk [vmem:[%s7731_s2 + $0x4] ss:$8 sm:$0x3] %vm7011_vm8, %v3036_v27 }
 0xfc9   :  { %3581 = vrot.lane.b32.xlu1 %v3580_v49, %s4876_s17 }
 0xfca   :  { %4817 = vst.msk [vmem:[%s7731_s2 + $0x14] ss:$8 sm:$0x3] %vm7011_vm8, %v3043_v31 }
 0xfcd   :  { %4711 = vrot.lane.b32.xlu1 %v4710_v57, %s4877_s18 }
 0xfd1   :  { %4156 = vrot.lane.b32.xlu1 %v4155_v29, %s4876_s17 }
 0xff3   :  { %v4447_v48 = vpop.permute.xlu0 %4446 }
 0xff4   :  { %v4452_v4 = vadd.f32 %v4447_v48, %v7130_v47 }
 0xff7   :  { %v4459_v42 = vpop.permute.xlu0 %4458 }
 0xff8   :  { %v4464_v63 = vadd.f32 %v4459_v42, %v7515_v23 }
 0xffb   :  { %v4491_v46 = vpop.permute.xlu0 %4490 }
 0xfff   :  { %v4449_v15 = vpop.permute.xlu1 %4448  ;;  %v3368_v59 = vpop.permute.xlu0 %3367 }
0x1000   :  { %v4453_v10 = vadd.f32 %v4449_v15, %v7166_v21  ;;  %v4496_v21 = vsub.f32 %v7451_v50, %v4491_v46 }
0x1002   :  { %v4502_v36 = vcombine.low %v4452_v4, %v4453_v10 }
0x1003   :  { %v4461_v56 = vpop.permute.xlu1 %4460  ;;  %v3943_v1 = vpop.permute.xlu0 %3942 }
0x1004   :  { %v4509_v62 = vrot.slane %v4502_v36, %v4929_v14  ;;  %v4465_v40 = vadd.f32 %v4461_v56, %v7509_v33  ;;  %v4077_v33 = vrot.slane %v4070_v6, %v4929_v14 }
0x1006   :  { %v4516_v58 = vrot.slane %v4509_v62, %v4929_v14  ;;  %v4522_v9 = vcombine.low %v4464_v63, %v4465_v40 }
0x1007   :  { %v4493_v47 = vpop.permute.xlu1 %4492  ;;  %v3408_v12 = vpop.permute.xlu0 %3407 }
0x1008   :  { %v4529_v61 = vrot.slane %v4522_v9, %v4929_v14  ;;  %v4497_v24 = vsub.f32 %v7445_v0, %v4493_v47  ;;  %4517 = vrot.lane.b32.xlu0 %v4516_v58, %s4874_s1  ;;  %v4723_v0 = vrot.slane %v4716_v54, %v4929_v14 }
0x100a   :  { %v4536_v23 = vrot.slane %v4529_v61, %v4929_v14  ;;  %v4562_v52 = vcombine.low %v4496_v21, %v4497_v24  ;;  %v4730_v2 = vrot.slane %v4723_v0, %v4929_v14 }
0x100b   :  { %v3388_v19 = vpop.permute.xlu1 %3387  ;;  %v4003_v22 = vpop.permute.xlu0 %4002 }
0x100c   :  { %v4569_v50 = vrot.slane %v4562_v52, %v4929_v14  ;;  %4078 = vrot.lane.b32.xlu0 %v4077_v33, %s4879_s20  ;;  %4537 = vrot.lane.b32.xlu1 %v4536_v23, %s4879_s20  ;;  %v3584_v57 = vsel %vm699_vm1, %v3368_v59, %v3388_v19 }
0x100d   :  { %v3585_v42 = vsel %vm701_vm2, %v3584_v57, %v3408_v12 }
0x100e   :  { %v4576_v17 = vrot.slane %v4569_v50, %v4929_v14 }
0x100f   :  { %v3963_v30 = vpop.permute.xlu1 %3962  ;;  %v3448_v60 = vpop.permute.xlu0 %3447 }
0x1010   :  { %v4159_v18 = vsel %vm699_vm1, %v3943_v1, %v3963_v30  ;;  %4653 = vrot.lane.b32.xlu0 %v4652_v51, %s4879_s20  ;;  %4577 = vrot.lane.b32.xlu1 %v4576_v17, %s4872_s11 }
0x1013   :  { %v3983_v26 = vpop.permute.xlu1 %3982  ;;  %v3524_v41 = vpop.permute.xlu0 %3523 }
0x1014   :  { %v4160_v44 = vsel %vm701_vm2, %v4159_v18, %v3983_v26  ;;  %4779 = vrot.lane.b32.xlu0 %v4536_v23, %s4875_s16  ;;  %4731 = vrot.lane.b32.xlu1 %v4730_v2, %s4876_s17 }
0x1015   :  { %v4161_v34 = vsel %vm703_vm3, %v4160_v44, %v4003_v22 }
0x1017   :  { %v3428_v5 = vpop.permute.xlu1 %3427  ;;  %v4041_v54 = vpop.permute.xlu0 %4040 }
0x1018   :  { %4785 = vrot.lane.b32.xlu1 %v4576_v17, %s4875_s16  ;;  %v3586_v46 = vsel %vm703_vm3, %v3585_v42, %v3428_v5 }
0x1019   :  { %v3587_v10 = vsel %vm705_vm4, %v3586_v46, %v3448_v60 }
0x101b   :  { %v4023_v28 = vpop.permute.xlu1 %4022  ;;  %v4117_v37 = vpop.permute.xlu0 %4116 }
0x101c   :  { %v4162_v32 = vsel %vm705_vm4, %v4161_v34, %v4023_v28 }
0x101d   :  { %v4163_v11 = vsel %vm707_vm5, %v4162_v32, %v4041_v54 }
0x101f   :  { %v3466_v25 = vpop.permute.xlu1 %3465  ;;  %v4674_v55 = vpop.permute.xlu0 %4673 }
0x1020   :  { %v3588_v13 = vsel %vm707_vm5, %v3587_v10, %v3466_v25 }
0x1023   :  { %v3542_v8 = vpop.permute.xlu1 %3541  ;;  %v3486_v27 = vpop.permute.xlu0 %3485 }
0x1024   :  { %v3591_v38 = vsel %vm699_vm1, %v3524_v41, %v3542_v8  ;;  %v3589_v53 = vsel %vm709_vm6, %v3588_v13, %v3486_v27 }
0x1027   :  { %v4099_v39 = vpop.permute.xlu1 %4098  ;;  %v4061_v35 = vpop.permute.xlu0 %4060 }
0x1028   :  { %v4166_v20 = vsel %vm699_vm1, %v4099_v39, %v4117_v37  ;;  %v4164_v3 = vsel %vm709_vm6, %v4163_v11, %v4061_v35 }
0x102b   :  { %v4616_v49 = vpop.permute.xlu1 %4615  ;;  %v4636_v29 = vpop.permute.xlu0 %4635 }
0x102f   :  { %v4692_v31 = vpop.permute.xlu1 %4691  ;;  %v3504_v36 = vpop.permute.xlu0 %3503 }
0x1030   :  { %v4741_v7 = vsel %vm699_vm1, %v4674_v55, %v4692_v31  ;;  %v3590_v1 = vsel %vm711_vm7, %v3589_v53, %v3504_v36 }
0x1033   :  { %v3562_v48 = vpop.permute.xlu1 %3561  ;;  %v4558_v47 = vpop.permute.xlu0 %4557 }
0x1034   :  { %v3592_v59 = vsel %vm701_vm2, %v3591_v38, %v3562_v48 }
0x1037   :  { %v4137_v15 = vpop.permute.xlu1 %4136  ;;  %v4598_v21 = vpop.permute.xlu0 %4597 }
0x1038   :  { %v4167_v4 = vsel %vm701_vm2, %v4166_v20, %v4137_v15 }
0x103b   :  { %v3582_v56 = vpop.permute.xlu1 %3581 }
0x103c   :  { %v3593_v63 = vsel %vm703_vm3, %v3592_v59, %v3582_v56 }
0x103d   :  { %v3596_v62 = vcombine.low %v3590_v1, %v3593_v63 }
0x103f   :  { %v3603_v40 = vrot.slane %v3596_v62, %v4929_v14  ;;  %v4712_v12 = vpop.permute.xlu1 %4711 }
0x1040   :  { %v4742_v26 = vsel %vm701_vm2, %v4741_v7, %v4712_v12 }
0x1041   :  { %v3604_v58 = vcombine.high %v3603_v40, %v3603_v40  ;;  %v3611_v9 = vrot.slane %v3603_v40, %v4929_v14 }
0x1043   :  { %v3618_v6 = vrot.slane %v3604_v58, %v4929_v14  ;;  %4820 = vst.msk [vmem:[%s7731_s2 + $0x5] ss:$8 sm:$0x3] %vm7011_vm8, %v3611_v9  ;;  %v4157_v61 = vpop.permute.xlu1 %4156 }
0x1044   :  { %v4168_v33 = vsel %vm703_vm3, %v4167_v4, %v4157_v61 }
0x1045   :  { %4821 = vst.msk [vmem:[%s7731_s2 + $0x15] ss:$8 sm:$0x3] %vm7011_vm8, %v3618_v6 }
0x107a   :  { %v4518_v24 = vpop.permute.xlu0 %4517 }
0x107b   :  { %4778 = vst.msk [vmem:[#allocation2] sm:$0x3] %vm20_vm0, %v4518_v24 }
0x107e   :  { %v4538_v23 = vpop.permute.xlu1 %4537  ;;  %v4079_v52 = vpop.permute.xlu0 %4078 }
0x107f   :  { %v4734_v45 = vsel %vm699_vm1, %v4518_v24, %v4538_v23  ;;  %v4165_v16 = vsel %vm711_vm7, %v4164_v3, %v4079_v52 }
0x1080   :  { %v4171_v19 = vcombine.low %v4165_v16, %v4168_v33  ;;  %v4735_v0 = vsel %vm701_vm2, %v4734_v45, %v4558_v47 }
0x1082   :  { %v4178_v22 = vrot.slane %v4171_v19, %v4929_v14  ;;  %v4578_v50 = vpop.permute.xlu1 %4577  ;;  %v4654_v17 = vpop.permute.xlu0 %4653 }
0x1083   :  { %v4736_v51 = vsel %vm703_vm3, %v4735_v0, %v4578_v50 }
0x1084   :  { %v4179_v30 = vcombine.high %v4178_v22, %v4178_v22  ;;  %v4186_v60 = vrot.slane %v4178_v22, %v4929_v14  ;;  %v4737_v18 = vsel %vm705_vm4, %v4736_v51, %v4598_v21 }
0x1085   :  { %v4738_v2 = vsel %vm707_vm5, %v4737_v18, %v4616_v49 }
0x1086   :  { %v4193_v41 = vrot.slane %v4179_v30, %v4929_v14  ;;  %4824 = vst.msk [vmem:[%s7731_s2 + $0x6] ss:$8 sm:$0x3] %vm7011_vm8, %v4186_v60  ;;  %v4739_v44 = vsel %vm709_vm6, %v4738_v2, %v4636_v29  ;;  %v4732_v34 = vpop.permute.xlu1 %4731  ;;  %v4780_v5 = vpop.permute.xlu0 %4779 }
0x1087   :  { %v4740_v54 = vsel %vm711_vm7, %v4739_v44, %v4654_v17  ;;  %v4743_v28 = vsel %vm703_vm3, %v4742_v26, %v4732_v34  ;;  %4782 = vst.msk [vmem:[#allocation3] sm:$0x3] %vm20_vm0, %v4780_v5 }
0x1088   :  { %4825 = vst.msk [vmem:[%s7731_s2 + $0x16] ss:$8 sm:$0x3] %vm7011_vm8, %v4193_v41  ;;  %v4746_v37 = vcombine.low %v4740_v54, %v4743_v28 }
0x108a   :  { %v4753_v32 = vrot.slane %v4746_v37, %v4929_v14  ;;  %v4786_v11 = vpop.permute.xlu1 %4785 }
0x108b   :  { %4788 = vst.msk [vmem:[#allocation5] sm:$0x3] %vm20_vm0, %v4786_v11 }
0x108c   :  { %v4754_v25 = vcombine.high %v4753_v32, %v4753_v32  ;;  %v4761_v55 = vrot.slane %v4753_v32, %v4929_v14 }
0x108e   :  { %v4768_v8 = vrot.slane %v4754_v25, %v4929_v14  ;;  %4828 = vst.msk [vmem:[%s7731_s2 + $0x7] ss:$8 sm:$0x3] %vm7011_vm8, %v4761_v55 }
0x1090   :  { %4829 = vst.msk [vmem:[%s7731_s2 + $0x17] ss:$8 sm:$0x3] %vm7011_vm8, %v4768_v8 }

</bundles_post_ra>
